<compile_context>
chip_gen: v5e
topology: v5e:2x2
jax: 0.10.0
libtpu: 0.0.40
codegen_flags: <defaults>
</compile_context>

<pallas_src>
import math
from functools import partial

import jax
import jax.numpy as jnp
from jax.experimental import pallas as pl
from jax.experimental.pallas import tpu as pltpu


def _user_encoder_kernel(x_ref, wqkv_ref, bqkv_ref, wo_ref, bo_ref,
                         wa_ref, ba_ref, qv_ref, out_ref,
                         *, num_batch, seq_len, num_heads, head_dim):
    """Fused MHA (over axis A, batched over B and heads) + additive attention.

    x_ref:    (B*A, E) rows ordered b-major (row = b*A + a)
    wqkv_ref: (E, 3E)  pre-transposed [Wq*scale ; Wk ; Wv]
    bqkv_ref: (1, 3E)
    wo_ref:   (E, E)   pre-transposed out_proj weight
    bo_ref:   (1, E)
    wa_ref:   (E, Q)   pre-transposed additive linear weight
    ba_ref:   (1, Q)
    qv_ref:   (Q, 1)   additive query vector
    out_ref:  (A, E)
    """
    A = seq_len
    B = num_batch
    E = num_heads * head_dim

    # ---- single fused QKV projection for all (a, b) rows -------------------
    qkv = jnp.dot(x_ref[...], wqkv_ref[...],
                  preferred_element_type=jnp.float32) + bqkv_ref[...]  # (B*A, 3E)

    # Hoist weight loads out of the loops.
    wo_t = wo_ref[...]      # (E, E)
    bo = bo_ref[...]        # (1, E)
    wa_t = wa_ref[...]      # (E, Q)
    ba = ba_ref[...]        # (1, Q)
    qv = qv_ref[...]        # (Q, 1)

    # Running (online) softmax state for the additive attention over B.
    m_i = None              # (A, 1) running max of scores
    l_i = None              # (A, 1) running sum of exp
    acc = None              # (A, E) running weighted sum of MHA outputs

    for b in range(B):      # static unroll: no grid-step / launch overhead
        qkv_b = qkv[b * A:(b + 1) * A, :]          # (A, 3E)
        q = qkv_b[:, :E]                           # already scaled by 1/sqrt(D)
        k = qkv_b[:, E:2 * E]
        v = qkv_b[:, 2 * E:]

        # ---- multi-head attention over the sequence axis A ----------------
        # Accumulate the output projection per head: no lane-axis concat.
        ctx_proj = jnp.zeros((A, E), jnp.float32)
        for h in range(num_heads):                 # static unroll
            sl = slice(h * head_dim, (h + 1) * head_dim)
            qh = q[:, sl]
            kh = k[:, sl]
            vh = v[:, sl]
            s = jnp.dot(qh, kh.T, preferred_element_type=jnp.float32)   # (A, A)
            s = s - jnp.max(s, axis=-1, keepdims=True)
            p = jnp.exp(s)
            attn = p * pl.reciprocal(jnp.sum(p, axis=-1, keepdims=True),
                                     approx=True)
            ctx_h = jnp.dot(attn, vh, preferred_element_type=jnp.float32)  # (A, D)
            ctx_proj = ctx_proj + jnp.dot(ctx_h, wo_t[sl, :],
                                          preferred_element_type=jnp.float32)
        mha_b = ctx_proj + bo                      # (A, E) — MHA output column b

        # ---- additive-attention score for this batch column ---------------
        t = jnp.tanh(jnp.dot(mha_b, wa_t, preferred_element_type=jnp.float32) + ba)
        s_b = jnp.dot(t, qv, preferred_element_type=jnp.float32)        # (A, 1)

        # ---- online softmax over B + weighted accumulation -----------------
        if b == 0:
            m_i = s_b
            l_i = jnp.ones_like(s_b)
            acc = mha_b
        else:
            m_new = jnp.maximum(m_i, s_b)
            alpha = jnp.exp(m_i - m_new)
            p_b = jnp.exp(s_b - m_new)
            l_i = alpha * l_i + p_b
            acc = alpha * acc + p_b * mha_b
            m_i = m_new

    out = acc * pl.reciprocal(l_i, approx=True)    # (A, E)
    out_ref[...] = out.astype(out_ref.dtype)


def user_encoder_forward(x, params, *, num_heads):
    A, B, E = x.shape
    head_dim = E // num_heads
    Q = params["add_linear_weight"].shape[0]
    scale = 1.0 / math.sqrt(head_dim)

    # Pre-transpose / pre-fold everything in the wrapper so no weight `.T`
    # appears inside the kernel.
    wq, wk, wv = jnp.split(params["in_proj_weight"], 3, axis=0)
    bq, bk, bv = jnp.split(params["in_proj_bias"], 3)
    wqkv_t = jnp.concatenate([wq * scale, wk, wv], axis=0).T            # (E, 3E)
    bqkv = jnp.concatenate([bq * scale, bk, bv]).reshape(1, 3 * E)       # (1, 3E)
    wo_t = params["out_proj_weight"].T                                   # (E, E)
    bo = params["out_proj_bias"].reshape(1, E)
    wa_t = params["add_linear_weight"].T                                 # (E, Q)
    ba = params["add_linear_bias"].reshape(1, Q)
    qv = params["add_query_vector"].reshape(Q, 1)

    # (A, B, E) -> (B*A, E), rows grouped by the MHA batch axis (b-major).
    # Tiny (4 KiB) XLA transpose+reshape; everything else is fused in-kernel.
    x2d = jnp.transpose(x, (1, 0, 2)).reshape(B * A, E)

    kernel = partial(_user_encoder_kernel, num_batch=B, seq_len=A,
                     num_heads=num_heads, head_dim=head_dim)
    vmem = pl.BlockSpec(memory_space=pltpu.MemorySpace.VMEM)
    out = pl.pallas_call(
        kernel,
        out_shape=jax.ShapeDtypeStruct((A, E), x.dtype),
        in_specs=[vmem] * 8,
        out_specs=vmem,
    )(x2d, wqkv_t, bqkv, wo_t, bo, wa_t, ba, qv)
    return out


def user_encoder_ref(x, params, *, num_heads):
    """Pure-JAX reference mirroring torch.nn.MultiheadAttention + NRMS AdditiveAttention."""
    A, B, E = x.shape
    D = E // num_heads
    wq, wk, wv = jnp.split(params["in_proj_weight"], 3, axis=0)
    bq, bk, bv = jnp.split(params["in_proj_bias"], 3)
    q = (x @ wq.T + bq).reshape(A, B, num_heads, D)
    k = (x @ wk.T + bk).reshape(A, B, num_heads, D)
    v = (x @ wv.T + bv).reshape(A, B, num_heads, D)
    s = jnp.einsum("abhd,mbhd->bham", q, k) / math.sqrt(D)
    attn = jax.nn.softmax(s, axis=-1)
    ctx = jnp.einsum("bham,mbhd->abhd", attn, v).reshape(A, B, E)
    mha = ctx @ params["out_proj_weight"].T + params["out_proj_bias"]
    temp = jnp.tanh(mha @ params["add_linear_weight"].T + params["add_linear_bias"])
    scores = temp @ params["add_query_vector"]          # (A, B)
    w = jax.nn.softmax(scores, axis=1)
    return jnp.einsum("ab,abe->ae", w, mha)


if __name__ == "__main__":
    A, B = 4, 8              # (axis0, axis1) of clicked_news_vector
    E = 32                   # word_embedding_dim
    H = 4                    # num_attention_heads
    Q = 16                   # query_vector_dim

    key = jax.random.PRNGKey(0)
    ks = jax.random.split(key, 8)
    params = {
        "in_proj_weight": 0.1 * jax.random.normal(ks[0], (3 * E, E), jnp.float32),
        "in_proj_bias": 0.1 * jax.random.normal(ks[1], (3 * E,), jnp.float32),
        "out_proj_weight": 0.1 * jax.random.normal(ks[2], (E, E), jnp.float32),
        "out_proj_bias": 0.1 * jax.random.normal(ks[3], (E,), jnp.float32),
        "add_linear_weight": 0.1 * jax.random.normal(ks[4], (Q, E), jnp.float32),
        "add_linear_bias": 0.1 * jax.random.normal(ks[5], (Q,), jnp.float32),
        "add_query_vector": 0.1 * jax.random.normal(ks[6], (Q,), jnp.float32),
    }
    x = jax.random.normal(ks[7], (A, B, E), jnp.float32)

    out = user_encoder_forward(x, params, num_heads=H)
    jax.block_until_ready(out)

    ref = user_encoder_ref(x, params, num_heads=H)
    assert out.shape == (A, E)
    assert jnp.allclose(out, ref, atol=1e-2, rtol=1e-2), "kernel != reference"
    print("KERNEL_OK")
</pallas_src>

<mosaic_0001>
module attributes {stable_mosaic.version = 11 : i64} {
  func.func @_user_encoder_kernel(%arg0: memref<32x32xf32, #tpu.memory_space<vmem>>, %arg1: memref<32x96xf32, #tpu.memory_space<vmem>>, %arg2: memref<1x96xf32, #tpu.memory_space<vmem>>, %arg3: memref<32x32xf32, #tpu.memory_space<vmem>>, %arg4: memref<1x32xf32, #tpu.memory_space<vmem>>, %arg5: memref<32x16xf32, #tpu.memory_space<vmem>>, %arg6: memref<1x16xf32, #tpu.memory_space<vmem>>, %arg7: memref<16x1xf32, #tpu.memory_space<vmem>>, %arg8: memref<4x32xf32, #tpu.memory_space<vmem>>) attributes {dimension_semantics = [], scalar_prefetch = 0 : i64, scratch_operands = 0 : i64, tpu.core_type = #tpu.core_type<tc>} {
    %c0 = arith.constant 0 : index
    %c0_0 = arith.constant 0 : index
    %0 = vector.load %arg0[%c0, %c0_0] : memref<32x32xf32, #tpu.memory_space<vmem>>, vector<32x32xf32>
    %c0_1 = arith.constant 0 : index
    %c0_2 = arith.constant 0 : index
    %1 = vector.load %arg1[%c0_1, %c0_2] : memref<32x96xf32, #tpu.memory_space<vmem>>, vector<32x96xf32>
    %cst = arith.constant dense<0.000000e+00> : vector<32x96xf32>
    %2 = tpu.matmul %0, %1, %cst {dimension_numbers = #tpu.dot_dimension_numbers<[1], [0], [0], [1], [0, 0, 1, 1], [], []>} : vector<32x32xf32>, vector<32x96xf32>, vector<32x96xf32> -> vector<32x96xf32>
    %c0_3 = arith.constant 0 : index
    %c0_4 = arith.constant 0 : index
    %3 = vector.load %arg2[%c0_3, %c0_4] : memref<1x96xf32, #tpu.memory_space<vmem>>, vector<1x96xf32>
    %4 = vector.broadcast %3 : vector<1x96xf32> to vector<32x96xf32>
    %5 = arith.addf %2, %4 : vector<32x96xf32>
    %c0_5 = arith.constant 0 : index
    %c0_6 = arith.constant 0 : index
    %6 = vector.load %arg3[%c0_5, %c0_6] : memref<32x32xf32, #tpu.memory_space<vmem>>, vector<32x32xf32>
    %c0_7 = arith.constant 0 : index
    %c0_8 = arith.constant 0 : index
    %7 = vector.load %arg4[%c0_7, %c0_8] : memref<1x32xf32, #tpu.memory_space<vmem>>, vector<1x32xf32>
    %c0_9 = arith.constant 0 : index
    %c0_10 = arith.constant 0 : index
    %8 = vector.load %arg5[%c0_9, %c0_10] : memref<32x16xf32, #tpu.memory_space<vmem>>, vector<32x16xf32>
    %c0_11 = arith.constant 0 : index
    %c0_12 = arith.constant 0 : index
    %9 = vector.load %arg6[%c0_11, %c0_12] : memref<1x16xf32, #tpu.memory_space<vmem>>, vector<1x16xf32>
    %c0_13 = arith.constant 0 : index
    %c0_14 = arith.constant 0 : index
    %10 = vector.load %arg7[%c0_13, %c0_14] : memref<16x1xf32, #tpu.memory_space<vmem>>, vector<16x1xf32>
    %11 = vector.extract_strided_slice %5 {offsets = [0, 0], sizes = [4, 96], strides = [1, 1]} : vector<32x96xf32> to vector<4x96xf32>
    %12 = vector.extract_strided_slice %11 {offsets = [0, 0], sizes = [4, 32], strides = [1, 1]} : vector<4x96xf32> to vector<4x32xf32>
    %13 = vector.extract_strided_slice %11 {offsets = [0, 32], sizes = [4, 32], strides = [1, 1]} : vector<4x96xf32> to vector<4x32xf32>
    %14 = vector.extract_strided_slice %11 {offsets = [0, 64], sizes = [4, 32], strides = [1, 1]} : vector<4x96xf32> to vector<4x32xf32>
    %cst_15 = arith.constant 0.000000e+00 : f32
    %15 = vector.broadcast %cst_15 : f32 to vector<4x32xf32>
    %16 = vector.extract_strided_slice %12 {offsets = [0, 0], sizes = [4, 8], strides = [1, 1]} : vector<4x32xf32> to vector<4x8xf32>
    %17 = vector.extract_strided_slice %13 {offsets = [0, 0], sizes = [4, 8], strides = [1, 1]} : vector<4x32xf32> to vector<4x8xf32>
    %18 = vector.extract_strided_slice %14 {offsets = [0, 0], sizes = [4, 8], strides = [1, 1]} : vector<4x32xf32> to vector<4x8xf32>
    %19 = tpu.transpose %17, [1, 0] : vector<4x8xf32> -> vector<8x4xf32>
    %cst_16 = arith.constant dense<0.000000e+00> : vector<4x4xf32>
    %20 = tpu.matmul %16, %19, %cst_16 {dimension_numbers = #tpu.dot_dimension_numbers<[1], [0], [0], [1], [0, 0, 1, 1], [], []>} : vector<4x8xf32>, vector<8x4xf32>, vector<4x4xf32> -> vector<4x4xf32>
    %cst_17 = arith.constant dense<0xFF800000> : vector<4xf32>
    %21 = vector.multi_reduction <maximumf>, %20, %cst_17 [1] : vector<4x4xf32> to vector<4xf32>
    %22 = vector.shape_cast %21 : vector<4xf32> to vector<4x1xf32>
    %23 = vector.broadcast %22 : vector<4x1xf32> to vector<4x4xf32>
    %24 = arith.subf %20, %23 : vector<4x4xf32>
    %25 = math.exp %24 : vector<4x4xf32>
    %cst_18 = arith.constant dense<0.000000e+00> : vector<4xf32>
    %26 = vector.multi_reduction <add>, %25, %cst_18 [1] : vector<4x4xf32> to vector<4xf32>
    %27 = vector.shape_cast %26 : vector<4xf32> to vector<4x1xf32>
    %28 = tpu.reciprocal %27 {approx = true} : vector<4x1xf32> -> vector<4x1xf32>
    %29 = vector.broadcast %28 : vector<4x1xf32> to vector<4x4xf32>
    %30 = arith.mulf %25, %29 : vector<4x4xf32>
    %cst_19 = arith.constant dense<0.000000e+00> : vector<4x8xf32>
    %31 = tpu.matmul %30, %18, %cst_19 {dimension_numbers = #tpu.dot_dimension_numbers<[1], [0], [0], [1], [0, 0, 1, 1], [], []>} : vector<4x4xf32>, vector<4x8xf32>, vector<4x8xf32> -> vector<4x8xf32>
    %32 = vector.extract_strided_slice %6 {offsets = [0, 0], sizes = [8, 32], strides = [1, 1]} : vector<32x32xf32> to vector<8x32xf32>
    %cst_20 = arith.constant dense<0.000000e+00> : vector<4x32xf32>
    %33 = tpu.matmul %31, %32, %cst_20 {dimension_numbers = #tpu.dot_dimension_numbers<[1], [0], [0], [1], [0, 0, 1, 1], [], []>} : vector<4x8xf32>, vector<8x32xf32>, vector<4x32xf32> -> vector<4x32xf32>
    %34 = arith.addf %15, %33 : vector<4x32xf32>
    %35 = vector.extract_strided_slice %12 {offsets = [0, 8], sizes = [4, 8], strides = [1, 1]} : vector<4x32xf32> to vector<4x8xf32>
    %36 = vector.extract_strided_slice %13 {offsets = [0, 8], sizes = [4, 8], strides = [1, 1]} : vector<4x32xf32> to vector<4x8xf32>
    %37 = vector.extract_strided_slice %14 {offsets = [0, 8], sizes = [4, 8], strides = [1, 1]} : vector<4x32xf32> to vector<4x8xf32>
    %38 = tpu.transpose %36, [1, 0] : vector<4x8xf32> -> vector<8x4xf32>
    %cst_21 = arith.constant dense<0.000000e+00> : vector<4x4xf32>
    %39 = tpu.matmul %35, %38, %cst_21 {dimension_numbers = #tpu.dot_dimension_numbers<[1], [0], [0], [1], [0, 0, 1, 1], [], []>} : vector<4x8xf32>, vector<8x4xf32>, vector<4x4xf32> -> vector<4x4xf32>
    %cst_22 = arith.constant dense<0xFF800000> : vector<4xf32>
    %40 = vector.multi_reduction <maximumf>, %39, %cst_22 [1] : vector<4x4xf32> to vector<4xf32>
    %41 = vector.shape_cast %40 : vector<4xf32> to vector<4x1xf32>
    %42 = vector.broadcast %41 : vector<4x1xf32> to vector<4x4xf32>
    %43 = arith.subf %39, %42 : vector<4x4xf32>
    %44 = math.exp %43 : vector<4x4xf32>
    %cst_23 = arith.constant dense<0.000000e+00> : vector<4xf32>
    %45 = vector.multi_reduction <add>, %44, %cst_23 [1] : vector<4x4xf32> to vector<4xf32>
    %46 = vector.shape_cast %45 : vector<4xf32> to vector<4x1xf32>
    %47 = tpu.reciprocal %46 {approx = true} : vector<4x1xf32> -> vector<4x1xf32>
    %48 = vector.broadcast %47 : vector<4x1xf32> to vector<4x4xf32>
    %49 = arith.mulf %44, %48 : vector<4x4xf32>
    %cst_24 = arith.constant dense<0.000000e+00> : vector<4x8xf32>
    %50 = tpu.matmul %49, %37, %cst_24 {dimension_numbers = #tpu.dot_dimension_numbers<[1], [0], [0], [1], [0, 0, 1, 1], [], []>} : vector<4x4xf32>, vector<4x8xf32>, vector<4x8xf32> -> vector<4x8xf32>
    %51 = vector.extract_strided_slice %6 {offsets = [8, 0], sizes = [8, 32], strides = [1, 1]} : vector<32x32xf32> to vector<8x32xf32>
    %cst_25 = arith.constant dense<0.000000e+00> : vector<4x32xf32>
    %52 = tpu.matmul %50, %51, %cst_25 {dimension_numbers = #tpu.dot_dimension_numbers<[1], [0], [0], [1], [0, 0, 1, 1], [], []>} : vector<4x8xf32>, vector<8x32xf32>, vector<4x32xf32> -> vector<4x32xf32>
    %53 = arith.addf %34, %52 : vector<4x32xf32>
    %54 = vector.extract_strided_slice %12 {offsets = [0, 16], sizes = [4, 8], strides = [1, 1]} : vector<4x32xf32> to vector<4x8xf32>
    %55 = vector.extract_strided_slice %13 {offsets = [0, 16], sizes = [4, 8], strides = [1, 1]} : vector<4x32xf32> to vector<4x8xf32>
    %56 = vector.extract_strided_slice %14 {offsets = [0, 16], sizes = [4, 8], strides = [1, 1]} : vector<4x32xf32> to vector<4x8xf32>
    %57 = tpu.transpose %55, [1, 0] : vector<4x8xf32> -> vector<8x4xf32>
    %cst_26 = arith.constant dense<0.000000e+00> : vector<4x4xf32>
    %58 = tpu.matmul %54, %57, %cst_26 {dimension_numbers = #tpu.dot_dimension_numbers<[1], [0], [0], [1], [0, 0, 1, 1], [], []>} : vector<4x8xf32>, vector<8x4xf32>, vector<4x4xf32> -> vector<4x4xf32>
    %cst_27 = arith.constant dense<0xFF800000> : vector<4xf32>
    %59 = vector.multi_reduction <maximumf>, %58, %cst_27 [1] : vector<4x4xf32> to vector<4xf32>
    %60 = vector.shape_cast %59 : vector<4xf32> to vector<4x1xf32>
    %61 = vector.broadcast %60 : vector<4x1xf32> to vector<4x4xf32>
    %62 = arith.subf %58, %61 : vector<4x4xf32>
    %63 = math.exp %62 : vector<4x4xf32>
    %cst_28 = arith.constant dense<0.000000e+00> : vector<4xf32>
    %64 = vector.multi_reduction <add>, %63, %cst_28 [1] : vector<4x4xf32> to vector<4xf32>
    %65 = vector.shape_cast %64 : vector<4xf32> to vector<4x1xf32>
    %66 = tpu.reciprocal %65 {approx = true} : vector<4x1xf32> -> vector<4x1xf32>
    %67 = vector.broadcast %66 : vector<4x1xf32> to vector<4x4xf32>
    %68 = arith.mulf %63, %67 : vector<4x4xf32>
    %cst_29 = arith.constant dense<0.000000e+00> : vector<4x8xf32>
    %69 = tpu.matmul %68, %56, %cst_29 {dimension_numbers = #tpu.dot_dimension_numbers<[1], [0], [0], [1], [0, 0, 1, 1], [], []>} : vector<4x4xf32>, vector<4x8xf32>, vector<4x8xf32> -> vector<4x8xf32>
    %70 = vector.extract_strided_slice %6 {offsets = [16, 0], sizes = [8, 32], strides = [1, 1]} : vector<32x32xf32> to vector<8x32xf32>
    %cst_30 = arith.constant dense<0.000000e+00> : vector<4x32xf32>
    %71 = tpu.matmul %69, %70, %cst_30 {dimension_numbers = #tpu.dot_dimension_numbers<[1], [0], [0], [1], [0, 0, 1, 1], [], []>} : vector<4x8xf32>, vector<8x32xf32>, vector<4x32xf32> -> vector<4x32xf32>
    %72 = arith.addf %53, %71 : vector<4x32xf32>
    %73 = vector.extract_strided_slice %12 {offsets = [0, 24], sizes = [4, 8], strides = [1, 1]} : vector<4x32xf32> to vector<4x8xf32>
    %74 = vector.extract_strided_slice %13 {offsets = [0, 24], sizes = [4, 8], strides = [1, 1]} : vector<4x32xf32> to vector<4x8xf32>
    %75 = vector.extract_strided_slice %14 {offsets = [0, 24], sizes = [4, 8], strides = [1, 1]} : vector<4x32xf32> to vector<4x8xf32>
    %76 = tpu.transpose %74, [1, 0] : vector<4x8xf32> -> vector<8x4xf32>
    %cst_31 = arith.constant dense<0.000000e+00> : vector<4x4xf32>
    %77 = tpu.matmul %73, %76, %cst_31 {dimension_numbers = #tpu.dot_dimension_numbers<[1], [0], [0], [1], [0, 0, 1, 1], [], []>} : vector<4x8xf32>, vector<8x4xf32>, vector<4x4xf32> -> vector<4x4xf32>
    %cst_32 = arith.constant dense<0xFF800000> : vector<4xf32>
    %78 = vector.multi_reduction <maximumf>, %77, %cst_32 [1] : vector<4x4xf32> to vector<4xf32>
    %79 = vector.shape_cast %78 : vector<4xf32> to vector<4x1xf32>
    %80 = vector.broadcast %79 : vector<4x1xf32> to vector<4x4xf32>
    %81 = arith.subf %77, %80 : vector<4x4xf32>
    %82 = math.exp %81 : vector<4x4xf32>
    %cst_33 = arith.constant dense<0.000000e+00> : vector<4xf32>
    %83 = vector.multi_reduction <add>, %82, %cst_33 [1] : vector<4x4xf32> to vector<4xf32>
    %84 = vector.shape_cast %83 : vector<4xf32> to vector<4x1xf32>
    %85 = tpu.reciprocal %84 {approx = true} : vector<4x1xf32> -> vector<4x1xf32>
    %86 = vector.broadcast %85 : vector<4x1xf32> to vector<4x4xf32>
    %87 = arith.mulf %82, %86 : vector<4x4xf32>
    %cst_34 = arith.constant dense<0.000000e+00> : vector<4x8xf32>
    %88 = tpu.matmul %87, %75, %cst_34 {dimension_numbers = #tpu.dot_dimension_numbers<[1], [0], [0], [1], [0, 0, 1, 1], [], []>} : vector<4x4xf32>, vector<4x8xf32>, vector<4x8xf32> -> vector<4x8xf32>
    %89 = vector.extract_strided_slice %6 {offsets = [24, 0], sizes = [8, 32], strides = [1, 1]} : vector<32x32xf32> to vector<8x32xf32>
    %cst_35 = arith.constant dense<0.000000e+00> : vector<4x32xf32>
    %90 = tpu.matmul %88, %89, %cst_35 {dimension_numbers = #tpu.dot_dimension_numbers<[1], [0], [0], [1], [0, 0, 1, 1], [], []>} : vector<4x8xf32>, vector<8x32xf32>, vector<4x32xf32> -> vector<4x32xf32>
    %91 = arith.addf %72, %90 : vector<4x32xf32>
    %92 = vector.broadcast %7 : vector<1x32xf32> to vector<4x32xf32>
    %93 = arith.addf %91, %92 : vector<4x32xf32>
    %cst_36 = arith.constant dense<0.000000e+00> : vector<4x16xf32>
    %94 = tpu.matmul %93, %8, %cst_36 {dimension_numbers = #tpu.dot_dimension_numbers<[1], [0], [0], [1], [0, 0, 1, 1], [], []>} : vector<4x32xf32>, vector<32x16xf32>, vector<4x16xf32> -> vector<4x16xf32>
    %95 = vector.broadcast %9 : vector<1x16xf32> to vector<4x16xf32>
    %96 = arith.addf %94, %95 : vector<4x16xf32>
    %97 = math.tanh %96 : vector<4x16xf32>
    %cst_37 = arith.constant dense<0.000000e+00> : vector<4x1xf32>
    %98 = tpu.matmul %97, %10, %cst_37 {dimension_numbers = #tpu.dot_dimension_numbers<[1], [0], [0], [1], [0, 0, 1, 1], [], []>} : vector<4x16xf32>, vector<16x1xf32>, vector<4x1xf32> -> vector<4x1xf32>
    %cst_38 = arith.constant 1.000000e+00 : f32
    %99 = vector.broadcast %cst_38 : f32 to vector<4x1xf32>
    %100 = vector.extract_strided_slice %5 {offsets = [4, 0], sizes = [4, 96], strides = [1, 1]} : vector<32x96xf32> to vector<4x96xf32>
    %101 = vector.extract_strided_slice %100 {offsets = [0, 0], sizes = [4, 32], strides = [1, 1]} : vector<4x96xf32> to vector<4x32xf32>
    %102 = vector.extract_strided_slice %100 {offsets = [0, 32], sizes = [4, 32], strides = [1, 1]} : vector<4x96xf32> to vector<4x32xf32>
    %103 = vector.extract_strided_slice %100 {offsets = [0, 64], sizes = [4, 32], strides = [1, 1]} : vector<4x96xf32> to vector<4x32xf32>
    %cst_39 = arith.constant 0.000000e+00 : f32
    %104 = vector.broadcast %cst_39 : f32 to vector<4x32xf32>
    %105 = vector.extract_strided_slice %101 {offsets = [0, 0], sizes = [4, 8], strides = [1, 1]} : vector<4x32xf32> to vector<4x8xf32>
    %106 = vector.extract_strided_slice %102 {offsets = [0, 0], sizes = [4, 8], strides = [1, 1]} : vector<4x32xf32> to vector<4x8xf32>
    %107 = vector.extract_strided_slice %103 {offsets = [0, 0], sizes = [4, 8], strides = [1, 1]} : vector<4x32xf32> to vector<4x8xf32>
    %108 = tpu.transpose %106, [1, 0] : vector<4x8xf32> -> vector<8x4xf32>
    %cst_40 = arith.constant dense<0.000000e+00> : vector<4x4xf32>
    %109 = tpu.matmul %105, %108, %cst_40 {dimension_numbers = #tpu.dot_dimension_numbers<[1], [0], [0], [1], [0, 0, 1, 1], [], []>} : vector<4x8xf32>, vector<8x4xf32>, vector<4x4xf32> -> vector<4x4xf32>
    %cst_41 = arith.constant dense<0xFF800000> : vector<4xf32>
    %110 = vector.multi_reduction <maximumf>, %109, %cst_41 [1] : vector<4x4xf32> to vector<4xf32>
    %111 = vector.shape_cast %110 : vector<4xf32> to vector<4x1xf32>
    %112 = vector.broadcast %111 : vector<4x1xf32> to vector<4x4xf32>
    %113 = arith.subf %109, %112 : vector<4x4xf32>
    %114 = math.exp %113 : vector<4x4xf32>
    %cst_42 = arith.constant dense<0.000000e+00> : vector<4xf32>
    %115 = vector.multi_reduction <add>, %114, %cst_42 [1] : vector<4x4xf32> to vector<4xf32>
    %116 = vector.shape_cast %115 : vector<4xf32> to vector<4x1xf32>
    %117 = tpu.reciprocal %116 {approx = true} : vector<4x1xf32> -> vector<4x1xf32>
    %118 = vector.broadcast %117 : vector<4x1xf32> to vector<4x4xf32>
    %119 = arith.mulf %114, %118 : vector<4x4xf32>
    %cst_43 = arith.constant dense<0.000000e+00> : vector<4x8xf32>
    %120 = tpu.matmul %119, %107, %cst_43 {dimension_numbers = #tpu.dot_dimension_numbers<[1], [0], [0], [1], [0, 0, 1, 1], [], []>} : vector<4x4xf32>, vector<4x8xf32>, vector<4x8xf32> -> vector<4x8xf32>
    %121 = vector.extract_strided_slice %6 {offsets = [0, 0], sizes = [8, 32], strides = [1, 1]} : vector<32x32xf32> to vector<8x32xf32>
    %cst_44 = arith.constant dense<0.000000e+00> : vector<4x32xf32>
    %122 = tpu.matmul %120, %121, %cst_44 {dimension_numbers = #tpu.dot_dimension_numbers<[1], [0], [0], [1], [0, 0, 1, 1], [], []>} : vector<4x8xf32>, vector<8x32xf32>, vector<4x32xf32> -> vector<4x32xf32>
    %123 = arith.addf %104, %122 : vector<4x32xf32>
    %124 = vector.extract_strided_slice %101 {offsets = [0, 8], sizes = [4, 8], strides = [1, 1]} : vector<4x32xf32> to vector<4x8xf32>
    %125 = vector.extract_strided_slice %102 {offsets = [0, 8], sizes = [4, 8], strides = [1, 1]} : vector<4x32xf32> to vector<4x8xf32>
    %126 = vector.extract_strided_slice %103 {offsets = [0, 8], sizes = [4, 8], strides = [1, 1]} : vector<4x32xf32> to vector<4x8xf32>
    %127 = tpu.transpose %125, [1, 0] : vector<4x8xf32> -> vector<8x4xf32>
    %cst_45 = arith.constant dense<0.000000e+00> : vector<4x4xf32>
    %128 = tpu.matmul %124, %127, %cst_45 {dimension_numbers = #tpu.dot_dimension_numbers<[1], [0], [0], [1], [0, 0, 1, 1], [], []>} : vector<4x8xf32>, vector<8x4xf32>, vector<4x4xf32> -> vector<4x4xf32>
    %cst_46 = arith.constant dense<0xFF800000> : vector<4xf32>
    %129 = vector.multi_reduction <maximumf>, %128, %cst_46 [1] : vector<4x4xf32> to vector<4xf32>
    %130 = vector.shape_cast %129 : vector<4xf32> to vector<4x1xf32>
    %131 = vector.broadcast %130 : vector<4x1xf32> to vector<4x4xf32>
    %132 = arith.subf %128, %131 : vector<4x4xf32>
    %133 = math.exp %132 : vector<4x4xf32>
    %cst_47 = arith.constant dense<0.000000e+00> : vector<4xf32>
    %134 = vector.multi_reduction <add>, %133, %cst_47 [1] : vector<4x4xf32> to vector<4xf32>
    %135 = vector.shape_cast %134 : vector<4xf32> to vector<4x1xf32>
    %136 = tpu.reciprocal %135 {approx = true} : vector<4x1xf32> -> vector<4x1xf32>
    %137 = vector.broadcast %136 : vector<4x1xf32> to vector<4x4xf32>
    %138 = arith.mulf %133, %137 : vector<4x4xf32>
    %cst_48 = arith.constant dense<0.000000e+00> : vector<4x8xf32>
    %139 = tpu.matmul %138, %126, %cst_48 {dimension_numbers = #tpu.dot_dimension_numbers<[1], [0], [0], [1], [0, 0, 1, 1], [], []>} : vector<4x4xf32>, vector<4x8xf32>, vector<4x8xf32> -> vector<4x8xf32>
    %140 = vector.extract_strided_slice %6 {offsets = [8, 0], sizes = [8, 32], strides = [1, 1]} : vector<32x32xf32> to vector<8x32xf32>
    %cst_49 = arith.constant dense<0.000000e+00> : vector<4x32xf32>
    %141 = tpu.matmul %139, %140, %cst_49 {dimension_numbers = #tpu.dot_dimension_numbers<[1], [0], [0], [1], [0, 0, 1, 1], [], []>} : vector<4x8xf32>, vector<8x32xf32>, vector<4x32xf32> -> vector<4x32xf32>
    %142 = arith.addf %123, %141 : vector<4x32xf32>
    %143 = vector.extract_strided_slice %101 {offsets = [0, 16], sizes = [4, 8], strides = [1, 1]} : vector<4x32xf32> to vector<4x8xf32>
    %144 = vector.extract_strided_slice %102 {offsets = [0, 16], sizes = [4, 8], strides = [1, 1]} : vector<4x32xf32> to vector<4x8xf32>
    %145 = vector.extract_strided_slice %103 {offsets = [0, 16], sizes = [4, 8], strides = [1, 1]} : vector<4x32xf32> to vector<4x8xf32>
    %146 = tpu.transpose %144, [1, 0] : vector<4x8xf32> -> vector<8x4xf32>
    %cst_50 = arith.constant dense<0.000000e+00> : vector<4x4xf32>
    %147 = tpu.matmul %143, %146, %cst_50 {dimension_numbers = #tpu.dot_dimension_numbers<[1], [0], [0], [1], [0, 0, 1, 1], [], []>} : vector<4x8xf32>, vector<8x4xf32>, vector<4x4xf32> -> vector<4x4xf32>
    %cst_51 = arith.constant dense<0xFF800000> : vector<4xf32>
    %148 = vector.multi_reduction <maximumf>, %147, %cst_51 [1] : vector<4x4xf32> to vector<4xf32>
    %149 = vector.shape_cast %148 : vector<4xf32> to vector<4x1xf32>
    %150 = vector.broadcast %149 : vector<4x1xf32> to vector<4x4xf32>
    %151 = arith.subf %147, %150 : vector<4x4xf32>
    %152 = math.exp %151 : vector<4x4xf32>
    %cst_52 = arith.constant dense<0.000000e+00> : vector<4xf32>
    %153 = vector.multi_reduction <add>, %152, %cst_52 [1] : vector<4x4xf32> to vector<4xf32>
    %154 = vector.shape_cast %153 : vector<4xf32> to vector<4x1xf32>
    %155 = tpu.reciprocal %154 {approx = true} : vector<4x1xf32> -> vector<4x1xf32>
    %156 = vector.broadcast %155 : vector<4x1xf32> to vector<4x4xf32>
    %157 = arith.mulf %152, %156 : vector<4x4xf32>
    %cst_53 = arith.constant dense<0.000000e+00> : vector<4x8xf32>
    %158 = tpu.matmul %157, %145, %cst_53 {dimension_numbers = #tpu.dot_dimension_numbers<[1], [0], [0], [1], [0, 0, 1, 1], [], []>} : vector<4x4xf32>, vector<4x8xf32>, vector<4x8xf32> -> vector<4x8xf32>
    %159 = vector.extract_strided_slice %6 {offsets = [16, 0], sizes = [8, 32], strides = [1, 1]} : vector<32x32xf32> to vector<8x32xf32>
    %cst_54 = arith.constant dense<0.000000e+00> : vector<4x32xf32>
    %160 = tpu.matmul %158, %159, %cst_54 {dimension_numbers = #tpu.dot_dimension_numbers<[1], [0], [0], [1], [0, 0, 1, 1], [], []>} : vector<4x8xf32>, vector<8x32xf32>, vector<4x32xf32> -> vector<4x32xf32>
    %161 = arith.addf %142, %160 : vector<4x32xf32>
    %162 = vector.extract_strided_slice %101 {offsets = [0, 24], sizes = [4, 8], strides = [1, 1]} : vector<4x32xf32> to vector<4x8xf32>
    %163 = vector.extract_strided_slice %102 {offsets = [0, 24], sizes = [4, 8], strides = [1, 1]} : vector<4x32xf32> to vector<4x8xf32>
    %164 = vector.extract_strided_slice %103 {offsets = [0, 24], sizes = [4, 8], strides = [1, 1]} : vector<4x32xf32> to vector<4x8xf32>
    %165 = tpu.transpose %163, [1, 0] : vector<4x8xf32> -> vector<8x4xf32>
    %cst_55 = arith.constant dense<0.000000e+00> : vector<4x4xf32>
    %166 = tpu.matmul %162, %165, %cst_55 {dimension_numbers = #tpu.dot_dimension_numbers<[1], [0], [0], [1], [0, 0, 1, 1], [], []>} : vector<4x8xf32>, vector<8x4xf32>, vector<4x4xf32> -> vector<4x4xf32>
    %cst_56 = arith.constant dense<0xFF800000> : vector<4xf32>
    %167 = vector.multi_reduction <maximumf>, %166, %cst_56 [1] : vector<4x4xf32> to vector<4xf32>
    %168 = vector.shape_cast %167 : vector<4xf32> to vector<4x1xf32>
    %169 = vector.broadcast %168 : vector<4x1xf32> to vector<4x4xf32>
    %170 = arith.subf %166, %169 : vector<4x4xf32>
    %171 = math.exp %170 : vector<4x4xf32>
    %cst_57 = arith.constant dense<0.000000e+00> : vector<4xf32>
    %172 = vector.multi_reduction <add>, %171, %cst_57 [1] : vector<4x4xf32> to vector<4xf32>
    %173 = vector.shape_cast %172 : vector<4xf32> to vector<4x1xf32>
    %174 = tpu.reciprocal %173 {approx = true} : vector<4x1xf32> -> vector<4x1xf32>
    %175 = vector.broadcast %174 : vector<4x1xf32> to vector<4x4xf32>
    %176 = arith.mulf %171, %175 : vector<4x4xf32>
    %cst_58 = arith.constant dense<0.000000e+00> : vector<4x8xf32>
    %177 = tpu.matmul %176, %164, %cst_58 {dimension_numbers = #tpu.dot_dimension_numbers<[1], [0], [0], [1], [0, 0, 1, 1], [], []>} : vector<4x4xf32>, vector<4x8xf32>, vector<4x8xf32> -> vector<4x8xf32>
    %178 = vector.extract_strided_slice %6 {offsets = [24, 0], sizes = [8, 32], strides = [1, 1]} : vector<32x32xf32> to vector<8x32xf32>
    %cst_59 = arith.constant dense<0.000000e+00> : vector<4x32xf32>
    %179 = tpu.matmul %177, %178, %cst_59 {dimension_numbers = #tpu.dot_dimension_numbers<[1], [0], [0], [1], [0, 0, 1, 1], [], []>} : vector<4x8xf32>, vector<8x32xf32>, vector<4x32xf32> -> vector<4x32xf32>
    %180 = arith.addf %161, %179 : vector<4x32xf32>
    %181 = vector.broadcast %7 : vector<1x32xf32> to vector<4x32xf32>
    %182 = arith.addf %180, %181 : vector<4x32xf32>
    %cst_60 = arith.constant dense<0.000000e+00> : vector<4x16xf32>
    %183 = tpu.matmul %182, %8, %cst_60 {dimension_numbers = #tpu.dot_dimension_numbers<[1], [0], [0], [1], [0, 0, 1, 1], [], []>} : vector<4x32xf32>, vector<32x16xf32>, vector<4x16xf32> -> vector<4x16xf32>
    %184 = vector.broadcast %9 : vector<1x16xf32> to vector<4x16xf32>
    %185 = arith.addf %183, %184 : vector<4x16xf32>
    %186 = math.tanh %185 : vector<4x16xf32>
    %cst_61 = arith.constant dense<0.000000e+00> : vector<4x1xf32>
    %187 = tpu.matmul %186, %10, %cst_61 {dimension_numbers = #tpu.dot_dimension_numbers<[1], [0], [0], [1], [0, 0, 1, 1], [], []>} : vector<4x16xf32>, vector<16x1xf32>, vector<4x1xf32> -> vector<4x1xf32>
    %188 = arith.maximumf %98, %187 : vector<4x1xf32>
    %189 = arith.subf %98, %188 : vector<4x1xf32>
    %190 = math.exp %189 : vector<4x1xf32>
    %191 = arith.subf %187, %188 : vector<4x1xf32>
    %192 = math.exp %191 : vector<4x1xf32>
    %193 = arith.mulf %190, %99 : vector<4x1xf32>
    %194 = arith.addf %193, %192 : vector<4x1xf32>
    %195 = vector.broadcast %190 : vector<4x1xf32> to vector<4x32xf32>
    %196 = arith.mulf %195, %93 : vector<4x32xf32>
    %197 = vector.broadcast %192 : vector<4x1xf32> to vector<4x32xf32>
    %198 = arith.mulf %197, %182 : vector<4x32xf32>
    %199 = arith.addf %196, %198 : vector<4x32xf32>
    %200 = vector.extract_strided_slice %5 {offsets = [8, 0], sizes = [4, 96], strides = [1, 1]} : vector<32x96xf32> to vector<4x96xf32>
    %201 = vector.extract_strided_slice %200 {offsets = [0, 0], sizes = [4, 32], strides = [1, 1]} : vector<4x96xf32> to vector<4x32xf32>
    %202 = vector.extract_strided_slice %200 {offsets = [0, 32], sizes = [4, 32], strides = [1, 1]} : vector<4x96xf32> to vector<4x32xf32>
    %203 = vector.extract_strided_slice %200 {offsets = [0, 64], sizes = [4, 32], strides = [1, 1]} : vector<4x96xf32> to vector<4x32xf32>
    %cst_62 = arith.constant 0.000000e+00 : f32
    %204 = vector.broadcast %cst_62 : f32 to vector<4x32xf32>
    %205 = vector.extract_strided_slice %201 {offsets = [0, 0], sizes = [4, 8], strides = [1, 1]} : vector<4x32xf32> to vector<4x8xf32>
    %206 = vector.extract_strided_slice %202 {offsets = [0, 0], sizes = [4, 8], strides = [1, 1]} : vector<4x32xf32> to vector<4x8xf32>
    %207 = vector.extract_strided_slice %203 {offsets = [0, 0], sizes = [4, 8], strides = [1, 1]} : vector<4x32xf32> to vector<4x8xf32>
    %208 = tpu.transpose %206, [1, 0] : vector<4x8xf32> -> vector<8x4xf32>
    %cst_63 = arith.constant dense<0.000000e+00> : vector<4x4xf32>
    %209 = tpu.matmul %205, %208, %cst_63 {dimension_numbers = #tpu.dot_dimension_numbers<[1], [0], [0], [1], [0, 0, 1, 1], [], []>} : vector<4x8xf32>, vector<8x4xf32>, vector<4x4xf32> -> vector<4x4xf32>
    %cst_64 = arith.constant dense<0xFF800000> : vector<4xf32>
    %210 = vector.multi_reduction <maximumf>, %209, %cst_64 [1] : vector<4x4xf32> to vector<4xf32>
    %211 = vector.shape_cast %210 : vector<4xf32> to vector<4x1xf32>
    %212 = vector.broadcast %211 : vector<4x1xf32> to vector<4x4xf32>
    %213 = arith.subf %209, %212 : vector<4x4xf32>
    %214 = math.exp %213 : vector<4x4xf32>
    %cst_65 = arith.constant dense<0.000000e+00> : vector<4xf32>
    %215 = vector.multi_reduction <add>, %214, %cst_65 [1] : vector<4x4xf32> to vector<4xf32>
    %216 = vector.shape_cast %215 : vector<4xf32> to vector<4x1xf32>
    %217 = tpu.reciprocal %216 {approx = true} : vector<4x1xf32> -> vector<4x1xf32>
    %218 = vector.broadcast %217 : vector<4x1xf32> to vector<4x4xf32>
    %219 = arith.mulf %214, %218 : vector<4x4xf32>
    %cst_66 = arith.constant dense<0.000000e+00> : vector<4x8xf32>
    %220 = tpu.matmul %219, %207, %cst_66 {dimension_numbers = #tpu.dot_dimension_numbers<[1], [0], [0], [1], [0, 0, 1, 1], [], []>} : vector<4x4xf32>, vector<4x8xf32>, vector<4x8xf32> -> vector<4x8xf32>
    %221 = vector.extract_strided_slice %6 {offsets = [0, 0], sizes = [8, 32], strides = [1, 1]} : vector<32x32xf32> to vector<8x32xf32>
    %cst_67 = arith.constant dense<0.000000e+00> : vector<4x32xf32>
    %222 = tpu.matmul %220, %221, %cst_67 {dimension_numbers = #tpu.dot_dimension_numbers<[1], [0], [0], [1], [0, 0, 1, 1], [], []>} : vector<4x8xf32>, vector<8x32xf32>, vector<4x32xf32> -> vector<4x32xf32>
    %223 = arith.addf %204, %222 : vector<4x32xf32>
    %224 = vector.extract_strided_slice %201 {offsets = [0, 8], sizes = [4, 8], strides = [1, 1]} : vector<4x32xf32> to vector<4x8xf32>
    %225 = vector.extract_strided_slice %202 {offsets = [0, 8], sizes = [4, 8], strides = [1, 1]} : vector<4x32xf32> to vector<4x8xf32>
    %226 = vector.extract_strided_slice %203 {offsets = [0, 8], sizes = [4, 8], strides = [1, 1]} : vector<4x32xf32> to vector<4x8xf32>
    %227 = tpu.transpose %225, [1, 0] : vector<4x8xf32> -> vector<8x4xf32>
    %cst_68 = arith.constant dense<0.000000e+00> : vector<4x4xf32>
    %228 = tpu.matmul %224, %227, %cst_68 {dimension_numbers = #tpu.dot_dimension_numbers<[1], [0], [0], [1], [0, 0, 1, 1], [], []>} : vector<4x8xf32>, vector<8x4xf32>, vector<4x4xf32> -> vector<4x4xf32>
    %cst_69 = arith.constant dense<0xFF800000> : vector<4xf32>
    %229 = vector.multi_reduction <maximumf>, %228, %cst_69 [1] : vector<4x4xf32> to vector<4xf32>
    %230 = vector.shape_cast %229 : vector<4xf32> to vector<4x1xf32>
    %231 = vector.broadcast %230 : vector<4x1xf32> to vector<4x4xf32>
    %232 = arith.subf %228, %231 : vector<4x4xf32>
    %233 = math.exp %232 : vector<4x4xf32>
    %cst_70 = arith.constant dense<0.000000e+00> : vector<4xf32>
    %234 = vector.multi_reduction <add>, %233, %cst_70 [1] : vector<4x4xf32> to vector<4xf32>
    %235 = vector.shape_cast %234 : vector<4xf32> to vector<4x1xf32>
    %236 = tpu.reciprocal %235 {approx = true} : vector<4x1xf32> -> vector<4x1xf32>
    %237 = vector.broadcast %236 : vector<4x1xf32> to vector<4x4xf32>
    %238 = arith.mulf %233, %237 : vector<4x4xf32>
    %cst_71 = arith.constant dense<0.000000e+00> : vector<4x8xf32>
    %239 = tpu.matmul %238, %226, %cst_71 {dimension_numbers = #tpu.dot_dimension_numbers<[1], [0], [0], [1], [0, 0, 1, 1], [], []>} : vector<4x4xf32>, vector<4x8xf32>, vector<4x8xf32> -> vector<4x8xf32>
    %240 = vector.extract_strided_slice %6 {offsets = [8, 0], sizes = [8, 32], strides = [1, 1]} : vector<32x32xf32> to vector<8x32xf32>
    %cst_72 = arith.constant dense<0.000000e+00> : vector<4x32xf32>
    %241 = tpu.matmul %239, %240, %cst_72 {dimension_numbers = #tpu.dot_dimension_numbers<[1], [0], [0], [1], [0, 0, 1, 1], [], []>} : vector<4x8xf32>, vector<8x32xf32>, vector<4x32xf32> -> vector<4x32xf32>
    %242 = arith.addf %223, %241 : vector<4x32xf32>
    %243 = vector.extract_strided_slice %201 {offsets = [0, 16], sizes = [4, 8], strides = [1, 1]} : vector<4x32xf32> to vector<4x8xf32>
    %244 = vector.extract_strided_slice %202 {offsets = [0, 16], sizes = [4, 8], strides = [1, 1]} : vector<4x32xf32> to vector<4x8xf32>
    %245 = vector.extract_strided_slice %203 {offsets = [0, 16], sizes = [4, 8], strides = [1, 1]} : vector<4x32xf32> to vector<4x8xf32>
    %246 = tpu.transpose %244, [1, 0] : vector<4x8xf32> -> vector<8x4xf32>
    %cst_73 = arith.constant dense<0.000000e+00> : vector<4x4xf32>
    %247 = tpu.matmul %243, %246, %cst_73 {dimension_numbers = #tpu.dot_dimension_numbers<[1], [0], [0], [1], [0, 0, 1, 1], [], []>} : vector<4x8xf32>, vector<8x4xf32>, vector<4x4xf32> -> vector<4x4xf32>
    %cst_74 = arith.constant dense<0xFF800000> : vector<4xf32>
    %248 = vector.multi_reduction <maximumf>, %247, %cst_74 [1] : vector<4x4xf32> to vector<4xf32>
    %249 = vector.shape_cast %248 : vector<4xf32> to vector<4x1xf32>
    %250 = vector.broadcast %249 : vector<4x1xf32> to vector<4x4xf32>
    %251 = arith.subf %247, %250 : vector<4x4xf32>
    %252 = math.exp %251 : vector<4x4xf32>
    %cst_75 = arith.constant dense<0.000000e+00> : vector<4xf32>
    %253 = vector.multi_reduction <add>, %252, %cst_75 [1] : vector<4x4xf32> to vector<4xf32>
    %254 = vector.shape_cast %253 : vector<4xf32> to vector<4x1xf32>
    %255 = tpu.reciprocal %254 {approx = true} : vector<4x1xf32> -> vector<4x1xf32>
    %256 = vector.broadcast %255 : vector<4x1xf32> to vector<4x4xf32>
    %257 = arith.mulf %252, %256 : vector<4x4xf32>
    %cst_76 = arith.constant dense<0.000000e+00> : vector<4x8xf32>
    %258 = tpu.matmul %257, %245, %cst_76 {dimension_numbers = #tpu.dot_dimension_numbers<[1], [0], [0], [1], [0, 0, 1, 1], [], []>} : vector<4x4xf32>, vector<4x8xf32>, vector<4x8xf32> -> vector<4x8xf32>
    %259 = vector.extract_strided_slice %6 {offsets = [16, 0], sizes = [8, 32], strides = [1, 1]} : vector<32x32xf32> to vector<8x32xf32>
    %cst_77 = arith.constant dense<0.000000e+00> : vector<4x32xf32>
    %260 = tpu.matmul %258, %259, %cst_77 {dimension_numbers = #tpu.dot_dimension_numbers<[1], [0], [0], [1], [0, 0, 1, 1], [], []>} : vector<4x8xf32>, vector<8x32xf32>, vector<4x32xf32> -> vector<4x32xf32>
    %261 = arith.addf %242, %260 : vector<4x32xf32>
    %262 = vector.extract_strided_slice %201 {offsets = [0, 24], sizes = [4, 8], strides = [1, 1]} : vector<4x32xf32> to vector<4x8xf32>
    %263 = vector.extract_strided_slice %202 {offsets = [0, 24], sizes = [4, 8], strides = [1, 1]} : vector<4x32xf32> to vector<4x8xf32>
    %264 = vector.extract_strided_slice %203 {offsets = [0, 24], sizes = [4, 8], strides = [1, 1]} : vector<4x32xf32> to vector<4x8xf32>
    %265 = tpu.transpose %263, [1, 0] : vector<4x8xf32> -> vector<8x4xf32>
    %cst_78 = arith.constant dense<0.000000e+00> : vector<4x4xf32>
    %266 = tpu.matmul %262, %265, %cst_78 {dimension_numbers = #tpu.dot_dimension_numbers<[1], [0], [0], [1], [0, 0, 1, 1], [], []>} : vector<4x8xf32>, vector<8x4xf32>, vector<4x4xf32> -> vector<4x4xf32>
    %cst_79 = arith.constant dense<0xFF800000> : vector<4xf32>
    %267 = vector.multi_reduction <maximumf>, %266, %cst_79 [1] : vector<4x4xf32> to vector<4xf32>
    %268 = vector.shape_cast %267 : vector<4xf32> to vector<4x1xf32>
    %269 = vector.broadcast %268 : vector<4x1xf32> to vector<4x4xf32>
    %270 = arith.subf %266, %269 : vector<4x4xf32>
    %271 = math.exp %270 : vector<4x4xf32>
    %cst_80 = arith.constant dense<0.000000e+00> : vector<4xf32>
    %272 = vector.multi_reduction <add>, %271, %cst_80 [1] : vector<4x4xf32> to vector<4xf32>
    %273 = vector.shape_cast %272 : vector<4xf32> to vector<4x1xf32>
    %274 = tpu.reciprocal %273 {approx = true} : vector<4x1xf32> -> vector<4x1xf32>
    %275 = vector.broadcast %274 : vector<4x1xf32> to vector<4x4xf32>
    %276 = arith.mulf %271, %275 : vector<4x4xf32>
    %cst_81 = arith.constant dense<0.000000e+00> : vector<4x8xf32>
    %277 = tpu.matmul %276, %264, %cst_81 {dimension_numbers = #tpu.dot_dimension_numbers<[1], [0], [0], [1], [0, 0, 1, 1], [], []>} : vector<4x4xf32>, vector<4x8xf32>, vector<4x8xf32> -> vector<4x8xf32>
    %278 = vector.extract_strided_slice %6 {offsets = [24, 0], sizes = [8, 32], strides = [1, 1]} : vector<32x32xf32> to vector<8x32xf32>
    %cst_82 = arith.constant dense<0.000000e+00> : vector<4x32xf32>
    %279 = tpu.matmul %277, %278, %cst_82 {dimension_numbers = #tpu.dot_dimension_numbers<[1], [0], [0], [1], [0, 0, 1, 1], [], []>} : vector<4x8xf32>, vector<8x32xf32>, vector<4x32xf32> -> vector<4x32xf32>
    %280 = arith.addf %261, %279 : vector<4x32xf32>
    %281 = vector.broadcast %7 : vector<1x32xf32> to vector<4x32xf32>
    %282 = arith.addf %280, %281 : vector<4x32xf32>
    %cst_83 = arith.constant dense<0.000000e+00> : vector<4x16xf32>
    %283 = tpu.matmul %282, %8, %cst_83 {dimension_numbers = #tpu.dot_dimension_numbers<[1], [0], [0], [1], [0, 0, 1, 1], [], []>} : vector<4x32xf32>, vector<32x16xf32>, vector<4x16xf32> -> vector<4x16xf32>
    %284 = vector.broadcast %9 : vector<1x16xf32> to vector<4x16xf32>
    %285 = arith.addf %283, %284 : vector<4x16xf32>
    %286 = math.tanh %285 : vector<4x16xf32>
    %cst_84 = arith.constant dense<0.000000e+00> : vector<4x1xf32>
    %287 = tpu.matmul %286, %10, %cst_84 {dimension_numbers = #tpu.dot_dimension_numbers<[1], [0], [0], [1], [0, 0, 1, 1], [], []>} : vector<4x16xf32>, vector<16x1xf32>, vector<4x1xf32> -> vector<4x1xf32>
    %288 = arith.maximumf %188, %287 : vector<4x1xf32>
    %289 = arith.subf %188, %288 : vector<4x1xf32>
    %290 = math.exp %289 : vector<4x1xf32>
    %291 = arith.subf %287, %288 : vector<4x1xf32>
    %292 = math.exp %291 : vector<4x1xf32>
    %293 = arith.mulf %290, %194 : vector<4x1xf32>
    %294 = arith.addf %293, %292 : vector<4x1xf32>
    %295 = vector.broadcast %290 : vector<4x1xf32> to vector<4x32xf32>
    %296 = arith.mulf %295, %199 : vector<4x32xf32>
    %297 = vector.broadcast %292 : vector<4x1xf32> to vector<4x32xf32>
    %298 = arith.mulf %297, %282 : vector<4x32xf32>
    %299 = arith.addf %296, %298 : vector<4x32xf32>
    %300 = vector.extract_strided_slice %5 {offsets = [12, 0], sizes = [4, 96], strides = [1, 1]} : vector<32x96xf32> to vector<4x96xf32>
    %301 = vector.extract_strided_slice %300 {offsets = [0, 0], sizes = [4, 32], strides = [1, 1]} : vector<4x96xf32> to vector<4x32xf32>
    %302 = vector.extract_strided_slice %300 {offsets = [0, 32], sizes = [4, 32], strides = [1, 1]} : vector<4x96xf32> to vector<4x32xf32>
    %303 = vector.extract_strided_slice %300 {offsets = [0, 64], sizes = [4, 32], strides = [1, 1]} : vector<4x96xf32> to vector<4x32xf32>
    %cst_85 = arith.constant 0.000000e+00 : f32
    %304 = vector.broadcast %cst_85 : f32 to vector<4x32xf32>
    %305 = vector.extract_strided_slice %301 {offsets = [0, 0], sizes = [4, 8], strides = [1, 1]} : vector<4x32xf32> to vector<4x8xf32>
    %306 = vector.extract_strided_slice %302 {offsets = [0, 0], sizes = [4, 8], strides = [1, 1]} : vector<4x32xf32> to vector<4x8xf32>
    %307 = vector.extract_strided_slice %303 {offsets = [0, 0], sizes = [4, 8], strides = [1, 1]} : vector<4x32xf32> to vector<4x8xf32>
    %308 = tpu.transpose %306, [1, 0] : vector<4x8xf32> -> vector<8x4xf32>
    %cst_86 = arith.constant dense<0.000000e+00> : vector<4x4xf32>
    %309 = tpu.matmul %305, %308, %cst_86 {dimension_numbers = #tpu.dot_dimension_numbers<[1], [0], [0], [1], [0, 0, 1, 1], [], []>} : vector<4x8xf32>, vector<8x4xf32>, vector<4x4xf32> -> vector<4x4xf32>
    %cst_87 = arith.constant dense<0xFF800000> : vector<4xf32>
    %310 = vector.multi_reduction <maximumf>, %309, %cst_87 [1] : vector<4x4xf32> to vector<4xf32>
    %311 = vector.shape_cast %310 : vector<4xf32> to vector<4x1xf32>
    %312 = vector.broadcast %311 : vector<4x1xf32> to vector<4x4xf32>
    %313 = arith.subf %309, %312 : vector<4x4xf32>
    %314 = math.exp %313 : vector<4x4xf32>
    %cst_88 = arith.constant dense<0.000000e+00> : vector<4xf32>
    %315 = vector.multi_reduction <add>, %314, %cst_88 [1] : vector<4x4xf32> to vector<4xf32>
    %316 = vector.shape_cast %315 : vector<4xf32> to vector<4x1xf32>
    %317 = tpu.reciprocal %316 {approx = true} : vector<4x1xf32> -> vector<4x1xf32>
    %318 = vector.broadcast %317 : vector<4x1xf32> to vector<4x4xf32>
    %319 = arith.mulf %314, %318 : vector<4x4xf32>
    %cst_89 = arith.constant dense<0.000000e+00> : vector<4x8xf32>
    %320 = tpu.matmul %319, %307, %cst_89 {dimension_numbers = #tpu.dot_dimension_numbers<[1], [0], [0], [1], [0, 0, 1, 1], [], []>} : vector<4x4xf32>, vector<4x8xf32>, vector<4x8xf32> -> vector<4x8xf32>
    %321 = vector.extract_strided_slice %6 {offsets = [0, 0], sizes = [8, 32], strides = [1, 1]} : vector<32x32xf32> to vector<8x32xf32>
    %cst_90 = arith.constant dense<0.000000e+00> : vector<4x32xf32>
    %322 = tpu.matmul %320, %321, %cst_90 {dimension_numbers = #tpu.dot_dimension_numbers<[1], [0], [0], [1], [0, 0, 1, 1], [], []>} : vector<4x8xf32>, vector<8x32xf32>, vector<4x32xf32> -> vector<4x32xf32>
    %323 = arith.addf %304, %322 : vector<4x32xf32>
    %324 = vector.extract_strided_slice %301 {offsets = [0, 8], sizes = [4, 8], strides = [1, 1]} : vector<4x32xf32> to vector<4x8xf32>
    %325 = vector.extract_strided_slice %302 {offsets = [0, 8], sizes = [4, 8], strides = [1, 1]} : vector<4x32xf32> to vector<4x8xf32>
    %326 = vector.extract_strided_slice %303 {offsets = [0, 8], sizes = [4, 8], strides = [1, 1]} : vector<4x32xf32> to vector<4x8xf32>
    %327 = tpu.transpose %325, [1, 0] : vector<4x8xf32> -> vector<8x4xf32>
    %cst_91 = arith.constant dense<0.000000e+00> : vector<4x4xf32>
    %328 = tpu.matmul %324, %327, %cst_91 {dimension_numbers = #tpu.dot_dimension_numbers<[1], [0], [0], [1], [0, 0, 1, 1], [], []>} : vector<4x8xf32>, vector<8x4xf32>, vector<4x4xf32> -> vector<4x4xf32>
    %cst_92 = arith.constant dense<0xFF800000> : vector<4xf32>
    %329 = vector.multi_reduction <maximumf>, %328, %cst_92 [1] : vector<4x4xf32> to vector<4xf32>
    %330 = vector.shape_cast %329 : vector<4xf32> to vector<4x1xf32>
    %331 = vector.broadcast %330 : vector<4x1xf32> to vector<4x4xf32>
    %332 = arith.subf %328, %331 : vector<4x4xf32>
    %333 = math.exp %332 : vector<4x4xf32>
    %cst_93 = arith.constant dense<0.000000e+00> : vector<4xf32>
    %334 = vector.multi_reduction <add>, %333, %cst_93 [1] : vector<4x4xf32> to vector<4xf32>
    %335 = vector.shape_cast %334 : vector<4xf32> to vector<4x1xf32>
    %336 = tpu.reciprocal %335 {approx = true} : vector<4x1xf32> -> vector<4x1xf32>
    %337 = vector.broadcast %336 : vector<4x1xf32> to vector<4x4xf32>
    %338 = arith.mulf %333, %337 : vector<4x4xf32>
    %cst_94 = arith.constant dense<0.000000e+00> : vector<4x8xf32>
    %339 = tpu.matmul %338, %326, %cst_94 {dimension_numbers = #tpu.dot_dimension_numbers<[1], [0], [0], [1], [0, 0, 1, 1], [], []>} : vector<4x4xf32>, vector<4x8xf32>, vector<4x8xf32> -> vector<4x8xf32>
    %340 = vector.extract_strided_slice %6 {offsets = [8, 0], sizes = [8, 32], strides = [1, 1]} : vector<32x32xf32> to vector<8x32xf32>
    %cst_95 = arith.constant dense<0.000000e+00> : vector<4x32xf32>
    %341 = tpu.matmul %339, %340, %cst_95 {dimension_numbers = #tpu.dot_dimension_numbers<[1], [0], [0], [1], [0, 0, 1, 1], [], []>} : vector<4x8xf32>, vector<8x32xf32>, vector<4x32xf32> -> vector<4x32xf32>
    %342 = arith.addf %323, %341 : vector<4x32xf32>
    %343 = vector.extract_strided_slice %301 {offsets = [0, 16], sizes = [4, 8], strides = [1, 1]} : vector<4x32xf32> to vector<4x8xf32>
    %344 = vector.extract_strided_slice %302 {offsets = [0, 16], sizes = [4, 8], strides = [1, 1]} : vector<4x32xf32> to vector<4x8xf32>
    %345 = vector.extract_strided_slice %303 {offsets = [0, 16], sizes = [4, 8], strides = [1, 1]} : vector<4x32xf32> to vector<4x8xf32>
    %346 = tpu.transpose %344, [1, 0] : vector<4x8xf32> -> vector<8x4xf32>
    %cst_96 = arith.constant dense<0.000000e+00> : vector<4x4xf32>
    %347 = tpu.matmul %343, %346, %cst_96 {dimension_numbers = #tpu.dot_dimension_numbers<[1], [0], [0], [1], [0, 0, 1, 1], [], []>} : vector<4x8xf32>, vector<8x4xf32>, vector<4x4xf32> -> vector<4x4xf32>
    %cst_97 = arith.constant dense<0xFF800000> : vector<4xf32>
    %348 = vector.multi_reduction <maximumf>, %347, %cst_97 [1] : vector<4x4xf32> to vector<4xf32>
    %349 = vector.shape_cast %348 : vector<4xf32> to vector<4x1xf32>
    %350 = vector.broadcast %349 : vector<4x1xf32> to vector<4x4xf32>
    %351 = arith.subf %347, %350 : vector<4x4xf32>
    %352 = math.exp %351 : vector<4x4xf32>
    %cst_98 = arith.constant dense<0.000000e+00> : vector<4xf32>
    %353 = vector.multi_reduction <add>, %352, %cst_98 [1] : vector<4x4xf32> to vector<4xf32>
    %354 = vector.shape_cast %353 : vector<4xf32> to vector<4x1xf32>
    %355 = tpu.reciprocal %354 {approx = true} : vector<4x1xf32> -> vector<4x1xf32>
    %356 = vector.broadcast %355 : vector<4x1xf32> to vector<4x4xf32>
    %357 = arith.mulf %352, %356 : vector<4x4xf32>
    %cst_99 = arith.constant dense<0.000000e+00> : vector<4x8xf32>
    %358 = tpu.matmul %357, %345, %cst_99 {dimension_numbers = #tpu.dot_dimension_numbers<[1], [0], [0], [1], [0, 0, 1, 1], [], []>} : vector<4x4xf32>, vector<4x8xf32>, vector<4x8xf32> -> vector<4x8xf32>
    %359 = vector.extract_strided_slice %6 {offsets = [16, 0], sizes = [8, 32], strides = [1, 1]} : vector<32x32xf32> to vector<8x32xf32>
    %cst_100 = arith.constant dense<0.000000e+00> : vector<4x32xf32>
    %360 = tpu.matmul %358, %359, %cst_100 {dimension_numbers = #tpu.dot_dimension_numbers<[1], [0], [0], [1], [0, 0, 1, 1], [], []>} : vector<4x8xf32>, vector<8x32xf32>, vector<4x32xf32> -> vector<4x32xf32>
    %361 = arith.addf %342, %360 : vector<4x32xf32>
    %362 = vector.extract_strided_slice %301 {offsets = [0, 24], sizes = [4, 8], strides = [1, 1]} : vector<4x32xf32> to vector<4x8xf32>
    %363 = vector.extract_strided_slice %302 {offsets = [0, 24], sizes = [4, 8], strides = [1, 1]} : vector<4x32xf32> to vector<4x8xf32>
    %364 = vector.extract_strided_slice %303 {offsets = [0, 24], sizes = [4, 8], strides = [1, 1]} : vector<4x32xf32> to vector<4x8xf32>
    %365 = tpu.transpose %363, [1, 0] : vector<4x8xf32> -> vector<8x4xf32>
    %cst_101 = arith.constant dense<0.000000e+00> : vector<4x4xf32>
    %366 = tpu.matmul %362, %365, %cst_101 {dimension_numbers = #tpu.dot_dimension_numbers<[1], [0], [0], [1], [0, 0, 1, 1], [], []>} : vector<4x8xf32>, vector<8x4xf32>, vector<4x4xf32> -> vector<4x4xf32>
    %cst_102 = arith.constant dense<0xFF800000> : vector<4xf32>
    %367 = vector.multi_reduction <maximumf>, %366, %cst_102 [1] : vector<4x4xf32> to vector<4xf32>
    %368 = vector.shape_cast %367 : vector<4xf32> to vector<4x1xf32>
    %369 = vector.broadcast %368 : vector<4x1xf32> to vector<4x4xf32>
    %370 = arith.subf %366, %369 : vector<4x4xf32>
    %371 = math.exp %370 : vector<4x4xf32>
    %cst_103 = arith.constant dense<0.000000e+00> : vector<4xf32>
    %372 = vector.multi_reduction <add>, %371, %cst_103 [1] : vector<4x4xf32> to vector<4xf32>
    %373 = vector.shape_cast %372 : vector<4xf32> to vector<4x1xf32>
    %374 = tpu.reciprocal %373 {approx = true} : vector<4x1xf32> -> vector<4x1xf32>
    %375 = vector.broadcast %374 : vector<4x1xf32> to vector<4x4xf32>
    %376 = arith.mulf %371, %375 : vector<4x4xf32>
    %cst_104 = arith.constant dense<0.000000e+00> : vector<4x8xf32>
    %377 = tpu.matmul %376, %364, %cst_104 {dimension_numbers = #tpu.dot_dimension_numbers<[1], [0], [0], [1], [0, 0, 1, 1], [], []>} : vector<4x4xf32>, vector<4x8xf32>, vector<4x8xf32> -> vector<4x8xf32>
    %378 = vector.extract_strided_slice %6 {offsets = [24, 0], sizes = [8, 32], strides = [1, 1]} : vector<32x32xf32> to vector<8x32xf32>
    %cst_105 = arith.constant dense<0.000000e+00> : vector<4x32xf32>
    %379 = tpu.matmul %377, %378, %cst_105 {dimension_numbers = #tpu.dot_dimension_numbers<[1], [0], [0], [1], [0, 0, 1, 1], [], []>} : vector<4x8xf32>, vector<8x32xf32>, vector<4x32xf32> -> vector<4x32xf32>
    %380 = arith.addf %361, %379 : vector<4x32xf32>
    %381 = vector.broadcast %7 : vector<1x32xf32> to vector<4x32xf32>
    %382 = arith.addf %380, %381 : vector<4x32xf32>
    %cst_106 = arith.constant dense<0.000000e+00> : vector<4x16xf32>
    %383 = tpu.matmul %382, %8, %cst_106 {dimension_numbers = #tpu.dot_dimension_numbers<[1], [0], [0], [1], [0, 0, 1, 1], [], []>} : vector<4x32xf32>, vector<32x16xf32>, vector<4x16xf32> -> vector<4x16xf32>
    %384 = vector.broadcast %9 : vector<1x16xf32> to vector<4x16xf32>
    %385 = arith.addf %383, %384 : vector<4x16xf32>
    %386 = math.tanh %385 : vector<4x16xf32>
    %cst_107 = arith.constant dense<0.000000e+00> : vector<4x1xf32>
    %387 = tpu.matmul %386, %10, %cst_107 {dimension_numbers = #tpu.dot_dimension_numbers<[1], [0], [0], [1], [0, 0, 1, 1], [], []>} : vector<4x16xf32>, vector<16x1xf32>, vector<4x1xf32> -> vector<4x1xf32>
    %388 = arith.maximumf %288, %387 : vector<4x1xf32>
    %389 = arith.subf %288, %388 : vector<4x1xf32>
    %390 = math.exp %389 : vector<4x1xf32>
    %391 = arith.subf %387, %388 : vector<4x1xf32>
    %392 = math.exp %391 : vector<4x1xf32>
    %393 = arith.mulf %390, %294 : vector<4x1xf32>
    %394 = arith.addf %393, %392 : vector<4x1xf32>
    %395 = vector.broadcast %390 : vector<4x1xf32> to vector<4x32xf32>
    %396 = arith.mulf %395, %299 : vector<4x32xf32>
    %397 = vector.broadcast %392 : vector<4x1xf32> to vector<4x32xf32>
    %398 = arith.mulf %397, %382 : vector<4x32xf32>
    %399 = arith.addf %396, %398 : vector<4x32xf32>
    %400 = vector.extract_strided_slice %5 {offsets = [16, 0], sizes = [4, 96], strides = [1, 1]} : vector<32x96xf32> to vector<4x96xf32>
    %401 = vector.extract_strided_slice %400 {offsets = [0, 0], sizes = [4, 32], strides = [1, 1]} : vector<4x96xf32> to vector<4x32xf32>
    %402 = vector.extract_strided_slice %400 {offsets = [0, 32], sizes = [4, 32], strides = [1, 1]} : vector<4x96xf32> to vector<4x32xf32>
    %403 = vector.extract_strided_slice %400 {offsets = [0, 64], sizes = [4, 32], strides = [1, 1]} : vector<4x96xf32> to vector<4x32xf32>
    %cst_108 = arith.constant 0.000000e+00 : f32
    %404 = vector.broadcast %cst_108 : f32 to vector<4x32xf32>
    %405 = vector.extract_strided_slice %401 {offsets = [0, 0], sizes = [4, 8], strides = [1, 1]} : vector<4x32xf32> to vector<4x8xf32>
    %406 = vector.extract_strided_slice %402 {offsets = [0, 0], sizes = [4, 8], strides = [1, 1]} : vector<4x32xf32> to vector<4x8xf32>
    %407 = vector.extract_strided_slice %403 {offsets = [0, 0], sizes = [4, 8], strides = [1, 1]} : vector<4x32xf32> to vector<4x8xf32>
    %408 = tpu.transpose %406, [1, 0] : vector<4x8xf32> -> vector<8x4xf32>
    %cst_109 = arith.constant dense<0.000000e+00> : vector<4x4xf32>
    %409 = tpu.matmul %405, %408, %cst_109 {dimension_numbers = #tpu.dot_dimension_numbers<[1], [0], [0], [1], [0, 0, 1, 1], [], []>} : vector<4x8xf32>, vector<8x4xf32>, vector<4x4xf32> -> vector<4x4xf32>
    %cst_110 = arith.constant dense<0xFF800000> : vector<4xf32>
    %410 = vector.multi_reduction <maximumf>, %409, %cst_110 [1] : vector<4x4xf32> to vector<4xf32>
    %411 = vector.shape_cast %410 : vector<4xf32> to vector<4x1xf32>
    %412 = vector.broadcast %411 : vector<4x1xf32> to vector<4x4xf32>
    %413 = arith.subf %409, %412 : vector<4x4xf32>
    %414 = math.exp %413 : vector<4x4xf32>
    %cst_111 = arith.constant dense<0.000000e+00> : vector<4xf32>
    %415 = vector.multi_reduction <add>, %414, %cst_111 [1] : vector<4x4xf32> to vector<4xf32>
    %416 = vector.shape_cast %415 : vector<4xf32> to vector<4x1xf32>
    %417 = tpu.reciprocal %416 {approx = true} : vector<4x1xf32> -> vector<4x1xf32>
    %418 = vector.broadcast %417 : vector<4x1xf32> to vector<4x4xf32>
    %419 = arith.mulf %414, %418 : vector<4x4xf32>
    %cst_112 = arith.constant dense<0.000000e+00> : vector<4x8xf32>
    %420 = tpu.matmul %419, %407, %cst_112 {dimension_numbers = #tpu.dot_dimension_numbers<[1], [0], [0], [1], [0, 0, 1, 1], [], []>} : vector<4x4xf32>, vector<4x8xf32>, vector<4x8xf32> -> vector<4x8xf32>
    %421 = vector.extract_strided_slice %6 {offsets = [0, 0], sizes = [8, 32], strides = [1, 1]} : vector<32x32xf32> to vector<8x32xf32>
    %cst_113 = arith.constant dense<0.000000e+00> : vector<4x32xf32>
    %422 = tpu.matmul %420, %421, %cst_113 {dimension_numbers = #tpu.dot_dimension_numbers<[1], [0], [0], [1], [0, 0, 1, 1], [], []>} : vector<4x8xf32>, vector<8x32xf32>, vector<4x32xf32> -> vector<4x32xf32>
    %423 = arith.addf %404, %422 : vector<4x32xf32>
    %424 = vector.extract_strided_slice %401 {offsets = [0, 8], sizes = [4, 8], strides = [1, 1]} : vector<4x32xf32> to vector<4x8xf32>
    %425 = vector.extract_strided_slice %402 {offsets = [0, 8], sizes = [4, 8], strides = [1, 1]} : vector<4x32xf32> to vector<4x8xf32>
    %426 = vector.extract_strided_slice %403 {offsets = [0, 8], sizes = [4, 8], strides = [1, 1]} : vector<4x32xf32> to vector<4x8xf32>
    %427 = tpu.transpose %425, [1, 0] : vector<4x8xf32> -> vector<8x4xf32>
    %cst_114 = arith.constant dense<0.000000e+00> : vector<4x4xf32>
    %428 = tpu.matmul %424, %427, %cst_114 {dimension_numbers = #tpu.dot_dimension_numbers<[1], [0], [0], [1], [0, 0, 1, 1], [], []>} : vector<4x8xf32>, vector<8x4xf32>, vector<4x4xf32> -> vector<4x4xf32>
    %cst_115 = arith.constant dense<0xFF800000> : vector<4xf32>
    %429 = vector.multi_reduction <maximumf>, %428, %cst_115 [1] : vector<4x4xf32> to vector<4xf32>
    %430 = vector.shape_cast %429 : vector<4xf32> to vector<4x1xf32>
    %431 = vector.broadcast %430 : vector<4x1xf32> to vector<4x4xf32>
    %432 = arith.subf %428, %431 : vector<4x4xf32>
    %433 = math.exp %432 : vector<4x4xf32>
    %cst_116 = arith.constant dense<0.000000e+00> : vector<4xf32>
    %434 = vector.multi_reduction <add>, %433, %cst_116 [1] : vector<4x4xf32> to vector<4xf32>
    %435 = vector.shape_cast %434 : vector<4xf32> to vector<4x1xf32>
    %436 = tpu.reciprocal %435 {approx = true} : vector<4x1xf32> -> vector<4x1xf32>
    %437 = vector.broadcast %436 : vector<4x1xf32> to vector<4x4xf32>
    %438 = arith.mulf %433, %437 : vector<4x4xf32>
    %cst_117 = arith.constant dense<0.000000e+00> : vector<4x8xf32>
    %439 = tpu.matmul %438, %426, %cst_117 {dimension_numbers = #tpu.dot_dimension_numbers<[1], [0], [0], [1], [0, 0, 1, 1], [], []>} : vector<4x4xf32>, vector<4x8xf32>, vector<4x8xf32> -> vector<4x8xf32>
    %440 = vector.extract_strided_slice %6 {offsets = [8, 0], sizes = [8, 32], strides = [1, 1]} : vector<32x32xf32> to vector<8x32xf32>
    %cst_118 = arith.constant dense<0.000000e+00> : vector<4x32xf32>
    %441 = tpu.matmul %439, %440, %cst_118 {dimension_numbers = #tpu.dot_dimension_numbers<[1], [0], [0], [1], [0, 0, 1, 1], [], []>} : vector<4x8xf32>, vector<8x32xf32>, vector<4x32xf32> -> vector<4x32xf32>
    %442 = arith.addf %423, %441 : vector<4x32xf32>
    %443 = vector.extract_strided_slice %401 {offsets = [0, 16], sizes = [4, 8], strides = [1, 1]} : vector<4x32xf32> to vector<4x8xf32>
    %444 = vector.extract_strided_slice %402 {offsets = [0, 16], sizes = [4, 8], strides = [1, 1]} : vector<4x32xf32> to vector<4x8xf32>
    %445 = vector.extract_strided_slice %403 {offsets = [0, 16], sizes = [4, 8], strides = [1, 1]} : vector<4x32xf32> to vector<4x8xf32>
    %446 = tpu.transpose %444, [1, 0] : vector<4x8xf32> -> vector<8x4xf32>
    %cst_119 = arith.constant dense<0.000000e+00> : vector<4x4xf32>
    %447 = tpu.matmul %443, %446, %cst_119 {dimension_numbers = #tpu.dot_dimension_numbers<[1], [0], [0], [1], [0, 0, 1, 1], [], []>} : vector<4x8xf32>, vector<8x4xf32>, vector<4x4xf32> -> vector<4x4xf32>
    %cst_120 = arith.constant dense<0xFF800000> : vector<4xf32>
    %448 = vector.multi_reduction <maximumf>, %447, %cst_120 [1] : vector<4x4xf32> to vector<4xf32>
    %449 = vector.shape_cast %448 : vector<4xf32> to vector<4x1xf32>
    %450 = vector.broadcast %449 : vector<4x1xf32> to vector<4x4xf32>
    %451 = arith.subf %447, %450 : vector<4x4xf32>
    %452 = math.exp %451 : vector<4x4xf32>
    %cst_121 = arith.constant dense<0.000000e+00> : vector<4xf32>
    %453 = vector.multi_reduction <add>, %452, %cst_121 [1] : vector<4x4xf32> to vector<4xf32>
    %454 = vector.shape_cast %453 : vector<4xf32> to vector<4x1xf32>
    %455 = tpu.reciprocal %454 {approx = true} : vector<4x1xf32> -> vector<4x1xf32>
    %456 = vector.broadcast %455 : vector<4x1xf32> to vector<4x4xf32>
    %457 = arith.mulf %452, %456 : vector<4x4xf32>
    %cst_122 = arith.constant dense<0.000000e+00> : vector<4x8xf32>
    %458 = tpu.matmul %457, %445, %cst_122 {dimension_numbers = #tpu.dot_dimension_numbers<[1], [0], [0], [1], [0, 0, 1, 1], [], []>} : vector<4x4xf32>, vector<4x8xf32>, vector<4x8xf32> -> vector<4x8xf32>
    %459 = vector.extract_strided_slice %6 {offsets = [16, 0], sizes = [8, 32], strides = [1, 1]} : vector<32x32xf32> to vector<8x32xf32>
    %cst_123 = arith.constant dense<0.000000e+00> : vector<4x32xf32>
    %460 = tpu.matmul %458, %459, %cst_123 {dimension_numbers = #tpu.dot_dimension_numbers<[1], [0], [0], [1], [0, 0, 1, 1], [], []>} : vector<4x8xf32>, vector<8x32xf32>, vector<4x32xf32> -> vector<4x32xf32>
    %461 = arith.addf %442, %460 : vector<4x32xf32>
    %462 = vector.extract_strided_slice %401 {offsets = [0, 24], sizes = [4, 8], strides = [1, 1]} : vector<4x32xf32> to vector<4x8xf32>
    %463 = vector.extract_strided_slice %402 {offsets = [0, 24], sizes = [4, 8], strides = [1, 1]} : vector<4x32xf32> to vector<4x8xf32>
    %464 = vector.extract_strided_slice %403 {offsets = [0, 24], sizes = [4, 8], strides = [1, 1]} : vector<4x32xf32> to vector<4x8xf32>
    %465 = tpu.transpose %463, [1, 0] : vector<4x8xf32> -> vector<8x4xf32>
    %cst_124 = arith.constant dense<0.000000e+00> : vector<4x4xf32>
    %466 = tpu.matmul %462, %465, %cst_124 {dimension_numbers = #tpu.dot_dimension_numbers<[1], [0], [0], [1], [0, 0, 1, 1], [], []>} : vector<4x8xf32>, vector<8x4xf32>, vector<4x4xf32> -> vector<4x4xf32>
    %cst_125 = arith.constant dense<0xFF800000> : vector<4xf32>
    %467 = vector.multi_reduction <maximumf>, %466, %cst_125 [1] : vector<4x4xf32> to vector<4xf32>
    %468 = vector.shape_cast %467 : vector<4xf32> to vector<4x1xf32>
    %469 = vector.broadcast %468 : vector<4x1xf32> to vector<4x4xf32>
    %470 = arith.subf %466, %469 : vector<4x4xf32>
    %471 = math.exp %470 : vector<4x4xf32>
    %cst_126 = arith.constant dense<0.000000e+00> : vector<4xf32>
    %472 = vector.multi_reduction <add>, %471, %cst_126 [1] : vector<4x4xf32> to vector<4xf32>
    %473 = vector.shape_cast %472 : vector<4xf32> to vector<4x1xf32>
    %474 = tpu.reciprocal %473 {approx = true} : vector<4x1xf32> -> vector<4x1xf32>
    %475 = vector.broadcast %474 : vector<4x1xf32> to vector<4x4xf32>
    %476 = arith.mulf %471, %475 : vector<4x4xf32>
    %cst_127 = arith.constant dense<0.000000e+00> : vector<4x8xf32>
    %477 = tpu.matmul %476, %464, %cst_127 {dimension_numbers = #tpu.dot_dimension_numbers<[1], [0], [0], [1], [0, 0, 1, 1], [], []>} : vector<4x4xf32>, vector<4x8xf32>, vector<4x8xf32> -> vector<4x8xf32>
    %478 = vector.extract_strided_slice %6 {offsets = [24, 0], sizes = [8, 32], strides = [1, 1]} : vector<32x32xf32> to vector<8x32xf32>
    %cst_128 = arith.constant dense<0.000000e+00> : vector<4x32xf32>
    %479 = tpu.matmul %477, %478, %cst_128 {dimension_numbers = #tpu.dot_dimension_numbers<[1], [0], [0], [1], [0, 0, 1, 1], [], []>} : vector<4x8xf32>, vector<8x32xf32>, vector<4x32xf32> -> vector<4x32xf32>
    %480 = arith.addf %461, %479 : vector<4x32xf32>
    %481 = vector.broadcast %7 : vector<1x32xf32> to vector<4x32xf32>
    %482 = arith.addf %480, %481 : vector<4x32xf32>
    %cst_129 = arith.constant dense<0.000000e+00> : vector<4x16xf32>
    %483 = tpu.matmul %482, %8, %cst_129 {dimension_numbers = #tpu.dot_dimension_numbers<[1], [0], [0], [1], [0, 0, 1, 1], [], []>} : vector<4x32xf32>, vector<32x16xf32>, vector<4x16xf32> -> vector<4x16xf32>
    %484 = vector.broadcast %9 : vector<1x16xf32> to vector<4x16xf32>
    %485 = arith.addf %483, %484 : vector<4x16xf32>
    %486 = math.tanh %485 : vector<4x16xf32>
    %cst_130 = arith.constant dense<0.000000e+00> : vector<4x1xf32>
    %487 = tpu.matmul %486, %10, %cst_130 {dimension_numbers = #tpu.dot_dimension_numbers<[1], [0], [0], [1], [0, 0, 1, 1], [], []>} : vector<4x16xf32>, vector<16x1xf32>, vector<4x1xf32> -> vector<4x1xf32>
    %488 = arith.maximumf %388, %487 : vector<4x1xf32>
    %489 = arith.subf %388, %488 : vector<4x1xf32>
    %490 = math.exp %489 : vector<4x1xf32>
    %491 = arith.subf %487, %488 : vector<4x1xf32>
    %492 = math.exp %491 : vector<4x1xf32>
    %493 = arith.mulf %490, %394 : vector<4x1xf32>
    %494 = arith.addf %493, %492 : vector<4x1xf32>
    %495 = vector.broadcast %490 : vector<4x1xf32> to vector<4x32xf32>
    %496 = arith.mulf %495, %399 : vector<4x32xf32>
    %497 = vector.broadcast %492 : vector<4x1xf32> to vector<4x32xf32>
    %498 = arith.mulf %497, %482 : vector<4x32xf32>
    %499 = arith.addf %496, %498 : vector<4x32xf32>
    %500 = vector.extract_strided_slice %5 {offsets = [20, 0], sizes = [4, 96], strides = [1, 1]} : vector<32x96xf32> to vector<4x96xf32>
    %501 = vector.extract_strided_slice %500 {offsets = [0, 0], sizes = [4, 32], strides = [1, 1]} : vector<4x96xf32> to vector<4x32xf32>
    %502 = vector.extract_strided_slice %500 {offsets = [0, 32], sizes = [4, 32], strides = [1, 1]} : vector<4x96xf32> to vector<4x32xf32>
    %503 = vector.extract_strided_slice %500 {offsets = [0, 64], sizes = [4, 32], strides = [1, 1]} : vector<4x96xf32> to vector<4x32xf32>
    %cst_131 = arith.constant 0.000000e+00 : f32
    %504 = vector.broadcast %cst_131 : f32 to vector<4x32xf32>
    %505 = vector.extract_strided_slice %501 {offsets = [0, 0], sizes = [4, 8], strides = [1, 1]} : vector<4x32xf32> to vector<4x8xf32>
    %506 = vector.extract_strided_slice %502 {offsets = [0, 0], sizes = [4, 8], strides = [1, 1]} : vector<4x32xf32> to vector<4x8xf32>
    %507 = vector.extract_strided_slice %503 {offsets = [0, 0], sizes = [4, 8], strides = [1, 1]} : vector<4x32xf32> to vector<4x8xf32>
    %508 = tpu.transpose %506, [1, 0] : vector<4x8xf32> -> vector<8x4xf32>
    %cst_132 = arith.constant dense<0.000000e+00> : vector<4x4xf32>
    %509 = tpu.matmul %505, %508, %cst_132 {dimension_numbers = #tpu.dot_dimension_numbers<[1], [0], [0], [1], [0, 0, 1, 1], [], []>} : vector<4x8xf32>, vector<8x4xf32>, vector<4x4xf32> -> vector<4x4xf32>
    %cst_133 = arith.constant dense<0xFF800000> : vector<4xf32>
    %510 = vector.multi_reduction <maximumf>, %509, %cst_133 [1] : vector<4x4xf32> to vector<4xf32>
    %511 = vector.shape_cast %510 : vector<4xf32> to vector<4x1xf32>
    %512 = vector.broadcast %511 : vector<4x1xf32> to vector<4x4xf32>
    %513 = arith.subf %509, %512 : vector<4x4xf32>
    %514 = math.exp %513 : vector<4x4xf32>
    %cst_134 = arith.constant dense<0.000000e+00> : vector<4xf32>
    %515 = vector.multi_reduction <add>, %514, %cst_134 [1] : vector<4x4xf32> to vector<4xf32>
    %516 = vector.shape_cast %515 : vector<4xf32> to vector<4x1xf32>
    %517 = tpu.reciprocal %516 {approx = true} : vector<4x1xf32> -> vector<4x1xf32>
    %518 = vector.broadcast %517 : vector<4x1xf32> to vector<4x4xf32>
    %519 = arith.mulf %514, %518 : vector<4x4xf32>
    %cst_135 = arith.constant dense<0.000000e+00> : vector<4x8xf32>
    %520 = tpu.matmul %519, %507, %cst_135 {dimension_numbers = #tpu.dot_dimension_numbers<[1], [0], [0], [1], [0, 0, 1, 1], [], []>} : vector<4x4xf32>, vector<4x8xf32>, vector<4x8xf32> -> vector<4x8xf32>
    %521 = vector.extract_strided_slice %6 {offsets = [0, 0], sizes = [8, 32], strides = [1, 1]} : vector<32x32xf32> to vector<8x32xf32>
    %cst_136 = arith.constant dense<0.000000e+00> : vector<4x32xf32>
    %522 = tpu.matmul %520, %521, %cst_136 {dimension_numbers = #tpu.dot_dimension_numbers<[1], [0], [0], [1], [0, 0, 1, 1], [], []>} : vector<4x8xf32>, vector<8x32xf32>, vector<4x32xf32> -> vector<4x32xf32>
    %523 = arith.addf %504, %522 : vector<4x32xf32>
    %524 = vector.extract_strided_slice %501 {offsets = [0, 8], sizes = [4, 8], strides = [1, 1]} : vector<4x32xf32> to vector<4x8xf32>
    %525 = vector.extract_strided_slice %502 {offsets = [0, 8], sizes = [4, 8], strides = [1, 1]} : vector<4x32xf32> to vector<4x8xf32>
    %526 = vector.extract_strided_slice %503 {offsets = [0, 8], sizes = [4, 8], strides = [1, 1]} : vector<4x32xf32> to vector<4x8xf32>
    %527 = tpu.transpose %525, [1, 0] : vector<4x8xf32> -> vector<8x4xf32>
    %cst_137 = arith.constant dense<0.000000e+00> : vector<4x4xf32>
    %528 = tpu.matmul %524, %527, %cst_137 {dimension_numbers = #tpu.dot_dimension_numbers<[1], [0], [0], [1], [0, 0, 1, 1], [], []>} : vector<4x8xf32>, vector<8x4xf32>, vector<4x4xf32> -> vector<4x4xf32>
    %cst_138 = arith.constant dense<0xFF800000> : vector<4xf32>
    %529 = vector.multi_reduction <maximumf>, %528, %cst_138 [1] : vector<4x4xf32> to vector<4xf32>
    %530 = vector.shape_cast %529 : vector<4xf32> to vector<4x1xf32>
    %531 = vector.broadcast %530 : vector<4x1xf32> to vector<4x4xf32>
    %532 = arith.subf %528, %531 : vector<4x4xf32>
    %533 = math.exp %532 : vector<4x4xf32>
    %cst_139 = arith.constant dense<0.000000e+00> : vector<4xf32>
    %534 = vector.multi_reduction <add>, %533, %cst_139 [1] : vector<4x4xf32> to vector<4xf32>
    %535 = vector.shape_cast %534 : vector<4xf32> to vector<4x1xf32>
    %536 = tpu.reciprocal %535 {approx = true} : vector<4x1xf32> -> vector<4x1xf32>
    %537 = vector.broadcast %536 : vector<4x1xf32> to vector<4x4xf32>
    %538 = arith.mulf %533, %537 : vector<4x4xf32>
    %cst_140 = arith.constant dense<0.000000e+00> : vector<4x8xf32>
    %539 = tpu.matmul %538, %526, %cst_140 {dimension_numbers = #tpu.dot_dimension_numbers<[1], [0], [0], [1], [0, 0, 1, 1], [], []>} : vector<4x4xf32>, vector<4x8xf32>, vector<4x8xf32> -> vector<4x8xf32>
    %540 = vector.extract_strided_slice %6 {offsets = [8, 0], sizes = [8, 32], strides = [1, 1]} : vector<32x32xf32> to vector<8x32xf32>
    %cst_141 = arith.constant dense<0.000000e+00> : vector<4x32xf32>
    %541 = tpu.matmul %539, %540, %cst_141 {dimension_numbers = #tpu.dot_dimension_numbers<[1], [0], [0], [1], [0, 0, 1, 1], [], []>} : vector<4x8xf32>, vector<8x32xf32>, vector<4x32xf32> -> vector<4x32xf32>
    %542 = arith.addf %523, %541 : vector<4x32xf32>
    %543 = vector.extract_strided_slice %501 {offsets = [0, 16], sizes = [4, 8], strides = [1, 1]} : vector<4x32xf32> to vector<4x8xf32>
    %544 = vector.extract_strided_slice %502 {offsets = [0, 16], sizes = [4, 8], strides = [1, 1]} : vector<4x32xf32> to vector<4x8xf32>
    %545 = vector.extract_strided_slice %503 {offsets = [0, 16], sizes = [4, 8], strides = [1, 1]} : vector<4x32xf32> to vector<4x8xf32>
    %546 = tpu.transpose %544, [1, 0] : vector<4x8xf32> -> vector<8x4xf32>
    %cst_142 = arith.constant dense<0.000000e+00> : vector<4x4xf32>
    %547 = tpu.matmul %543, %546, %cst_142 {dimension_numbers = #tpu.dot_dimension_numbers<[1], [0], [0], [1], [0, 0, 1, 1], [], []>} : vector<4x8xf32>, vector<8x4xf32>, vector<4x4xf32> -> vector<4x4xf32>
    %cst_143 = arith.constant dense<0xFF800000> : vector<4xf32>
    %548 = vector.multi_reduction <maximumf>, %547, %cst_143 [1] : vector<4x4xf32> to vector<4xf32>
    %549 = vector.shape_cast %548 : vector<4xf32> to vector<4x1xf32>
    %550 = vector.broadcast %549 : vector<4x1xf32> to vector<4x4xf32>
    %551 = arith.subf %547, %550 : vector<4x4xf32>
    %552 = math.exp %551 : vector<4x4xf32>
    %cst_144 = arith.constant dense<0.000000e+00> : vector<4xf32>
    %553 = vector.multi_reduction <add>, %552, %cst_144 [1] : vector<4x4xf32> to vector<4xf32>
    %554 = vector.shape_cast %553 : vector<4xf32> to vector<4x1xf32>
    %555 = tpu.reciprocal %554 {approx = true} : vector<4x1xf32> -> vector<4x1xf32>
    %556 = vector.broadcast %555 : vector<4x1xf32> to vector<4x4xf32>
    %557 = arith.mulf %552, %556 : vector<4x4xf32>
    %cst_145 = arith.constant dense<0.000000e+00> : vector<4x8xf32>
    %558 = tpu.matmul %557, %545, %cst_145 {dimension_numbers = #tpu.dot_dimension_numbers<[1], [0], [0], [1], [0, 0, 1, 1], [], []>} : vector<4x4xf32>, vector<4x8xf32>, vector<4x8xf32> -> vector<4x8xf32>
    %559 = vector.extract_strided_slice %6 {offsets = [16, 0], sizes = [8, 32], strides = [1, 1]} : vector<32x32xf32> to vector<8x32xf32>
    %cst_146 = arith.constant dense<0.000000e+00> : vector<4x32xf32>
    %560 = tpu.matmul %558, %559, %cst_146 {dimension_numbers = #tpu.dot_dimension_numbers<[1], [0], [0], [1], [0, 0, 1, 1], [], []>} : vector<4x8xf32>, vector<8x32xf32>, vector<4x32xf32> -> vector<4x32xf32>
    %561 = arith.addf %542, %560 : vector<4x32xf32>
    %562 = vector.extract_strided_slice %501 {offsets = [0, 24], sizes = [4, 8], strides = [1, 1]} : vector<4x32xf32> to vector<4x8xf32>
    %563 = vector.extract_strided_slice %502 {offsets = [0, 24], sizes = [4, 8], strides = [1, 1]} : vector<4x32xf32> to vector<4x8xf32>
    %564 = vector.extract_strided_slice %503 {offsets = [0, 24], sizes = [4, 8], strides = [1, 1]} : vector<4x32xf32> to vector<4x8xf32>
    %565 = tpu.transpose %563, [1, 0] : vector<4x8xf32> -> vector<8x4xf32>
    %cst_147 = arith.constant dense<0.000000e+00> : vector<4x4xf32>
    %566 = tpu.matmul %562, %565, %cst_147 {dimension_numbers = #tpu.dot_dimension_numbers<[1], [0], [0], [1], [0, 0, 1, 1], [], []>} : vector<4x8xf32>, vector<8x4xf32>, vector<4x4xf32> -> vector<4x4xf32>
    %cst_148 = arith.constant dense<0xFF800000> : vector<4xf32>
    %567 = vector.multi_reduction <maximumf>, %566, %cst_148 [1] : vector<4x4xf32> to vector<4xf32>
    %568 = vector.shape_cast %567 : vector<4xf32> to vector<4x1xf32>
    %569 = vector.broadcast %568 : vector<4x1xf32> to vector<4x4xf32>
    %570 = arith.subf %566, %569 : vector<4x4xf32>
    %571 = math.exp %570 : vector<4x4xf32>
    %cst_149 = arith.constant dense<0.000000e+00> : vector<4xf32>
    %572 = vector.multi_reduction <add>, %571, %cst_149 [1] : vector<4x4xf32> to vector<4xf32>
    %573 = vector.shape_cast %572 : vector<4xf32> to vector<4x1xf32>
    %574 = tpu.reciprocal %573 {approx = true} : vector<4x1xf32> -> vector<4x1xf32>
    %575 = vector.broadcast %574 : vector<4x1xf32> to vector<4x4xf32>
    %576 = arith.mulf %571, %575 : vector<4x4xf32>
    %cst_150 = arith.constant dense<0.000000e+00> : vector<4x8xf32>
    %577 = tpu.matmul %576, %564, %cst_150 {dimension_numbers = #tpu.dot_dimension_numbers<[1], [0], [0], [1], [0, 0, 1, 1], [], []>} : vector<4x4xf32>, vector<4x8xf32>, vector<4x8xf32> -> vector<4x8xf32>
    %578 = vector.extract_strided_slice %6 {offsets = [24, 0], sizes = [8, 32], strides = [1, 1]} : vector<32x32xf32> to vector<8x32xf32>
    %cst_151 = arith.constant dense<0.000000e+00> : vector<4x32xf32>
    %579 = tpu.matmul %577, %578, %cst_151 {dimension_numbers = #tpu.dot_dimension_numbers<[1], [0], [0], [1], [0, 0, 1, 1], [], []>} : vector<4x8xf32>, vector<8x32xf32>, vector<4x32xf32> -> vector<4x32xf32>
    %580 = arith.addf %561, %579 : vector<4x32xf32>
    %581 = vector.broadcast %7 : vector<1x32xf32> to vector<4x32xf32>
    %582 = arith.addf %580, %581 : vector<4x32xf32>
    %cst_152 = arith.constant dense<0.000000e+00> : vector<4x16xf32>
    %583 = tpu.matmul %582, %8, %cst_152 {dimension_numbers = #tpu.dot_dimension_numbers<[1], [0], [0], [1], [0, 0, 1, 1], [], []>} : vector<4x32xf32>, vector<32x16xf32>, vector<4x16xf32> -> vector<4x16xf32>
    %584 = vector.broadcast %9 : vector<1x16xf32> to vector<4x16xf32>
    %585 = arith.addf %583, %584 : vector<4x16xf32>
    %586 = math.tanh %585 : vector<4x16xf32>
    %cst_153 = arith.constant dense<0.000000e+00> : vector<4x1xf32>
    %587 = tpu.matmul %586, %10, %cst_153 {dimension_numbers = #tpu.dot_dimension_numbers<[1], [0], [0], [1], [0, 0, 1, 1], [], []>} : vector<4x16xf32>, vector<16x1xf32>, vector<4x1xf32> -> vector<4x1xf32>
    %588 = arith.maximumf %488, %587 : vector<4x1xf32>
    %589 = arith.subf %488, %588 : vector<4x1xf32>
    %590 = math.exp %589 : vector<4x1xf32>
    %591 = arith.subf %587, %588 : vector<4x1xf32>
    %592 = math.exp %591 : vector<4x1xf32>
    %593 = arith.mulf %590, %494 : vector<4x1xf32>
    %594 = arith.addf %593, %592 : vector<4x1xf32>
    %595 = vector.broadcast %590 : vector<4x1xf32> to vector<4x32xf32>
    %596 = arith.mulf %595, %499 : vector<4x32xf32>
    %597 = vector.broadcast %592 : vector<4x1xf32> to vector<4x32xf32>
    %598 = arith.mulf %597, %582 : vector<4x32xf32>
    %599 = arith.addf %596, %598 : vector<4x32xf32>
    %600 = vector.extract_strided_slice %5 {offsets = [24, 0], sizes = [4, 96], strides = [1, 1]} : vector<32x96xf32> to vector<4x96xf32>
    %601 = vector.extract_strided_slice %600 {offsets = [0, 0], sizes = [4, 32], strides = [1, 1]} : vector<4x96xf32> to vector<4x32xf32>
    %602 = vector.extract_strided_slice %600 {offsets = [0, 32], sizes = [4, 32], strides = [1, 1]} : vector<4x96xf32> to vector<4x32xf32>
    %603 = vector.extract_strided_slice %600 {offsets = [0, 64], sizes = [4, 32], strides = [1, 1]} : vector<4x96xf32> to vector<4x32xf32>
    %cst_154 = arith.constant 0.000000e+00 : f32
    %604 = vector.broadcast %cst_154 : f32 to vector<4x32xf32>
    %605 = vector.extract_strided_slice %601 {offsets = [0, 0], sizes = [4, 8], strides = [1, 1]} : vector<4x32xf32> to vector<4x8xf32>
    %606 = vector.extract_strided_slice %602 {offsets = [0, 0], sizes = [4, 8], strides = [1, 1]} : vector<4x32xf32> to vector<4x8xf32>
    %607 = vector.extract_strided_slice %603 {offsets = [0, 0], sizes = [4, 8], strides = [1, 1]} : vector<4x32xf32> to vector<4x8xf32>
    %608 = tpu.transpose %606, [1, 0] : vector<4x8xf32> -> vector<8x4xf32>
    %cst_155 = arith.constant dense<0.000000e+00> : vector<4x4xf32>
    %609 = tpu.matmul %605, %608, %cst_155 {dimension_numbers = #tpu.dot_dimension_numbers<[1], [0], [0], [1], [0, 0, 1, 1], [], []>} : vector<4x8xf32>, vector<8x4xf32>, vector<4x4xf32> -> vector<4x4xf32>
    %cst_156 = arith.constant dense<0xFF800000> : vector<4xf32>
    %610 = vector.multi_reduction <maximumf>, %609, %cst_156 [1] : vector<4x4xf32> to vector<4xf32>
    %611 = vector.shape_cast %610 : vector<4xf32> to vector<4x1xf32>
    %612 = vector.broadcast %611 : vector<4x1xf32> to vector<4x4xf32>
    %613 = arith.subf %609, %612 : vector<4x4xf32>
    %614 = math.exp %613 : vector<4x4xf32>
    %cst_157 = arith.constant dense<0.000000e+00> : vector<4xf32>
    %615 = vector.multi_reduction <add>, %614, %cst_157 [1] : vector<4x4xf32> to vector<4xf32>
    %616 = vector.shape_cast %615 : vector<4xf32> to vector<4x1xf32>
    %617 = tpu.reciprocal %616 {approx = true} : vector<4x1xf32> -> vector<4x1xf32>
    %618 = vector.broadcast %617 : vector<4x1xf32> to vector<4x4xf32>
    %619 = arith.mulf %614, %618 : vector<4x4xf32>
    %cst_158 = arith.constant dense<0.000000e+00> : vector<4x8xf32>
    %620 = tpu.matmul %619, %607, %cst_158 {dimension_numbers = #tpu.dot_dimension_numbers<[1], [0], [0], [1], [0, 0, 1, 1], [], []>} : vector<4x4xf32>, vector<4x8xf32>, vector<4x8xf32> -> vector<4x8xf32>
    %621 = vector.extract_strided_slice %6 {offsets = [0, 0], sizes = [8, 32], strides = [1, 1]} : vector<32x32xf32> to vector<8x32xf32>
    %cst_159 = arith.constant dense<0.000000e+00> : vector<4x32xf32>
    %622 = tpu.matmul %620, %621, %cst_159 {dimension_numbers = #tpu.dot_dimension_numbers<[1], [0], [0], [1], [0, 0, 1, 1], [], []>} : vector<4x8xf32>, vector<8x32xf32>, vector<4x32xf32> -> vector<4x32xf32>
    %623 = arith.addf %604, %622 : vector<4x32xf32>
    %624 = vector.extract_strided_slice %601 {offsets = [0, 8], sizes = [4, 8], strides = [1, 1]} : vector<4x32xf32> to vector<4x8xf32>
    %625 = vector.extract_strided_slice %602 {offsets = [0, 8], sizes = [4, 8], strides = [1, 1]} : vector<4x32xf32> to vector<4x8xf32>
    %626 = vector.extract_strided_slice %603 {offsets = [0, 8], sizes = [4, 8], strides = [1, 1]} : vector<4x32xf32> to vector<4x8xf32>
    %627 = tpu.transpose %625, [1, 0] : vector<4x8xf32> -> vector<8x4xf32>
    %cst_160 = arith.constant dense<0.000000e+00> : vector<4x4xf32>
    %628 = tpu.matmul %624, %627, %cst_160 {dimension_numbers = #tpu.dot_dimension_numbers<[1], [0], [0], [1], [0, 0, 1, 1], [], []>} : vector<4x8xf32>, vector<8x4xf32>, vector<4x4xf32> -> vector<4x4xf32>
    %cst_161 = arith.constant dense<0xFF800000> : vector<4xf32>
    %629 = vector.multi_reduction <maximumf>, %628, %cst_161 [1] : vector<4x4xf32> to vector<4xf32>
    %630 = vector.shape_cast %629 : vector<4xf32> to vector<4x1xf32>
    %631 = vector.broadcast %630 : vector<4x1xf32> to vector<4x4xf32>
    %632 = arith.subf %628, %631 : vector<4x4xf32>
    %633 = math.exp %632 : vector<4x4xf32>
    %cst_162 = arith.constant dense<0.000000e+00> : vector<4xf32>
    %634 = vector.multi_reduction <add>, %633, %cst_162 [1] : vector<4x4xf32> to vector<4xf32>
    %635 = vector.shape_cast %634 : vector<4xf32> to vector<4x1xf32>
    %636 = tpu.reciprocal %635 {approx = true} : vector<4x1xf32> -> vector<4x1xf32>
    %637 = vector.broadcast %636 : vector<4x1xf32> to vector<4x4xf32>
    %638 = arith.mulf %633, %637 : vector<4x4xf32>
    %cst_163 = arith.constant dense<0.000000e+00> : vector<4x8xf32>
    %639 = tpu.matmul %638, %626, %cst_163 {dimension_numbers = #tpu.dot_dimension_numbers<[1], [0], [0], [1], [0, 0, 1, 1], [], []>} : vector<4x4xf32>, vector<4x8xf32>, vector<4x8xf32> -> vector<4x8xf32>
    %640 = vector.extract_strided_slice %6 {offsets = [8, 0], sizes = [8, 32], strides = [1, 1]} : vector<32x32xf32> to vector<8x32xf32>
    %cst_164 = arith.constant dense<0.000000e+00> : vector<4x32xf32>
    %641 = tpu.matmul %639, %640, %cst_164 {dimension_numbers = #tpu.dot_dimension_numbers<[1], [0], [0], [1], [0, 0, 1, 1], [], []>} : vector<4x8xf32>, vector<8x32xf32>, vector<4x32xf32> -> vector<4x32xf32>
    %642 = arith.addf %623, %641 : vector<4x32xf32>
    %643 = vector.extract_strided_slice %601 {offsets = [0, 16], sizes = [4, 8], strides = [1, 1]} : vector<4x32xf32> to vector<4x8xf32>
    %644 = vector.extract_strided_slice %602 {offsets = [0, 16], sizes = [4, 8], strides = [1, 1]} : vector<4x32xf32> to vector<4x8xf32>
    %645 = vector.extract_strided_slice %603 {offsets = [0, 16], sizes = [4, 8], strides = [1, 1]} : vector<4x32xf32> to vector<4x8xf32>
    %646 = tpu.transpose %644, [1, 0] : vector<4x8xf32> -> vector<8x4xf32>
    %cst_165 = arith.constant dense<0.000000e+00> : vector<4x4xf32>
    %647 = tpu.matmul %643, %646, %cst_165 {dimension_numbers = #tpu.dot_dimension_numbers<[1], [0], [0], [1], [0, 0, 1, 1], [], []>} : vector<4x8xf32>, vector<8x4xf32>, vector<4x4xf32> -> vector<4x4xf32>
    %cst_166 = arith.constant dense<0xFF800000> : vector<4xf32>
    %648 = vector.multi_reduction <maximumf>, %647, %cst_166 [1] : vector<4x4xf32> to vector<4xf32>
    %649 = vector.shape_cast %648 : vector<4xf32> to vector<4x1xf32>
    %650 = vector.broadcast %649 : vector<4x1xf32> to vector<4x4xf32>
    %651 = arith.subf %647, %650 : vector<4x4xf32>
    %652 = math.exp %651 : vector<4x4xf32>
    %cst_167 = arith.constant dense<0.000000e+00> : vector<4xf32>
    %653 = vector.multi_reduction <add>, %652, %cst_167 [1] : vector<4x4xf32> to vector<4xf32>
    %654 = vector.shape_cast %653 : vector<4xf32> to vector<4x1xf32>
    %655 = tpu.reciprocal %654 {approx = true} : vector<4x1xf32> -> vector<4x1xf32>
    %656 = vector.broadcast %655 : vector<4x1xf32> to vector<4x4xf32>
    %657 = arith.mulf %652, %656 : vector<4x4xf32>
    %cst_168 = arith.constant dense<0.000000e+00> : vector<4x8xf32>
    %658 = tpu.matmul %657, %645, %cst_168 {dimension_numbers = #tpu.dot_dimension_numbers<[1], [0], [0], [1], [0, 0, 1, 1], [], []>} : vector<4x4xf32>, vector<4x8xf32>, vector<4x8xf32> -> vector<4x8xf32>
    %659 = vector.extract_strided_slice %6 {offsets = [16, 0], sizes = [8, 32], strides = [1, 1]} : vector<32x32xf32> to vector<8x32xf32>
    %cst_169 = arith.constant dense<0.000000e+00> : vector<4x32xf32>
    %660 = tpu.matmul %658, %659, %cst_169 {dimension_numbers = #tpu.dot_dimension_numbers<[1], [0], [0], [1], [0, 0, 1, 1], [], []>} : vector<4x8xf32>, vector<8x32xf32>, vector<4x32xf32> -> vector<4x32xf32>
    %661 = arith.addf %642, %660 : vector<4x32xf32>
    %662 = vector.extract_strided_slice %601 {offsets = [0, 24], sizes = [4, 8], strides = [1, 1]} : vector<4x32xf32> to vector<4x8xf32>
    %663 = vector.extract_strided_slice %602 {offsets = [0, 24], sizes = [4, 8], strides = [1, 1]} : vector<4x32xf32> to vector<4x8xf32>
    %664 = vector.extract_strided_slice %603 {offsets = [0, 24], sizes = [4, 8], strides = [1, 1]} : vector<4x32xf32> to vector<4x8xf32>
    %665 = tpu.transpose %663, [1, 0] : vector<4x8xf32> -> vector<8x4xf32>
    %cst_170 = arith.constant dense<0.000000e+00> : vector<4x4xf32>
    %666 = tpu.matmul %662, %665, %cst_170 {dimension_numbers = #tpu.dot_dimension_numbers<[1], [0], [0], [1], [0, 0, 1, 1], [], []>} : vector<4x8xf32>, vector<8x4xf32>, vector<4x4xf32> -> vector<4x4xf32>
    %cst_171 = arith.constant dense<0xFF800000> : vector<4xf32>
    %667 = vector.multi_reduction <maximumf>, %666, %cst_171 [1] : vector<4x4xf32> to vector<4xf32>
    %668 = vector.shape_cast %667 : vector<4xf32> to vector<4x1xf32>
    %669 = vector.broadcast %668 : vector<4x1xf32> to vector<4x4xf32>
    %670 = arith.subf %666, %669 : vector<4x4xf32>
    %671 = math.exp %670 : vector<4x4xf32>
    %cst_172 = arith.constant dense<0.000000e+00> : vector<4xf32>
    %672 = vector.multi_reduction <add>, %671, %cst_172 [1] : vector<4x4xf32> to vector<4xf32>
    %673 = vector.shape_cast %672 : vector<4xf32> to vector<4x1xf32>
    %674 = tpu.reciprocal %673 {approx = true} : vector<4x1xf32> -> vector<4x1xf32>
    %675 = vector.broadcast %674 : vector<4x1xf32> to vector<4x4xf32>
    %676 = arith.mulf %671, %675 : vector<4x4xf32>
    %cst_173 = arith.constant dense<0.000000e+00> : vector<4x8xf32>
    %677 = tpu.matmul %676, %664, %cst_173 {dimension_numbers = #tpu.dot_dimension_numbers<[1], [0], [0], [1], [0, 0, 1, 1], [], []>} : vector<4x4xf32>, vector<4x8xf32>, vector<4x8xf32> -> vector<4x8xf32>
    %678 = vector.extract_strided_slice %6 {offsets = [24, 0], sizes = [8, 32], strides = [1, 1]} : vector<32x32xf32> to vector<8x32xf32>
    %cst_174 = arith.constant dense<0.000000e+00> : vector<4x32xf32>
    %679 = tpu.matmul %677, %678, %cst_174 {dimension_numbers = #tpu.dot_dimension_numbers<[1], [0], [0], [1], [0, 0, 1, 1], [], []>} : vector<4x8xf32>, vector<8x32xf32>, vector<4x32xf32> -> vector<4x32xf32>
    %680 = arith.addf %661, %679 : vector<4x32xf32>
    %681 = vector.broadcast %7 : vector<1x32xf32> to vector<4x32xf32>
    %682 = arith.addf %680, %681 : vector<4x32xf32>
    %cst_175 = arith.constant dense<0.000000e+00> : vector<4x16xf32>
    %683 = tpu.matmul %682, %8, %cst_175 {dimension_numbers = #tpu.dot_dimension_numbers<[1], [0], [0], [1], [0, 0, 1, 1], [], []>} : vector<4x32xf32>, vector<32x16xf32>, vector<4x16xf32> -> vector<4x16xf32>
    %684 = vector.broadcast %9 : vector<1x16xf32> to vector<4x16xf32>
    %685 = arith.addf %683, %684 : vector<4x16xf32>
    %686 = math.tanh %685 : vector<4x16xf32>
    %cst_176 = arith.constant dense<0.000000e+00> : vector<4x1xf32>
    %687 = tpu.matmul %686, %10, %cst_176 {dimension_numbers = #tpu.dot_dimension_numbers<[1], [0], [0], [1], [0, 0, 1, 1], [], []>} : vector<4x16xf32>, vector<16x1xf32>, vector<4x1xf32> -> vector<4x1xf32>
    %688 = arith.maximumf %588, %687 : vector<4x1xf32>
    %689 = arith.subf %588, %688 : vector<4x1xf32>
    %690 = math.exp %689 : vector<4x1xf32>
    %691 = arith.subf %687, %688 : vector<4x1xf32>
    %692 = math.exp %691 : vector<4x1xf32>
    %693 = arith.mulf %690, %594 : vector<4x1xf32>
    %694 = arith.addf %693, %692 : vector<4x1xf32>
    %695 = vector.broadcast %690 : vector<4x1xf32> to vector<4x32xf32>
    %696 = arith.mulf %695, %599 : vector<4x32xf32>
    %697 = vector.broadcast %692 : vector<4x1xf32> to vector<4x32xf32>
    %698 = arith.mulf %697, %682 : vector<4x32xf32>
    %699 = arith.addf %696, %698 : vector<4x32xf32>
    %700 = vector.extract_strided_slice %5 {offsets = [28, 0], sizes = [4, 96], strides = [1, 1]} : vector<32x96xf32> to vector<4x96xf32>
    %701 = vector.extract_strided_slice %700 {offsets = [0, 0], sizes = [4, 32], strides = [1, 1]} : vector<4x96xf32> to vector<4x32xf32>
    %702 = vector.extract_strided_slice %700 {offsets = [0, 32], sizes = [4, 32], strides = [1, 1]} : vector<4x96xf32> to vector<4x32xf32>
    %703 = vector.extract_strided_slice %700 {offsets = [0, 64], sizes = [4, 32], strides = [1, 1]} : vector<4x96xf32> to vector<4x32xf32>
    %cst_177 = arith.constant 0.000000e+00 : f32
    %704 = vector.broadcast %cst_177 : f32 to vector<4x32xf32>
    %705 = vector.extract_strided_slice %701 {offsets = [0, 0], sizes = [4, 8], strides = [1, 1]} : vector<4x32xf32> to vector<4x8xf32>
    %706 = vector.extract_strided_slice %702 {offsets = [0, 0], sizes = [4, 8], strides = [1, 1]} : vector<4x32xf32> to vector<4x8xf32>
    %707 = vector.extract_strided_slice %703 {offsets = [0, 0], sizes = [4, 8], strides = [1, 1]} : vector<4x32xf32> to vector<4x8xf32>
    %708 = tpu.transpose %706, [1, 0] : vector<4x8xf32> -> vector<8x4xf32>
    %cst_178 = arith.constant dense<0.000000e+00> : vector<4x4xf32>
    %709 = tpu.matmul %705, %708, %cst_178 {dimension_numbers = #tpu.dot_dimension_numbers<[1], [0], [0], [1], [0, 0, 1, 1], [], []>} : vector<4x8xf32>, vector<8x4xf32>, vector<4x4xf32> -> vector<4x4xf32>
    %cst_179 = arith.constant dense<0xFF800000> : vector<4xf32>
    %710 = vector.multi_reduction <maximumf>, %709, %cst_179 [1] : vector<4x4xf32> to vector<4xf32>
    %711 = vector.shape_cast %710 : vector<4xf32> to vector<4x1xf32>
    %712 = vector.broadcast %711 : vector<4x1xf32> to vector<4x4xf32>
    %713 = arith.subf %709, %712 : vector<4x4xf32>
    %714 = math.exp %713 : vector<4x4xf32>
    %cst_180 = arith.constant dense<0.000000e+00> : vector<4xf32>
    %715 = vector.multi_reduction <add>, %714, %cst_180 [1] : vector<4x4xf32> to vector<4xf32>
    %716 = vector.shape_cast %715 : vector<4xf32> to vector<4x1xf32>
    %717 = tpu.reciprocal %716 {approx = true} : vector<4x1xf32> -> vector<4x1xf32>
    %718 = vector.broadcast %717 : vector<4x1xf32> to vector<4x4xf32>
    %719 = arith.mulf %714, %718 : vector<4x4xf32>
    %cst_181 = arith.constant dense<0.000000e+00> : vector<4x8xf32>
    %720 = tpu.matmul %719, %707, %cst_181 {dimension_numbers = #tpu.dot_dimension_numbers<[1], [0], [0], [1], [0, 0, 1, 1], [], []>} : vector<4x4xf32>, vector<4x8xf32>, vector<4x8xf32> -> vector<4x8xf32>
    %721 = vector.extract_strided_slice %6 {offsets = [0, 0], sizes = [8, 32], strides = [1, 1]} : vector<32x32xf32> to vector<8x32xf32>
    %cst_182 = arith.constant dense<0.000000e+00> : vector<4x32xf32>
    %722 = tpu.matmul %720, %721, %cst_182 {dimension_numbers = #tpu.dot_dimension_numbers<[1], [0], [0], [1], [0, 0, 1, 1], [], []>} : vector<4x8xf32>, vector<8x32xf32>, vector<4x32xf32> -> vector<4x32xf32>
    %723 = arith.addf %704, %722 : vector<4x32xf32>
    %724 = vector.extract_strided_slice %701 {offsets = [0, 8], sizes = [4, 8], strides = [1, 1]} : vector<4x32xf32> to vector<4x8xf32>
    %725 = vector.extract_strided_slice %702 {offsets = [0, 8], sizes = [4, 8], strides = [1, 1]} : vector<4x32xf32> to vector<4x8xf32>
    %726 = vector.extract_strided_slice %703 {offsets = [0, 8], sizes = [4, 8], strides = [1, 1]} : vector<4x32xf32> to vector<4x8xf32>
    %727 = tpu.transpose %725, [1, 0] : vector<4x8xf32> -> vector<8x4xf32>
    %cst_183 = arith.constant dense<0.000000e+00> : vector<4x4xf32>
    %728 = tpu.matmul %724, %727, %cst_183 {dimension_numbers = #tpu.dot_dimension_numbers<[1], [0], [0], [1], [0, 0, 1, 1], [], []>} : vector<4x8xf32>, vector<8x4xf32>, vector<4x4xf32> -> vector<4x4xf32>
    %cst_184 = arith.constant dense<0xFF800000> : vector<4xf32>
    %729 = vector.multi_reduction <maximumf>, %728, %cst_184 [1] : vector<4x4xf32> to vector<4xf32>
    %730 = vector.shape_cast %729 : vector<4xf32> to vector<4x1xf32>
    %731 = vector.broadcast %730 : vector<4x1xf32> to vector<4x4xf32>
    %732 = arith.subf %728, %731 : vector<4x4xf32>
    %733 = math.exp %732 : vector<4x4xf32>
    %cst_185 = arith.constant dense<0.000000e+00> : vector<4xf32>
    %734 = vector.multi_reduction <add>, %733, %cst_185 [1] : vector<4x4xf32> to vector<4xf32>
    %735 = vector.shape_cast %734 : vector<4xf32> to vector<4x1xf32>
    %736 = tpu.reciprocal %735 {approx = true} : vector<4x1xf32> -> vector<4x1xf32>
    %737 = vector.broadcast %736 : vector<4x1xf32> to vector<4x4xf32>
    %738 = arith.mulf %733, %737 : vector<4x4xf32>
    %cst_186 = arith.constant dense<0.000000e+00> : vector<4x8xf32>
    %739 = tpu.matmul %738, %726, %cst_186 {dimension_numbers = #tpu.dot_dimension_numbers<[1], [0], [0], [1], [0, 0, 1, 1], [], []>} : vector<4x4xf32>, vector<4x8xf32>, vector<4x8xf32> -> vector<4x8xf32>
    %740 = vector.extract_strided_slice %6 {offsets = [8, 0], sizes = [8, 32], strides = [1, 1]} : vector<32x32xf32> to vector<8x32xf32>
    %cst_187 = arith.constant dense<0.000000e+00> : vector<4x32xf32>
    %741 = tpu.matmul %739, %740, %cst_187 {dimension_numbers = #tpu.dot_dimension_numbers<[1], [0], [0], [1], [0, 0, 1, 1], [], []>} : vector<4x8xf32>, vector<8x32xf32>, vector<4x32xf32> -> vector<4x32xf32>
    %742 = arith.addf %723, %741 : vector<4x32xf32>
    %743 = vector.extract_strided_slice %701 {offsets = [0, 16], sizes = [4, 8], strides = [1, 1]} : vector<4x32xf32> to vector<4x8xf32>
    %744 = vector.extract_strided_slice %702 {offsets = [0, 16], sizes = [4, 8], strides = [1, 1]} : vector<4x32xf32> to vector<4x8xf32>
    %745 = vector.extract_strided_slice %703 {offsets = [0, 16], sizes = [4, 8], strides = [1, 1]} : vector<4x32xf32> to vector<4x8xf32>
    %746 = tpu.transpose %744, [1, 0] : vector<4x8xf32> -> vector<8x4xf32>
    %cst_188 = arith.constant dense<0.000000e+00> : vector<4x4xf32>
    %747 = tpu.matmul %743, %746, %cst_188 {dimension_numbers = #tpu.dot_dimension_numbers<[1], [0], [0], [1], [0, 0, 1, 1], [], []>} : vector<4x8xf32>, vector<8x4xf32>, vector<4x4xf32> -> vector<4x4xf32>
    %cst_189 = arith.constant dense<0xFF800000> : vector<4xf32>
    %748 = vector.multi_reduction <maximumf>, %747, %cst_189 [1] : vector<4x4xf32> to vector<4xf32>
    %749 = vector.shape_cast %748 : vector<4xf32> to vector<4x1xf32>
    %750 = vector.broadcast %749 : vector<4x1xf32> to vector<4x4xf32>
    %751 = arith.subf %747, %750 : vector<4x4xf32>
    %752 = math.exp %751 : vector<4x4xf32>
    %cst_190 = arith.constant dense<0.000000e+00> : vector<4xf32>
    %753 = vector.multi_reduction <add>, %752, %cst_190 [1] : vector<4x4xf32> to vector<4xf32>
    %754 = vector.shape_cast %753 : vector<4xf32> to vector<4x1xf32>
    %755 = tpu.reciprocal %754 {approx = true} : vector<4x1xf32> -> vector<4x1xf32>
    %756 = vector.broadcast %755 : vector<4x1xf32> to vector<4x4xf32>
    %757 = arith.mulf %752, %756 : vector<4x4xf32>
    %cst_191 = arith.constant dense<0.000000e+00> : vector<4x8xf32>
    %758 = tpu.matmul %757, %745, %cst_191 {dimension_numbers = #tpu.dot_dimension_numbers<[1], [0], [0], [1], [0, 0, 1, 1], [], []>} : vector<4x4xf32>, vector<4x8xf32>, vector<4x8xf32> -> vector<4x8xf32>
    %759 = vector.extract_strided_slice %6 {offsets = [16, 0], sizes = [8, 32], strides = [1, 1]} : vector<32x32xf32> to vector<8x32xf32>
    %cst_192 = arith.constant dense<0.000000e+00> : vector<4x32xf32>
    %760 = tpu.matmul %758, %759, %cst_192 {dimension_numbers = #tpu.dot_dimension_numbers<[1], [0], [0], [1], [0, 0, 1, 1], [], []>} : vector<4x8xf32>, vector<8x32xf32>, vector<4x32xf32> -> vector<4x32xf32>
    %761 = arith.addf %742, %760 : vector<4x32xf32>
    %762 = vector.extract_strided_slice %701 {offsets = [0, 24], sizes = [4, 8], strides = [1, 1]} : vector<4x32xf32> to vector<4x8xf32>
    %763 = vector.extract_strided_slice %702 {offsets = [0, 24], sizes = [4, 8], strides = [1, 1]} : vector<4x32xf32> to vector<4x8xf32>
    %764 = vector.extract_strided_slice %703 {offsets = [0, 24], sizes = [4, 8], strides = [1, 1]} : vector<4x32xf32> to vector<4x8xf32>
    %765 = tpu.transpose %763, [1, 0] : vector<4x8xf32> -> vector<8x4xf32>
    %cst_193 = arith.constant dense<0.000000e+00> : vector<4x4xf32>
    %766 = tpu.matmul %762, %765, %cst_193 {dimension_numbers = #tpu.dot_dimension_numbers<[1], [0], [0], [1], [0, 0, 1, 1], [], []>} : vector<4x8xf32>, vector<8x4xf32>, vector<4x4xf32> -> vector<4x4xf32>
    %cst_194 = arith.constant dense<0xFF800000> : vector<4xf32>
    %767 = vector.multi_reduction <maximumf>, %766, %cst_194 [1] : vector<4x4xf32> to vector<4xf32>
    %768 = vector.shape_cast %767 : vector<4xf32> to vector<4x1xf32>
    %769 = vector.broadcast %768 : vector<4x1xf32> to vector<4x4xf32>
    %770 = arith.subf %766, %769 : vector<4x4xf32>
    %771 = math.exp %770 : vector<4x4xf32>
    %cst_195 = arith.constant dense<0.000000e+00> : vector<4xf32>
    %772 = vector.multi_reduction <add>, %771, %cst_195 [1] : vector<4x4xf32> to vector<4xf32>
    %773 = vector.shape_cast %772 : vector<4xf32> to vector<4x1xf32>
    %774 = tpu.reciprocal %773 {approx = true} : vector<4x1xf32> -> vector<4x1xf32>
    %775 = vector.broadcast %774 : vector<4x1xf32> to vector<4x4xf32>
    %776 = arith.mulf %771, %775 : vector<4x4xf32>
    %cst_196 = arith.constant dense<0.000000e+00> : vector<4x8xf32>
    %777 = tpu.matmul %776, %764, %cst_196 {dimension_numbers = #tpu.dot_dimension_numbers<[1], [0], [0], [1], [0, 0, 1, 1], [], []>} : vector<4x4xf32>, vector<4x8xf32>, vector<4x8xf32> -> vector<4x8xf32>
    %778 = vector.extract_strided_slice %6 {offsets = [24, 0], sizes = [8, 32], strides = [1, 1]} : vector<32x32xf32> to vector<8x32xf32>
    %cst_197 = arith.constant dense<0.000000e+00> : vector<4x32xf32>
    %779 = tpu.matmul %777, %778, %cst_197 {dimension_numbers = #tpu.dot_dimension_numbers<[1], [0], [0], [1], [0, 0, 1, 1], [], []>} : vector<4x8xf32>, vector<8x32xf32>, vector<4x32xf32> -> vector<4x32xf32>
    %780 = arith.addf %761, %779 : vector<4x32xf32>
    %781 = vector.broadcast %7 : vector<1x32xf32> to vector<4x32xf32>
    %782 = arith.addf %780, %781 : vector<4x32xf32>
    %cst_198 = arith.constant dense<0.000000e+00> : vector<4x16xf32>
    %783 = tpu.matmul %782, %8, %cst_198 {dimension_numbers = #tpu.dot_dimension_numbers<[1], [0], [0], [1], [0, 0, 1, 1], [], []>} : vector<4x32xf32>, vector<32x16xf32>, vector<4x16xf32> -> vector<4x16xf32>
    %784 = vector.broadcast %9 : vector<1x16xf32> to vector<4x16xf32>
    %785 = arith.addf %783, %784 : vector<4x16xf32>
    %786 = math.tanh %785 : vector<4x16xf32>
    %cst_199 = arith.constant dense<0.000000e+00> : vector<4x1xf32>
    %787 = tpu.matmul %786, %10, %cst_199 {dimension_numbers = #tpu.dot_dimension_numbers<[1], [0], [0], [1], [0, 0, 1, 1], [], []>} : vector<4x16xf32>, vector<16x1xf32>, vector<4x1xf32> -> vector<4x1xf32>
    %788 = arith.maximumf %688, %787 : vector<4x1xf32>
    %789 = arith.subf %688, %788 : vector<4x1xf32>
    %790 = math.exp %789 : vector<4x1xf32>
    %791 = arith.subf %787, %788 : vector<4x1xf32>
    %792 = math.exp %791 : vector<4x1xf32>
    %793 = arith.mulf %790, %694 : vector<4x1xf32>
    %794 = arith.addf %793, %792 : vector<4x1xf32>
    %795 = vector.broadcast %790 : vector<4x1xf32> to vector<4x32xf32>
    %796 = arith.mulf %795, %699 : vector<4x32xf32>
    %797 = vector.broadcast %792 : vector<4x1xf32> to vector<4x32xf32>
    %798 = arith.mulf %797, %782 : vector<4x32xf32>
    %799 = arith.addf %796, %798 : vector<4x32xf32>
    %800 = tpu.reciprocal %794 {approx = true} : vector<4x1xf32> -> vector<4x1xf32>
    %801 = vector.broadcast %800 : vector<4x1xf32> to vector<4x32xf32>
    %802 = arith.mulf %799, %801 : vector<4x32xf32>
    %c0_200 = arith.constant 0 : index
    %c0_201 = arith.constant 0 : index
    %803 = vector.load %arg8[%c0_200, %c0_201] : memref<4x32xf32, #tpu.memory_space<vmem>>, vector<4x32xf32>
    tpu.vector_store %arg8[%c0_200, %c0_201], %802 {strides = array<i32>} : memref<4x32xf32, #tpu.memory_space<vmem>>, vector<4x32xf32>,
    return
  }
}

</mosaic_0001>

<bundles_post_ra>
// kernel: tpu_custom_call.1
= control target key start
LH: loop header
LB: loop body
LE: loop exit
PB: predicated region body
PF: predicated region fallthrough
CT: control target
= control target key end

     0   :  { %13 = vsyncpa [#allocation3], 0  ;;  %s4912_s0 = inlined_call_operand.vmem [shape: f32[32,32], index: 0, kind: input, shape index: {}]   ;;  %s4913_s1 = inlined_call_operand.hbm [shape: f32[32,96], index: 1, kind: input, shape index: {}]   ;;  %s4914_s2 = inlined_call_operand.vmem [shape: f32[1,96], index: 2, kind: input, shape index: {}]   ;;  %s4915_s3 = inlined_call_operand.hbm [shape: f32[32,32], index: 3, kind: input, shape index: {}]   ;;  %s4916_s4 = inlined_call_operand.vmem [shape: f32[1,32], index: 4, kind: input, shape index: {}]   ;;  %s4917_s5 = inlined_call_operand.vmem [shape: f32[32,16], index: 5, kind: input, shape index: {}]   ;;  %s4918_s6 = inlined_call_operand.vmem [shape: f32[1,16], index: 6, kind: input, shape index: {}]   ;;  %s4919_s7 = inlined_call_operand.vmem [shape: f32[16,1], index: 7, kind: input, shape index: {}]   ;;  %s4920_s8 = inlined_call_operand.hbm [shape: f32[4,32], index: 8, kind: output, shape index: {}]  }
   0x1   :  { %14 = vsyncpa [#allocation6], 0 }
   0x2   :  { %15 = vsyncpa [#allocation4], 0  ;;  %s22_s29 = sshll.u32 %s4913_s1, 4  ;;  %s4027_s30 = smov [#allocation2]   ;;  %s23_s29 = int_to_ptr.hbm [resolvable:$true] %s22_s29 }
   0x3   :  { %s24_s9 = sshll.u32 %s4027_s30, 4  ;;  %s37_s12 = sshll.u32 %s4915_s3, 4  ;;  %s25_s9 = int_to_ptr.vmem [resolvable:$true] %s24_s9  ;;  %s38_s12 = int_to_ptr.hbm [resolvable:$true] %s37_s12 }
   0x4   :  { %s4028_s13 = smov 128   ;;  %s4029_s14 = smov 8  }
   0x5   :  { %30 = dma.hbm_to_vmem [thread:$0]  %s23_s29, 512, %s25_s9, [#allocation3], %s4028_s13, %s4028_s13, %s4029_s14  }
   0x6   :  { %s4030_s15 = smov [#allocation5]  }
   0x7   :  { %s39_s16 = sshll.u32 %s4030_s15, 4  ;;  %s40_s16 = int_to_ptr.vmem [resolvable:$true] %s39_s16 }
   0x8   :  { %45 = dma.hbm_to_vmem [thread:$0]  %s38_s12, 512, %s40_s16, [#allocation6], %s4028_s13, %s4028_s13, %s4029_s14  }
   0x9   :  { %4021 = dma.done.wait [#allocation3], 512  }
   0xa   :  { %4022 = vsyncadd [#allocation3], 4294966784 }
   0xb   :  { %4023 = dma.done.wait [#allocation6], 512  }
   0xc   :  { %4024 = vsyncadd [#allocation6], 4294966784  ;;  %v69_v0 = vld [vmem:[#allocation2 + $0x18] sm:$0xff]  ;;  %v68_v1 = vld [vmem:[#allocation2 + $0x10] sm:$0xff]  ;;  %vm74_vm0 = vcmask 261120   ;;  %s4031_s19 = smov 64  }
   0xd   :  { %99 = vmatpush.msra.mxu0 %v69_v0  ;;  %v67_v2 = vld [vmem:[#allocation2 + $0x8] sm:$0xff]  ;;  %v66_v3 = vld [vmem:[#allocation2] sm:$0xff]  ;;  %s4032_s20 = smov 120   ;;  %s4033_s21 = smov 96   ;;  %vm174_vm1 = vcmask 1043456   ;;  %vm131_vm2 = vcmask 64512  }
   0xe   :  { %v62_v4 = vld [vmem:[%s4912_s0] sm:$0xff]  ;;  %s4034_s22 = smov 56   ;;  %s4035_s23 = smov 88   ;;  %vm156_vm3 = vcmask 27648   ;;  %vm170_vm4 = vcmask 31744   ;;  %v4145_v38 = vld [vmem:[#allocation5 + $0x8] sm:$0xff] }
   0xf   :  { %100 = vmatpush.msra.mxu0 %v68_v1  ;;  %v4102_v5 = vld [vmem:[%s4914_s2] ss:$0 sm:$0xff]  ;;  %s4036_s24 = smov 112   ;;  %s4037_s25 = smov 80   ;;  %v4171_v58 = vld [vmem:[#allocation5 + $0x10] sm:$0xff]  ;;  %vm520_vm5 = vcmask 130048  }
  0x10   :  { %s4038_s26 = smov 72   ;;  %s4039_s27 = smov 104   ;;  %v4142_v37 = vld [vmem:[#allocation5] sm:$0xff]  ;;  %vm3539_vm6 = vcmask 257024  }
  0x11   :  { %101 = vmatpush.msra.mxu0 %v67_v2  ;;  %s4040_s28 = smov 40   ;;  %s4041_s29 = smov 48   ;;  %v4178_v2 = vld [vmem:[#allocation5 + $0x18] sm:$0xff] }
  0x13   :  { %102 = vmatpush.msra.mxu0 %v66_v3 }
  0x14   :  { %3559 = vmatmul.msk.f32.vlgmr.msra.gmra.mxu0 %vm74_vm0, %v62_v4 }
  0x91   :  { %v104_v6 = vpop.f32.mrf.mxu0 }
  0x92   :  { %v4105_v7 = vadd.f32 %v4102_v5, %v104_v6 }
  0x94   :  { %168 = vrot.lane.b32.xlu2 %v4105_v7, %s4031_s19  ;;  %197 = vrot.lane.b32.xlu1 %v4105_v7, %s4032_s20  ;;  %v4155_v45 = vrot.slane %v4105_v7, 4 }
  0x95   :  { %129 = vrot.lane.b32.xlu0 %v4105_v7, %s4033_s21 }
  0x9c   :  { %236 = vrot.lane.b32.xlu2 %v4105_v7, %s4034_s22 }
  0x9d   :  { %199 = vrot.lane.b32.xlu0 %v4105_v7, %s4035_s23 }
  0xee   :  { %v169_v8 = vpop.permute.xlu2 %168 }
  0xef   :  { %3565 = vmatpush.msk.msra.mxu2 %vm174_vm1, %v169_v8  ;;  %v4191_v8 = vld [vmem:[%s4917_s5 + $0x18] sm:$0xff] }
  0xf6   :  { %v237_v9 = vpop.permute.xlu2 %236 }
  0xf7   :  { %3569 = vmatpush.msk.msrb.mxu2 %vm174_vm1, %v237_v9  ;;  %v4197_v9 = vld [vmem:[%s4917_s5 + $0x10] sm:$0xff] }
 0x106   :  { %v198_v12 = vpop.permute.xlu1 %197 }
 0x107   :  { %v130_v10 = vpop.permute.xlu0 %129 }
 0x108   :  { %3563 = vmatpush.xpose.msk.msra.mxu1 %vm131_vm2, %v130_v10  ;;  %v4203_v10 = vld [vmem:[%s4917_s5 + $0x8] sm:$0xff] }
 0x10b   :  { %3564 = vmatmul.msk.f32.vlgmr.msra.gmra.mxu1 %vm131_vm2, %v4105_v7 }
 0x10c   :  { %281 = vmatpush.msrb.mxu1 %v4145_v38 }
 0x10f   :  { %v200_v11 = vpop.permute.xlu0 %199 }
 0x110   :  { %3567 = vmatpush.xpose.msk.msra.mxu3 %vm131_vm2, %v200_v11  ;;  %v4209_v11 = vld [vmem:[%s4917_s5] sm:$0xff] }
 0x113   :  { %3568 = vmatmul.msk.f32.vlgmr.msra.gmra.mxu3 %vm131_vm2, %v198_v12 }
 0x114   :  { %304 = vmatpush.msrb.mxu3 %v4142_v37 }
 0x116   :  { %393 = vmatpush.msra.mxu3 %v4171_v58 }
 0x188   :  { %v153_v13 = vpop.f32.mrf.mxu1 }
 0x189   :  { %v157_v14 = vsel %vm156_vm3, %v153_v13, -inf }
 0x18a   :  { %158 = vmax.xlane.f32.xlu1 %v157_v14 }
 0x196   :  { %v222_v15 = vpop.f32.mrf.mxu3 }
 0x197   :  { %v225_v16 = vsel %vm156_vm3, %v222_v15, -inf }
 0x198   :  { %226 = vmax.xlane.f32.xlu2 %v225_v16  ;;  %v4215_v16 = vld [vmem:[%s4916_s4] ss:$0 sm:$0xff] }
 0x1a3   :  { %309 = vrot.lane.b32.xlu1 %v4105_v7, %s4036_s24 }
 0x1b0   :  { %311 = vrot.lane.b32.xlu2 %v4105_v7, %s4037_s25 }
 0x1fd   :  { %v159_v17 = vpop.xlane.xlu1 %158 }
 0x1fe   :  { %v160_v18 = vsub.f32 %v153_v13, %v159_v17 }
 0x200   :  { %v161_v19 = vmul.f32 1.442695, %v160_v18 }
 0x202   :  { %3762 = vpow2.f32 %v161_v19 }
 0x208   :  { %v3763_v20 = vpop.eup %3762 }
 0x209   :  { %v163_v21 = vsel %vm156_vm3, %v3763_v20, 0.0 }
 0x20a   :  { %164 = vadd.xlane.f32.xlu2 %v163_v21 }
 0x20b   :  { %v227_v22 = vpop.xlane.xlu2 %226 }
 0x20c   :  { %v228_v23 = vsub.f32 %v222_v15, %v227_v22  ;;  %v4228_v22 = vld [vmem:[%s4919_s7 + $0x8] sm:$0xff] }
 0x20e   :  { %v229_v24 = vmul.f32 1.442695, %v228_v23  ;;  %v4233_v23 = vld [vmem:[%s4919_s7] sm:$0xff] }
 0x210   :  { %3764 = vpow2.f32 %v229_v24 }
 0x213   :  { %v312_v27 = vpop.permute.xlu2 %311 }
 0x215   :  { %v310_v35 = vpop.permute.xlu1 %309 }
 0x216   :  { %v3765_v25 = vpop.eup %3764 }
 0x217   :  { %v231_v26 = vsel %vm156_vm3, %v3765_v25, 0.0 }
 0x218   :  { %232 = vadd.xlane.f32.xlu0 %v231_v26 }
 0x222   :  { %401 = vrot.lane.b32.xlu2 %v4105_v7, %s4038_s26 }
 0x22c   :  { %399 = vrot.lane.b32.xlu0 %v4105_v7, %s4039_s27 }
 0x27d   :  { %v165_v28 = vpop.xlane.xlu2 %164 }
 0x27e   :  { %3766 = vrcp.f32 %v165_v28  ;;  %v4240_v28 = vld [vmem:[%s4918_s6] ss:$0 sm:$0xff] }
 0x284   :  { %v3767_v29 = vpop.eup %3766 }
 0x285   :  { %v167_v30 = vmul.f32 %v3767_v29, %v3763_v20  ;;  %v402_v34 = vpop.permute.xlu2 %401 }
 0x287   :  { %3566 = vmatmul.msk.f32.vlgmr.msra.gmra.mxu2 %vm170_vm4, %v167_v30 }
 0x288   :  { %3573 = vmatpush.xpose.msk.msra.mxu2 %vm131_vm2, %v312_v27 }
 0x28b   :  { %v233_v31 = vpop.xlane.xlu0 %232 }
 0x28c   :  { %3768 = vrcp.f32 %v233_v31 }
 0x292   :  { %v3769_v32 = vpop.eup %3768 }
 0x293   :  { %v235_v33 = vmul.f32 %v3769_v32, %v3765_v25 }
 0x295   :  { %3570 = vmatmul.msk.f32.vlgmr.msrb.gmra.mxu2 %vm170_vm4, %v235_v33  ;;  %v63_v33 = vld [vmem:[%s4912_s0 + $0x8] sm:$0xff] }
 0x296   :  { %3578 = vmatpush.xpose.msk.msrb.mxu2 %vm131_vm2, %v402_v34  ;;  %3560 = vmatmul.msk.f32.gmra.mxu0 %vm74_vm0, %v63_v33 }
 0x29d   :  { %3574 = vmatmul.msk.f32.vlgmr.msra.gmra.mxu2 %vm131_vm2, %v310_v35  ;;  %v64_v35 = vld [vmem:[%s4912_s0 + $0x10] sm:$0xff] }
 0x29e   :  { %v400_v36 = vpop.permute.xlu0 %399  ;;  %511 = vmatpush.msra.mxu2 %v4191_v8  ;;  %3561 = vmatmul.msk.f32.gmra.mxu0 %vm74_vm0, %v64_v35 }
 0x2a0   :  { %512 = vmatpush.msra.mxu2 %v4197_v9 }
 0x2a2   :  { %513 = vmatpush.msra.mxu2 %v4203_v10 }
 0x2a4   :  { %514 = vmatpush.msra.mxu2 %v4209_v11 }
 0x2a5   :  { %3579 = vmatmul.msk.f32.vlgmr.msrb.gmra.mxu2 %vm131_vm2, %v400_v36  ;;  %v65_v36 = vld [vmem:[%s4912_s0 + $0x18] sm:$0xff] }
 0x2a6   :  { %3562 = vmatmul.msk.f32.gmra.mxu0 %vm74_vm0, %v65_v36 }
 0x30a   :  { %v194_v39 = vpop.f32.mrf.mxu2 }
 0x30b   :  { %3572 = vmatmul.msk.f32.vlgmr.msrb.gmra.mxu3 %vm131_vm2, %v194_v39 }
 0x30c   :  { %483 = vmatpush.msrb.mxu3 %v4178_v2 }
 0x318   :  { %v260_v40 = vpop.f32.mrf.mxu2 }
 0x319   :  { %3571 = vmatmul.msk.f32.vlgmr.msrb.gmra.mxu1 %vm131_vm2, %v260_v40 }
 0x320   :  { %v334_v41 = vpop.f32.mrf.mxu2 }
 0x321   :  { %v337_v42 = vsel %vm156_vm3, %v334_v41, -inf }
 0x322   :  { %338 = vmax.xlane.f32.xlu2 %v337_v42 }
 0x328   :  { %v424_v43 = vpop.f32.mrf.mxu2 }
 0x329   :  { %v427_v44 = vsel %vm156_vm3, %v424_v43, -inf }
 0x32a   :  { %428 = vmax.xlane.f32.xlu1 %v427_v44 }
 0x343   :  { %438 = vrot.lane.b32.xlu1 %v4105_v7, %s4040_s28 }
 0x34b   :  { %582 = vrot.lane.b32.xlu1 %v4155_v45, %s4031_s19 }
 0x353   :  { %813 = vrot.lane.b32.xlu1 %v4155_v45, %s4038_s26 }
 0x35b   :  { %811 = vrot.lane.b32.xlu1 %v4155_v45, %s4039_s27 }
 0x38e   :  { %v306_v12 = vpop.f32.mrf.mxu3 }
 0x395   :  { %v339_v46 = vpop.xlane.xlu2 %338 }
 0x396   :  { %v340_v47 = vsub.f32 %v334_v41, %v339_v46  ;;  %v283_v3 = vpop.f32.mrf.mxu1 }
 0x397   :  { %v307_v14 = vadd.f32 %v306_v12, %v283_v3 }
 0x398   :  { %v341_v48 = vmul.f32 1.442695, %v340_v47 }
 0x39a   :  { %3770 = vpow2.f32 %v341_v48 }
 0x39d   :  { %v429_v49 = vpop.xlane.xlu1 %428 }
 0x39e   :  { %v430_v50 = vsub.f32 %v424_v43, %v429_v49  ;;  %v107_v43 = vpop.f32.mrf.mxu0 }
 0x39f   :  { %v4267_v44 = vadd.f32 %v4102_v5, %v107_v43 }
 0x3a0   :  { %v3771_v51 = vpop.eup %3770  ;;  %v431_v52 = vmul.f32 1.442695, %v430_v50 }
 0x3a1   :  { %v343_v53 = vsel %vm156_vm3, %v3771_v51, 0.0 }
 0x3a2   :  { %3772 = vpow2.f32 %v431_v52  ;;  %344 = vadd.xlane.f32.xlu0 %v343_v53 }
 0x3a6   :  { %v4274_v49 = vpop.f32.mrf.mxu0 }
 0x3a8   :  { %v3773_v54 = vpop.eup %3772 }
 0x3a9   :  { %v433_v55 = vsel %vm156_vm3, %v3773_v54, 0.0 }
 0x3aa   :  { %434 = vadd.xlane.f32.xlu2 %v433_v55 }
 0x3ae   :  { %v4276_v50 = vpop.f32.mrf.mxu0 }
 0x3b5   :  { %v439_v56 = vpop.permute.xlu1 %438 }
 0x3b6   :  { %545 = vrot.lane.b32.xlu0 %v4155_v45, %s4033_s21 }
 0x3bd   :  { %v583_v57 = vpop.permute.xlu1 %582 }
 0x3be   :  { %3587 = vmatpush.msk.msrb.mxu0 %vm174_vm1, %v583_v57 }
 0x3c0   :  { %716 = vmatpush.msra.mxu0 %v4142_v37 }
 0x3c2   :  { %348 = vrot.lane.b32.xlu2 %v4105_v7, %s4041_s29 }
 0x3c5   :  { %v814_v42 = vpop.permute.xlu1 %813 }
 0x3cd   :  { %v812_v52 = vpop.permute.xlu1 %811 }
 0x415   :  { %v345_v59 = vpop.xlane.xlu0 %344 }
 0x416   :  { %3774 = vrcp.f32 %v345_v59 }
 0x41c   :  { %v3775_v61 = vpop.eup %3774 }
 0x41d   :  { %v435_v60 = vpop.xlane.xlu2 %434  ;;  %v347_v62 = vmul.f32 %v3775_v61, %v3771_v51 }
 0x41e   :  { %3776 = vrcp.f32 %v435_v60 }
 0x424   :  { %v3777_v0 = vpop.eup %3776 }
 0x425   :  { %v349_v63 = vpop.permute.xlu2 %348  ;;  %v437_v1 = vmul.f32 %v3777_v0, %v3773_v54 }
 0x426   :  { %3575 = vmatpush.msk.msra.mxu1 %vm174_vm1, %v349_v63 }
 0x427   :  { %3576 = vmatmul.msk.f32.vlgmr.msra.gmra.mxu1 %vm170_vm4, %v347_v62 }
 0x428   :  { %3580 = vmatpush.msk.msrb.mxu1 %vm174_vm1, %v439_v56  ;;  %v546_v6 = vpop.permute.xlu0 %545 }
 0x42a   :  { %538 = vmatpush.msra.mxu1 %v4228_v22 }
 0x42c   :  { %539 = vmatpush.msra.mxu1 %v4233_v23 }
 0x42f   :  { %3581 = vmatmul.msk.f32.vlgmr.msrb.gmra.mxu1 %vm170_vm4, %v437_v1 }
 0x4a4   :  { %v372_v4 = vpop.f32.mrf.mxu1 }
 0x4a5   :  { %3577 = vmatmul.msk.f32.vlgmr.msra.gmra.mxu3 %vm131_vm2, %v372_v4 }
 0x4a6   :  { %3585 = vmatpush.xpose.msk.msra.mxu3 %vm131_vm2, %v546_v6 }
 0x4ac   :  { %v462_v7 = vpop.f32.mrf.mxu1 }
 0x4ad   :  { %3582 = vmatmul.msk.f32.vlgmr.msrb.gmra.mxu3 %vm131_vm2, %v462_v7 }
 0x4ae   :  { %693 = vmatpush.msrb.mxu3 %v4145_v38 }
 0x4b5   :  { %3586 = vmatmul.msk.f32.vlgmr.msra.gmra.mxu3 %vm131_vm2, %v4155_v45 }
 0x4b6   :  { %805 = vmatpush.msra.mxu3 %v4171_v58 }
 0x528   :  { %v395_v13 = vpop.f32.mrf.mxu3 }
 0x529   :  { %v398_v15 = vadd.f32 %v395_v13, %v307_v14 }
 0x530   :  { %v485_v17 = vpop.f32.mrf.mxu3 }
 0x531   :  { %v488_v18 = vadd.f32 %v485_v17, %v398_v15 }
 0x533   :  { %v4218_v19 = vadd.f32 %v4215_v16, %v488_v18 }
 0x535   :  { %3583 = vmatmul.msk.f32.vlgmr.msra.gmra.mxu2 %vm74_vm0, %v4218_v19 }
 0x538   :  { %v568_v20 = vpop.f32.mrf.mxu3 }
 0x539   :  { %v571_v21 = vsel %vm156_vm3, %v568_v20, -inf }
 0x53a   :  { %572 = vmax.xlane.f32.xlu2 %v571_v21 }
 0x552   :  { %611 = vrot.lane.b32.xlu2 %v4155_v45, %s4035_s23 }
 0x5ad   :  { %v573_v24 = vpop.xlane.xlu2 %572 }
 0x5ae   :  { %v574_v25 = vsub.f32 %v568_v20, %v573_v24 }
 0x5b0   :  { %v575_v26 = vmul.f32 1.442695, %v574_v25 }
 0x5b2   :  { %3778 = vpow2.f32 %v575_v26 }
 0x5b5   :  { %v612_v27 = vpop.permute.xlu2 %611 }
 0x5b6   :  { %3589 = vmatpush.xpose.msk.msrb.mxu2 %vm131_vm2, %v612_v27 }
 0x5b8   :  { %v3779_v29 = vpop.eup %3778  ;;  %v516_v30 = vpop.f32.mrf.mxu2 }
 0x5b9   :  { %v517_v31 = vadd.f32 %v4240_v28, %v516_v30  ;;  %v577_v32 = vsel %vm156_vm3, %v3779_v29, 0.0 }
 0x5ba   :  { %578 = vadd.xlane.f32.xlu0 %v577_v32 }
 0x5bb   :  { %3780 = vtanh.f32 %v517_v31 }
 0x5c1   :  { %v3781_v34 = vpop.eup %3780 }
 0x5c2   :  { %3584 = vmatmul.msk.f32.vlgmr.msra.gmra.mxu1 %vm520_vm5, %v3781_v34 }
 0x5ce   :  { %609 = vrot.lane.b32.xlu0 %v4155_v45, %s4032_s20 }
 0x5d6   :  { %723 = vrot.lane.b32.xlu0 %v4155_v45, %s4037_s25 }
 0x5de   :  { %850 = vrot.lane.b32.xlu0 %v4155_v45, %s4040_s28 }
 0x5e6   :  { %971 = vrot.lane.b32.xlu0 %v4267_v44, %s4033_s21 }
 0x62d   :  { %v579_v39 = vpop.xlane.xlu0 %578 }
 0x62e   :  { %3782 = vrcp.f32 %v579_v39 }
 0x634   :  { %v3783_v40 = vpop.eup %3782 }
 0x635   :  { %v581_v41 = vmul.f32 %v3783_v40, %v3779_v29 }
 0x637   :  { %3588 = vmatmul.msk.f32.vlgmr.msrb.gmra.mxu0 %vm170_vm4, %v581_v41 }
 0x638   :  { %3600 = vmatpush.xpose.msk.msrb.mxu0 %vm131_vm2, %v814_v42 }
 0x640   :  { %v610_v46 = vpop.permute.xlu0 %609 }
 0x641   :  { %3590 = vmatmul.msk.f32.vlgmr.msrb.gmra.mxu2 %vm131_vm2, %v610_v46 }
 0x648   :  { %v724_v47 = vpop.permute.xlu0 %723 }
 0x649   :  { %3595 = vmatpush.xpose.msk.msra.mxu2 %vm131_vm2, %v724_v47  ;;  %v4328_v47 = vrot.slane %v4267_v44, 4 }
 0x650   :  { %v851_v48 = vpop.permute.xlu0 %850 }
 0x651   :  { %3602 = vmatpush.msk.msrb.mxu2 %vm174_vm1, %v851_v48  ;;  %v4332_v48 = vpop.f32.mrf.mxu1 }
 0x658   :  { %v972_v59 = vpop.permute.xlu0 %971 }
 0x6b4   :  { %v606_v51 = vpop.f32.mrf.mxu0 }
 0x6b5   :  { %3594 = vmatmul.msk.f32.vlgmr.msra.gmra.mxu0 %vm131_vm2, %v606_v51 }
 0x6b6   :  { %943 = vmatpush.msra.mxu0 %v4228_v22 }
 0x6b8   :  { %944 = vmatpush.msra.mxu0 %v4233_v23 }
 0x6bd   :  { %3601 = vmatmul.msk.f32.vlgmr.msrb.gmra.mxu0 %vm131_vm2, %v812_v52 }
 0x6c4   :  { %v634_v53 = vpop.f32.mrf.mxu2 }
 0x6c5   :  { %v637_v54 = vsel %vm156_vm3, %v634_v53, -inf }
 0x6c6   :  { %638 = vmax.xlane.f32.xlu0 %v637_v54 }
 0x6da   :  { %760 = vrot.lane.b32.xlu0 %v4155_v45, %s4041_s29 }
 0x6e2   :  { %1239 = vrot.lane.b32.xlu0 %v4267_v44, %s4038_s26 }
 0x732   :  { %v4287_v55 = vpop.f32.mrf.mxu0 }
 0x739   :  { %v639_v60 = vpop.xlane.xlu0 %638 }
 0x73a   :  { %v836_v56 = vpop.f32.mrf.mxu0  ;;  %v640_v63 = vsub.f32 %v634_v53, %v639_v60 }
 0x73b   :  { %v839_v57 = vsel %vm156_vm3, %v836_v56, -inf }
 0x73c   :  { %840 = vmax.xlane.f32.xlu1 %v839_v57  ;;  %v641_v1 = vmul.f32 1.442695, %v640_v63 }
 0x74c   :  { %v761_v40 = vpop.permute.xlu0 %760 }
 0x755   :  { %721 = vrot.lane.b32.xlu1 %v4155_v45, %s4036_s24 }
 0x7af   :  { %v841_v61 = vpop.xlane.xlu1 %840 }
 0x7b0   :  { %v842_v62 = vsub.f32 %v836_v56, %v841_v61  ;;  %v1240_v61 = vpop.permute.xlu0 %1239 }
 0x7b2   :  { %v843_v0 = vmul.f32 1.442695, %v842_v62 }
 0x7b4   :  { %3784 = vpow2.f32 %v843_v0 }
 0x7b5   :  { %3786 = vpow2.f32 %v641_v1 }
 0x7ba   :  { %v3785_v3 = vpop.eup %3784 }
 0x7bb   :  { %v845_v4 = vsel %vm156_vm3, %v3785_v3, 0.0  ;;  %v3787_v6 = vpop.eup %3786 }
 0x7bc   :  { %846 = vadd.xlane.f32.xlu2 %v845_v4  ;;  %v643_v7 = vsel %vm156_vm3, %v3787_v6, 0.0 }
 0x7c4   :  { %644 = vadd.xlane.f32.xlu2 %v643_v7 }
 0x7c7   :  { %v722_v12 = vpop.permute.xlu1 %721 }
 0x7c8   :  { %3596 = vmatmul.msk.f32.vlgmr.msra.gmra.mxu2 %vm131_vm2, %v722_v12 }
 0x7c9   :  { %3607 = vmatpush.xpose.msk.msra.mxu2 %vm131_vm2, %v972_v59 }
 0x82f   :  { %v847_v13 = vpop.xlane.xlu2 %846 }
 0x830   :  { %3788 = vrcp.f32 %v847_v13 }
 0x836   :  { %v3789_v14 = vpop.eup %3788 }
 0x837   :  { %v849_v15 = vmul.f32 %v3789_v14, %v3785_v3  ;;  %v645_v31 = vpop.xlane.xlu2 %644 }
 0x839   :  { %3603 = vmatmul.msk.f32.vlgmr.msrb.gmra.mxu2 %vm170_vm4, %v849_v15 }
 0x83a   :  { %1119 = vmatpush.msrb.mxu2 %v4145_v38 }
 0x841   :  { %3608 = vmatmul.msk.f32.vlgmr.msra.gmra.mxu2 %vm131_vm2, %v4267_v44 }
 0x842   :  { %1231 = vmatpush.msra.mxu2 %v4171_v58 }
 0x84b   :  { %v746_v17 = vpop.f32.mrf.mxu2 }
 0x84c   :  { %v749_v18 = vsel %vm156_vm3, %v746_v17, -inf }
 0x84d   :  { %750 = vmax.xlane.f32.xlu1 %v749_v18 }
 0x8bc   :  { %v874_v25 = vpop.f32.mrf.mxu2 }
 0x8c0   :  { %v751_v20 = vpop.xlane.xlu1 %750 }
 0x8c1   :  { %v752_v21 = vsub.f32 %v746_v17, %v751_v20 }
 0x8c3   :  { %v753_v24 = vmul.f32 1.442695, %v752_v21 }
 0x8c4   :  { %v994_v29 = vpop.f32.mrf.mxu2 }
 0x8c5   :  { %3790 = vpow2.f32 %v753_v24  ;;  %v997_v30 = vsel %vm156_vm3, %v994_v29, -inf }
 0x8c6   :  { %3792 = vrcp.f32 %v645_v31  ;;  %v4379_v31 = vadd.f32 %v4102_v5, %v4274_v49 }
 0x8cb   :  { %v3791_v26 = vpop.eup %3790 }
 0x8cc   :  { %v755_v27 = vsel %vm156_vm3, %v3791_v26, 0.0  ;;  %v3793_v36 = vpop.eup %3792 }
 0x8cd   :  { %756 = vadd.xlane.f32.xlu2 %v755_v27  ;;  %v647_v39 = vmul.f32 %v3793_v36, %v3787_v6 }
 0x8d5   :  { %998 = vmax.xlane.f32.xlu2 %v997_v30 }
 0x8ed   :  { %648 = vrot.lane.b32.xlu2 %v4155_v45, %s4034_s22 }
 0x8f5   :  { %1237 = vrot.lane.b32.xlu2 %v4267_v44, %s4039_s27 }
 0x8fd   :  { %1037 = vrot.lane.b32.xlu2 %v4267_v44, %s4035_s23 }
 0x905   :  { %1035 = vrot.lane.b32.xlu2 %v4267_v44, %s4032_s20 }
 0x940   :  { %v757_v32 = vpop.xlane.xlu2 %756 }
 0x948   :  { %v999_v33 = vpop.xlane.xlu2 %998 }
 0x949   :  { %v1000_v34 = vsub.f32 %v994_v29, %v999_v33 }
 0x94b   :  { %v1001_v35 = vmul.f32 1.442695, %v1000_v34 }
 0x94d   :  { %3794 = vpow2.f32 %v1001_v35 }
 0x94e   :  { %3796 = vrcp.f32 %v757_v32 }
 0x950   :  { %v649_v45 = vpop.permute.xlu2 %648 }
 0x951   :  { %3591 = vmatpush.msk.msrb.mxu1 %vm174_vm1, %v649_v45 }
 0x952   :  { %3592 = vmatmul.msk.f32.vlgmr.msrb.gmra.mxu1 %vm170_vm4, %v647_v39 }
 0x953   :  { %v3795_v41 = vpop.eup %3794  ;;  %3597 = vmatpush.msk.msra.mxu1 %vm174_vm1, %v761_v40 }
 0x954   :  { %v1003_v42 = vsel %vm156_vm3, %v3795_v41, 0.0  ;;  %v3797_v43 = vpop.eup %3796 }
 0x955   :  { %895 = vmatpush.msrb.mxu1 %v4178_v2  ;;  %1004 = vadd.xlane.f32.xlu1 %v1003_v42  ;;  %v759_v46 = vmul.f32 %v3797_v43, %v3791_v26 }
 0x958   :  { %v1238_v51 = vpop.permute.xlu2 %1237 }
 0x95a   :  { %3598 = vmatmul.msk.f32.vlgmr.msra.gmra.mxu1 %vm170_vm4, %v759_v46 }
 0x960   :  { %v1038_v56 = vpop.permute.xlu2 %1037 }
 0x962   :  { %3604 = vmatmul.msk.f32.vlgmr.msrb.gmra.mxu1 %vm131_vm2, %v874_v25 }
 0x968   :  { %v1036_v14 = vpop.permute.xlu2 %1035 }
 0x96e   :  { %1008 = vrot.lane.b32.xlu1 %v4267_v44, %s4031_s19 }
 0x976   :  { %1149 = vrot.lane.b32.xlu1 %v4267_v44, %s4037_s25 }
 0x97e   :  { %1147 = vrot.lane.b32.xlu1 %v4267_v44, %s4036_s24 }
 0x986   :  { %1276 = vrot.lane.b32.xlu1 %v4267_v44, %s4040_s28 }
 0x98e   :  { %1398 = vrot.lane.b32.xlu1 %v4328_v47, %s4033_s21 }
 0x9c8   :  { %v1005_v53 = vpop.xlane.xlu1 %1004 }
 0x9c9   :  { %3798 = vrcp.f32 %v1005_v53 }
 0x9cf   :  { %v672_v52 = vpop.f32.mrf.mxu1  ;;  %v3799_v57 = vpop.eup %3798 }
 0x9d0   :  { %3593 = vmatmul.msk.f32.vlgmr.msrb.gmra.mxu3 %vm131_vm2, %v672_v52  ;;  %v1007_v59 = vmul.f32 %v3799_v57, %v3795_v41 }
 0x9d1   :  { %917 = vmatpush.msrb.mxu3 %v4191_v8 }
 0x9d3   :  { %918 = vmatpush.msrb.mxu3 %v4197_v9 }
 0x9d5   :  { %919 = vmatpush.msrb.mxu3 %v4203_v10 }
 0x9d7   :  { %v784_v54 = vpop.f32.mrf.mxu1  ;;  %920 = vmatpush.msrb.mxu3 %v4209_v11 }
 0x9d8   :  { %3599 = vmatmul.msk.f32.vlgmr.msra.gmra.mxu3 %vm131_vm2, %v784_v54 }
 0x9d9   :  { %3611 = vmatpush.xpose.msk.msra.mxu3 %vm131_vm2, %v1038_v56 }
 0x9df   :  { %v897_v0 = vpop.f32.mrf.mxu1 }
 0x9e0   :  { %v1009_v60 = vpop.permute.xlu1 %1008 }
 0x9e1   :  { %3609 = vmatpush.msk.msra.mxu1 %vm174_vm1, %v1009_v60 }
 0x9e2   :  { %3610 = vmatmul.msk.f32.vlgmr.msra.gmra.mxu1 %vm170_vm4, %v1007_v59 }
 0x9e3   :  { %1142 = vmatpush.msrb.mxu1 %v4142_v37 }
 0x9e5   :  { %3622 = vmatpush.xpose.msk.msra.mxu1 %vm131_vm2, %v1240_v61 }
 0x9e8   :  { %v1150_v63 = vpop.permute.xlu1 %1149 }
 0x9f0   :  { %v1148_v6 = vpop.permute.xlu1 %1147 }
 0xa53   :  { %v695_v62 = vpop.f32.mrf.mxu3 }
 0xa54   :  { %v719_v1 = vadd.f32 %v4287_v55, %v695_v62  ;;  %v1277_v55 = vpop.permute.xlu1 %1276 }
 0xa5b   :  { %v807_v3 = vpop.f32.mrf.mxu3 }
 0xa5c   :  { %v810_v4 = vadd.f32 %v807_v3, %v719_v1  ;;  %v1399_v15 = vpop.permute.xlu1 %1398 }
 0xa5e   :  { %v900_v7 = vadd.f32 %v897_v0, %v810_v4 }
 0xa5f   :  { %v1032_v12 = vpop.f32.mrf.mxu1 }
 0xa60   :  { %v4347_v13 = vadd.f32 %v4215_v16, %v900_v7  ;;  %3616 = vmatmul.msk.f32.vlgmr.msrb.gmra.mxu1 %vm131_vm2, %v1032_v12 }
 0xa61   :  { %1369 = vmatpush.msrb.mxu1 %v4228_v22 }
 0xa62   :  { %3605 = vmatmul.msk.f32.vlgmr.msrb.gmra.mxu3 %vm74_vm0, %v4347_v13 }
 0xa63   :  { %3617 = vmatpush.xpose.msk.msrb.mxu3 %vm131_vm2, %v1150_v63  ;;  %1370 = vmatpush.msrb.mxu1 %v4233_v23 }
 0xa68   :  { %3623 = vmatmul.msk.f32.vlgmr.msra.gmra.mxu1 %vm131_vm2, %v1238_v51 }
 0xa6a   :  { %3612 = vmatmul.msk.f32.vlgmr.msra.gmra.mxu3 %vm131_vm2, %v1036_v14 }
 0xa6b   :  { %3624 = vmatpush.msk.msra.mxu3 %vm174_vm1, %v1277_v55 }
 0xa72   :  { %3618 = vmatmul.msk.f32.vlgmr.msrb.gmra.mxu3 %vm131_vm2, %v1148_v6 }
 0xa73   :  { %3629 = vmatpush.xpose.msk.msrb.mxu3 %vm131_vm2, %v1399_v15 }
 0xadd   :  { %v4360_v17 = vpop.f32.mrf.mxu1 }
 0xae5   :  { %v922_v18 = vpop.f32.mrf.mxu3  ;;  %v1262_v20 = vpop.f32.mrf.mxu1 }
 0xae6   :  { %v923_v21 = vadd.f32 %v4240_v28, %v922_v18  ;;  %v1265_v24 = vsel %vm156_vm3, %v1262_v20, -inf }
 0xae7   :  { %1266 = vmax.xlane.f32.xlu0 %v1265_v24 }
 0xae8   :  { %3800 = vtanh.f32 %v923_v21 }
 0xaed   :  { %v1060_v25 = vpop.f32.mrf.mxu3 }
 0xaee   :  { %v3801_v26 = vpop.eup %3800  ;;  %v1063_v27 = vsel %vm156_vm3, %v1060_v25, -inf }
 0xaef   :  { %3606 = vmatmul.msk.f32.vlgmr.msra.gmra.mxu0 %vm520_vm5, %v3801_v26  ;;  %1064 = vmax.xlane.f32.xlu0 %v1063_v27 }
 0xaf5   :  { %v1172_v29 = vpop.f32.mrf.mxu3 }
 0xaf6   :  { %v1175_v30 = vsel %vm156_vm3, %v1172_v29, -inf }
 0xaf7   :  { %1176 = vmax.xlane.f32.xlu1 %v1175_v30 }
 0xb10   :  { %1435 = vrot.lane.b32.xlu1 %v4328_v47, %s4031_s19 }
 0xb18   :  { %1464 = vrot.lane.b32.xlu1 %v4328_v47, %s4035_s23 }
 0xb20   :  { %1462 = vrot.lane.b32.xlu1 %v4328_v47, %s4032_s20 }
 0xb28   :  { %1576 = vrot.lane.b32.xlu1 %v4328_v47, %s4037_s25 }
 0xb30   :  { %1574 = vrot.lane.b32.xlu1 %v4328_v47, %s4036_s24 }
 0xb38   :  { %1825 = vrot.lane.b32.xlu1 %v4379_v31, %s4033_s21 }
 0xb5a   :  { %v1267_v32 = vpop.xlane.xlu0 %1266 }
 0xb5b   :  { %v1268_v33 = vsub.f32 %v1262_v20, %v1267_v32 }
 0xb5d   :  { %v1269_v34 = vmul.f32 1.442695, %v1268_v33 }
 0xb5f   :  { %3802 = vpow2.f32 %v1269_v34 }
 0xb62   :  { %v1065_v35 = vpop.xlane.xlu0 %1064 }
 0xb63   :  { %v1066_v36 = vsub.f32 %v1060_v25, %v1065_v35 }
 0xb65   :  { %v3803_v39 = vpop.eup %3802  ;;  %v1067_v45 = vmul.f32 1.442695, %v1066_v36 }
 0xb66   :  { %v1271_v40 = vsel %vm156_vm3, %v3803_v39, 0.0 }
 0xb67   :  { %3804 = vpow2.f32 %v1067_v45  ;;  %1272 = vadd.xlane.f32.xlu2 %v1271_v40 }
 0xb6a   :  { %v1177_v41 = vpop.xlane.xlu1 %1176 }
 0xb6b   :  { %v1178_v42 = vsub.f32 %v1172_v29, %v1177_v41 }
 0xb6c   :  { %v4409_v21 = vpop.f32.mrf.mxu0 }
 0xb6d   :  { %v3805_v43 = vpop.eup %3804  ;;  %v1179_v5 = vmul.f32 1.442695, %v1178_v42 }
 0xb6e   :  { %v1069_v49 = vsel %vm156_vm3, %v3805_v43, 0.0 }
 0xb6f   :  { %3806 = vpow2.f32 %v1179_v5  ;;  %1070 = vadd.xlane.f32.xlu0 %v1069_v49 }
 0xb75   :  { %v3807_v46 = vpop.eup %3806 }
 0xb76   :  { %v1181_v51 = vsel %vm156_vm3, %v3807_v46, 0.0 }
 0xb77   :  { %1182 = vadd.xlane.f32.xlu2 %v1181_v51 }
 0xb82   :  { %v1436_v14 = vpop.permute.xlu1 %1435 }
 0xb8a   :  { %v1465_v27 = vpop.permute.xlu1 %1464 }
 0xb8f   :  { %1186 = vrot.lane.b32.xlu2 %v4267_v44, %s4041_s29 }
 0xb92   :  { %v1463_v34 = vpop.permute.xlu1 %1462 }
 0xb97   :  { %1666 = vrot.lane.b32.xlu2 %v4328_v47, %s4038_s26 }
 0xb9a   :  { %v1577_v41 = vpop.permute.xlu1 %1576 }
 0xb9f   :  { %1664 = vrot.lane.b32.xlu2 %v4328_v47, %s4039_s27 }
 0xba2   :  { %v1575_v42 = vpop.permute.xlu1 %1574 }
 0xbda   :  { %v1273_v52 = vpop.xlane.xlu2 %1272 }
 0xbdb   :  { %3808 = vrcp.f32 %v1273_v52 }
 0xbe1   :  { %v3809_v53 = vpop.eup %3808 }
 0xbe2   :  { %v1275_v54 = vmul.f32 %v3809_v53, %v3803_v39  ;;  %v1071_v60 = vpop.xlane.xlu0 %1070 }
 0xbe4   :  { %3625 = vmatmul.msk.f32.vlgmr.msra.gmra.mxu3 %vm170_vm4, %v1275_v54 }
 0xbe5   :  { %1546 = vmatpush.msra.mxu3 %v4145_v38 }
 0xbea   :  { %v1183_v1 = vpop.xlane.xlu2 %1182 }
 0xbec   :  { %3630 = vmatmul.msk.f32.vlgmr.msrb.gmra.mxu3 %vm131_vm2, %v4328_v47 }
 0xbed   :  { %1658 = vmatpush.msrb.mxu3 %v4171_v58 }
 0xbf2   :  { %v1187_v12 = vpop.permute.xlu2 %1186 }
 0xbfa   :  { %v1667_v24 = vpop.permute.xlu2 %1666 }
 0xc02   :  { %v1665_v32 = vpop.permute.xlu2 %1664 }
 0xc67   :  { %v1300_v56 = vpop.f32.mrf.mxu3 }
 0xc6f   :  { %v1421_v57 = vpop.f32.mrf.mxu3 }
 0xc70   :  { %v1424_v59 = vsel %vm156_vm3, %v1421_v57, -inf }
 0xc71   :  { %1425 = vmax.xlane.f32.xlu0 %v1424_v59 }
 0xc85   :  { %1074 = vrot.lane.b32.xlu0 %v4267_v44, %s4034_s22 }
 0xce4   :  { %v1426_v61 = vpop.xlane.xlu0 %1425 }
 0xce5   :  { %v1427_v62 = vsub.f32 %v1421_v57, %v1426_v61 }
 0xce7   :  { %v1428_v63 = vmul.f32 1.442695, %v1427_v62 }
 0xce9   :  { %3810 = vpow2.f32 %v1428_v63  ;;  %v1826_v63 = vpop.permute.xlu1 %1825 }
 0xcea   :  { %3812 = vrcp.f32 %v1071_v60 }
 0xceb   :  { %3814 = vrcp.f32 %v1183_v1 }
 0xcef   :  { %v3811_v0 = vpop.eup %3810 }
 0xcf0   :  { %v1430_v3 = vsel %vm156_vm3, %v3811_v0, 0.0  ;;  %v3813_v4 = vpop.eup %3812 }
 0xcf1   :  { %1431 = vadd.xlane.f32.xlu0 %v1430_v3  ;;  %v1073_v6 = vmul.f32 %v3813_v4, %v3805_v43  ;;  %v3815_v44 = vpop.eup %3814 }
 0xcf2   :  { %v1185_v55 = vmul.f32 %v3815_v44, %v3807_v46 }
 0xcf7   :  { %v1075_v7 = vpop.permute.xlu0 %1074 }
 0xcf8   :  { %3613 = vmatpush.msk.msrb.mxu0 %vm174_vm1, %v1075_v7 }
 0xcf9   :  { %3614 = vmatmul.msk.f32.vlgmr.msrb.gmra.mxu0 %vm170_vm4, %v1073_v6 }
 0xcfa   :  { %3619 = vmatpush.msk.msra.mxu0 %vm174_vm1, %v1187_v12 }
 0xcfc   :  { %1321 = vmatpush.msrb.mxu0 %v4178_v2 }
 0xd01   :  { %3620 = vmatmul.msk.f32.vlgmr.msra.gmra.mxu0 %vm170_vm4, %v1185_v55 }
 0xd02   :  { %3631 = vmatpush.msk.msra.mxu0 %vm174_vm1, %v1436_v14 }
 0xd09   :  { %3626 = vmatmul.msk.f32.vlgmr.msrb.gmra.mxu0 %vm131_vm2, %v1300_v56 }
 0xd0a   :  { %1569 = vmatpush.msrb.mxu0 %v4142_v37 }
 0xd64   :  { %v1432_v15 = vpop.xlane.xlu0 %1431 }
 0xd65   :  { %3816 = vrcp.f32 %v1432_v15 }
 0xd6b   :  { %v3817_v18 = vpop.eup %3816 }
 0xd6c   :  { %v1434_v20 = vmul.f32 %v3817_v18, %v3811_v0 }
 0xd6e   :  { %3632 = vmatmul.msk.f32.vlgmr.msra.gmra.mxu0 %vm170_vm4, %v1434_v20 }
 0xd6f   :  { %3644 = vmatpush.xpose.msk.msra.mxu0 %vm131_vm2, %v1667_v24 }
 0xd76   :  { %v1098_v25 = vpop.f32.mrf.mxu0 }
 0xd77   :  { %3615 = vmatmul.msk.f32.vlgmr.msrb.gmra.mxu2 %vm131_vm2, %v1098_v25 }
 0xd78   :  { %1343 = vmatpush.msrb.mxu2 %v4191_v8 }
 0xd7a   :  { %1344 = vmatpush.msrb.mxu2 %v4197_v9 }
 0xd7c   :  { %1345 = vmatpush.msrb.mxu2 %v4203_v10 }
 0xd7e   :  { %v1210_v26 = vpop.f32.mrf.mxu0  ;;  %1346 = vmatpush.msrb.mxu2 %v4209_v11 }
 0xd7f   :  { %3621 = vmatmul.msk.f32.vlgmr.msra.gmra.mxu2 %vm131_vm2, %v1210_v26 }
 0xd80   :  { %3633 = vmatpush.xpose.msk.msra.mxu2 %vm131_vm2, %v1465_v27 }
 0xd86   :  { %v1323_v29 = vpop.f32.mrf.mxu0 }
 0xdeb   :  { %v1459_v30 = vpop.f32.mrf.mxu0 }
 0xdec   :  { %3638 = vmatmul.msk.f32.vlgmr.msrb.gmra.mxu0 %vm131_vm2, %v1459_v30 }
 0xded   :  { %1796 = vmatpush.msrb.mxu0 %v4228_v22 }
 0xdef   :  { %1797 = vmatpush.msrb.mxu0 %v4233_v23 }
 0xdf4   :  { %3645 = vmatmul.msk.f32.vlgmr.msra.gmra.mxu0 %vm131_vm2, %v1665_v32 }
 0xdfa   :  { %v1121_v33 = vpop.f32.mrf.mxu2 }
 0xdfb   :  { %v1145_v35 = vadd.f32 %v4360_v17, %v1121_v33 }
 0xe02   :  { %v1233_v36 = vpop.f32.mrf.mxu2 }
 0xe03   :  { %v1236_v39 = vadd.f32 %v1233_v36, %v1145_v35 }
 0xe05   :  { %v1326_v45 = vadd.f32 %v1323_v29, %v1236_v39 }
 0xe07   :  { %v4426_v40 = vadd.f32 %v4215_v16, %v1326_v45 }
 0xe09   :  { %3627 = vmatmul.msk.f32.vlgmr.msrb.gmra.mxu2 %vm74_vm0, %v4426_v40 }
 0xe0a   :  { %3639 = vmatpush.xpose.msk.msrb.mxu2 %vm131_vm2, %v1577_v41 }
 0xe11   :  { %3634 = vmatmul.msk.f32.vlgmr.msra.gmra.mxu2 %vm131_vm2, %v1463_v34 }
 0xe19   :  { %3640 = vmatmul.msk.f32.vlgmr.msrb.gmra.mxu2 %vm131_vm2, %v1575_v42 }
 0xe69   :  { %v4433_v43 = vpop.f32.mrf.mxu0 }
 0xe71   :  { %v1689_v17 = vpop.f32.mrf.mxu0 }
 0xe72   :  { %v1692_v5 = vsel %vm156_vm3, %v1689_v17, -inf }
 0xe73   :  { %1693 = vmax.xlane.f32.xlu2 %v1692_v5 }
 0xe8c   :  { %v1348_v49 = vpop.f32.mrf.mxu2 }
 0xe8d   :  { %v1349_v46 = vadd.f32 %v4240_v28, %v1348_v49 }
 0xe8f   :  { %3818 = vtanh.f32 %v1349_v46 }
 0xe94   :  { %v1487_v51 = vpop.f32.mrf.mxu2 }
 0xe95   :  { %v3819_v52 = vpop.eup %3818  ;;  %v1490_v53 = vsel %vm156_vm3, %v1487_v51, -inf }
 0xe96   :  { %3628 = vmatmul.msk.f32.vlgmr.msrb.gmra.mxu1 %vm520_vm5, %v3819_v52  ;;  %1491 = vmax.xlane.f32.xlu2 %v1490_v53 }
 0xe9c   :  { %v1599_v54 = vpop.f32.mrf.mxu2 }
 0xe9d   :  { %v1602_v56 = vsel %vm156_vm3, %v1599_v54, -inf }
 0xe9e   :  { %1603 = vmax.xlane.f32.xlu1 %v1602_v56 }
 0xeb7   :  { %1613 = vrot.lane.b32.xlu1 %v4328_v47, %s4041_s29 }
 0xebf   :  { %2091 = vrot.lane.b32.xlu1 %v4379_v31, %s4039_s27 }
 0xec7   :  { %1891 = vrot.lane.b32.xlu1 %v4379_v31, %s4035_s23 }
 0xecf   :  { %1889 = vrot.lane.b32.xlu1 %v4379_v31, %s4032_s20 }
 0xee6   :  { %v1694_v57 = vpop.xlane.xlu2 %1693 }
 0xee7   :  { %v1695_v59 = vsub.f32 %v1689_v17, %v1694_v57 }
 0xee9   :  { %v1696_v60 = vmul.f32 1.442695, %v1695_v59 }
 0xeeb   :  { %3820 = vpow2.f32 %v1696_v60 }
 0xef1   :  { %v3821_v61 = vpop.eup %3820 }
 0xef2   :  { %v1698_v62 = vsel %vm156_vm3, %v3821_v61, 0.0 }
 0xef3   :  { %1699 = vadd.xlane.f32.xlu0 %v1698_v62 }
 0xf07   :  { %1703 = vrot.lane.b32.xlu0 %v4328_v47, %s4040_s28 }
 0xf09   :  { %v1492_v0 = vpop.xlane.xlu2 %1491 }
 0xf0a   :  { %v1493_v1 = vsub.f32 %v1487_v51, %v1492_v0 }
 0xf0c   :  { %v1494_v3 = vmul.f32 1.442695, %v1493_v1 }
 0xf0e   :  { %3822 = vpow2.f32 %v1494_v3 }
 0xf11   :  { %v1604_v4 = vpop.xlane.xlu1 %1603 }
 0xf12   :  { %v1605_v6 = vsub.f32 %v1599_v54, %v1604_v4 }
 0xf13   :  { %v4469_v35 = vpop.f32.mrf.mxu1 }
 0xf14   :  { %v3823_v7 = vpop.eup %3822  ;;  %v1606_v12 = vmul.f32 1.442695, %v1605_v6 }
 0xf15   :  { %v1496_v44 = vsel %vm156_vm3, %v3823_v7, 0.0 }
 0xf16   :  { %3824 = vpow2.f32 %v1606_v12  ;;  %1497 = vadd.xlane.f32.xlu2 %v1496_v44 }
 0xf1c   :  { %v3825_v55 = vpop.eup %3824 }
 0xf1d   :  { %v1608_v14 = vsel %vm156_vm3, %v3825_v55, 0.0 }
 0xf1e   :  { %1609 = vadd.xlane.f32.xlu2 %v1608_v14 }
 0xf29   :  { %v1614_v30 = vpop.permute.xlu1 %1613 }
 0xf31   :  { %v2092_v36 = vpop.permute.xlu1 %2091 }
 0xf36   :  { %1501 = vrot.lane.b32.xlu2 %v4328_v47, %s4034_s22 }
 0xf39   :  { %v1892_v45 = vpop.permute.xlu1 %1891 }
 0xf66   :  { %v1700_v15 = vpop.xlane.xlu0 %1699 }
 0xf67   :  { %3826 = vrcp.f32 %v1700_v15 }
 0xf6d   :  { %v3827_v18 = vpop.eup %3826 }
 0xf6e   :  { %v1702_v20 = vmul.f32 %v3827_v18, %v3821_v61 }
 0xf79   :  { %v1704_v24 = vpop.permute.xlu0 %1703 }
 0xf7a   :  { %3646 = vmatpush.msk.msra.mxu2 %vm174_vm1, %v1704_v24 }
 0xf7b   :  { %3647 = vmatmul.msk.f32.vlgmr.msra.gmra.mxu2 %vm170_vm4, %v1702_v20 }
 0xf7c   :  { %3651 = vmatpush.xpose.msk.msrb.mxu2 %vm131_vm2, %v1826_v63 }
 0xf80   :  { %1973 = vmatpush.msra.mxu2 %v4145_v38 }
 0xf83   :  { %3652 = vmatmul.msk.f32.vlgmr.msrb.gmra.mxu2 %vm131_vm2, %v4379_v31 }
 0xf84   :  { %2085 = vmatpush.msrb.mxu2 %v4171_v58 }
 0xf89   :  { %v1498_v25 = vpop.xlane.xlu2 %1497 }
 0xf8a   :  { %3828 = vrcp.f32 %v1498_v25 }
 0xf90   :  { %v3829_v26 = vpop.eup %3828 }
 0xf91   :  { %v1610_v47 = vpop.xlane.xlu2 %1609  ;;  %v1500_v27 = vmul.f32 %v3829_v26, %v3823_v7 }
 0xf92   :  { %3830 = vrcp.f32 %v1610_v47 }
 0xf98   :  { %v3831_v38 = vpop.eup %3830 }
 0xf99   :  { %v1502_v29 = vpop.permute.xlu2 %1501  ;;  %v1612_v32 = vmul.f32 %v3831_v38, %v3825_v55 }
 0xf9a   :  { %3635 = vmatpush.msk.msra.mxu1 %vm174_vm1, %v1502_v29 }
 0xf9b   :  { %3636 = vmatmul.msk.f32.vlgmr.msra.gmra.mxu1 %vm170_vm4, %v1500_v27 }
 0xf9c   :  { %3641 = vmatpush.msk.msrb.mxu1 %vm174_vm1, %v1614_v30 }
 0xf9e   :  { %1748 = vmatpush.msra.mxu1 %v4178_v2 }
 0xfa3   :  { %3642 = vmatmul.msk.f32.vlgmr.msrb.gmra.mxu1 %vm170_vm4, %v1612_v32 }
 0xffe   :  { %v1727_v58 = vpop.f32.mrf.mxu2 }
 0xfff   :  { %3648 = vmatmul.msk.f32.vlgmr.msra.gmra.mxu1 %vm131_vm2, %v1727_v58 }
0x1006   :  { %v1848_v33 = vpop.f32.mrf.mxu2 }
0x1007   :  { %v1851_v34 = vsel %vm156_vm3, %v1848_v33, -inf }
0x1008   :  { %1852 = vmax.xlane.f32.xlu0 %v1851_v34 }
0x1018   :  { %v1525_v39 = vpop.f32.mrf.mxu1 }
0x1019   :  { %3637 = vmatmul.msk.f32.vlgmr.msra.gmra.mxu3 %vm131_vm2, %v1525_v39 }
0x101a   :  { %1770 = vmatpush.msra.mxu3 %v4191_v8 }
0x101c   :  { %1862 = vrot.lane.b32.xlu0 %v4379_v31, %s4031_s19  ;;  %1771 = vmatpush.msra.mxu3 %v4197_v9 }
0x101e   :  { %1772 = vmatpush.msra.mxu3 %v4203_v10 }
0x1020   :  { %v1637_v2 = vpop.f32.mrf.mxu1  ;;  %1773 = vmatpush.msra.mxu3 %v4209_v11 }
0x1021   :  { %3643 = vmatmul.msk.f32.vlgmr.msrb.gmra.mxu3 %vm131_vm2, %v1637_v2 }
0x1022   :  { %3655 = vmatpush.xpose.msk.msrb.mxu3 %vm131_vm2, %v1892_v45 }
0x1024   :  { %2093 = vrot.lane.b32.xlu0 %v4379_v31, %s4038_s26 }
0x107b   :  { %v1853_v41 = vpop.xlane.xlu0 %1852 }
0x107c   :  { %v1854_v8 = vsub.f32 %v1848_v33, %v1853_v41  ;;  %v1750_v51 = vpop.f32.mrf.mxu1  ;;  %v4527_v33 = vld [vmem:[#allocation5 + $0x8] sm:$0xff] }
0x107e   :  { %v1855_v42 = vmul.f32 1.442695, %v1854_v8 }
0x1080   :  { %3832 = vpow2.f32 %v1855_v42 }
0x1086   :  { %v3833_v17 = vpop.eup %3832 }
0x1087   :  { %v1857_v9 = vsel %vm156_vm3, %v3833_v17, 0.0 }
0x1088   :  { %1858 = vadd.xlane.f32.xlu2 %v1857_v9 }
0x108e   :  { %v1863_v10 = vpop.permute.xlu0 %1862 }
0x108f   :  { %3653 = vmatpush.msk.msrb.mxu1 %vm174_vm1, %v1863_v10 }
0x1091   :  { %1996 = vmatpush.msra.mxu1 %v4142_v37  ;;  %v4496_v37 = vrot.slane %v4379_v31, 4 }
0x109c   :  { %v1548_v11 = vpop.f32.mrf.mxu3 }
0x109d   :  { %v1572_v5 = vadd.f32 %v4433_v43, %v1548_v11  ;;  %v1890_v43 = vpop.permute.xlu1 %1889  ;;  %v4550_v11 = vld [vmem:[#allocation5 + $0x18] sm:$0xff] }
0x10a0   :  { %2003 = vrot.lane.b32.xlu2 %v4379_v31, %s4037_s25 }
0x10a4   :  { %v1660_v49 = vpop.f32.mrf.mxu3 }
0x10a5   :  { %v1663_v46 = vadd.f32 %v1660_v49, %v1572_v5 }
0x10a7   :  { %v1753_v52 = vadd.f32 %v1750_v51, %v1663_v46  ;;  %v4556_v51 = vld [vmem:[#allocation5] sm:$0xff] }
0x10a8   :  { %2001 = vrot.lane.b32.xlu2 %v4379_v31, %s4036_s24 }
0x10a9   :  { %v4491_v53 = vadd.f32 %v4215_v16, %v1753_v52  ;;  %v2094_v16 = vpop.permute.xlu0 %2093 }
0x10ab   :  { %3649 = vmatmul.msk.f32.vlgmr.msra.gmra.mxu3 %vm74_vm0, %v4491_v53 }
0x10b0   :  { %2252 = vrot.lane.b32.xlu2 %v4496_v37, %s4033_s21 }
0x10b3   :  { %3656 = vmatmul.msk.f32.vlgmr.msrb.gmra.mxu3 %vm131_vm2, %v1890_v43 }
0x10fb   :  { %v1859_v54 = vpop.xlane.xlu2 %1858 }
0x10fc   :  { %3834 = vrcp.f32 %v1859_v54 }
0x1102   :  { %v3835_v56 = vpop.eup %3834 }
0x1103   :  { %v1861_v57 = vmul.f32 %v3835_v56, %v3833_v17  ;;  %v2004_v59 = vpop.permute.xlu2 %2003 }
0x1104   :  { %3661 = vmatpush.xpose.msk.msra.mxu3 %vm131_vm2, %v2004_v59 }
0x1105   :  { %3654 = vmatmul.msk.f32.vlgmr.msrb.gmra.mxu1 %vm170_vm4, %v1861_v57 }
0x1106   :  { %3666 = vmatpush.xpose.msk.msrb.mxu1 %vm131_vm2, %v2094_v16 }
0x110b   :  { %v2002_v60 = vpop.permute.xlu2 %2001 }
0x110c   :  { %3662 = vmatmul.msk.f32.vlgmr.msra.gmra.mxu3 %vm131_vm2, %v2002_v60  ;;  %v4566_v60 = vld [vmem:[%s4917_s5 + $0x18] sm:$0xff] }
0x1113   :  { %v2253_v7 = vpop.permute.xlu2 %2252 }
0x112e   :  { %v1775_v61 = vpop.f32.mrf.mxu3 }
0x112f   :  { %v1776_v62 = vadd.f32 %v4240_v28, %v1775_v61  ;;  %v4572_v61 = vld [vmem:[%s4917_s5 + $0x10] sm:$0xff] }
0x1131   :  { %3836 = vtanh.f32 %v1776_v62  ;;  %v4578_v62 = vld [vmem:[%s4917_s5 + $0x8] sm:$0xff] }
0x1136   :  { %v1914_v63 = vpop.f32.mrf.mxu3 }
0x1137   :  { %v3837_v0 = vpop.eup %3836  ;;  %v1917_v1 = vsel %vm156_vm3, %v1914_v63, -inf }
0x1138   :  { %1918 = vmax.xlane.f32.xlu2 %v1917_v1  ;;  %3650 = vmatmul.msk.f32.vlgmr.msrb.gmra.mxu0 %vm520_vm5, %v3837_v0  ;;  %v4584_v0 = vld [vmem:[%s4917_s5] sm:$0xff] }
0x1150   :  { %2040 = vrot.lane.b32.xlu2 %v4379_v31, %s4041_s29 }
0x1158   :  { %2318 = vrot.lane.b32.xlu2 %v4496_v37, %s4035_s23 }
0x1182   :  { %v1886_v3 = vpop.f32.mrf.mxu1 }
0x1183   :  { %3660 = vmatmul.msk.f32.vlgmr.msra.gmra.mxu1 %vm131_vm2, %v1886_v3  ;;  %v3944_v3 = vld [vmem:[%s4914_s2] ss:$0 sm:$0xff] }
0x1184   :  { %2223 = vmatpush.msra.mxu1 %v4228_v22 }
0x1186   :  { %2224 = vmatpush.msra.mxu1 %v4233_v23 }
0x118b   :  { %3667 = vmatmul.msk.f32.vlgmr.msrb.gmra.mxu1 %vm131_vm2, %v2092_v36  ;;  %v4532_v36 = vld [vmem:[#allocation5 + $0x10] sm:$0xff] }
0x118f   :  { %v2026_v20 = vpop.f32.mrf.mxu3 }
0x1190   :  { %v2029_v25 = vsel %vm156_vm3, %v2026_v20, -inf }
0x11ab   :  { %v1919_v14 = vpop.xlane.xlu2 %1918 }
0x11ac   :  { %v1920_v15 = vsub.f32 %v1914_v63, %v1919_v14 }
0x11ae   :  { %v1921_v18 = vmul.f32 1.442695, %v1920_v15 }
0x11b3   :  { %v2041_v10 = vpop.permute.xlu2 %2040 }
0x11b5   :  { %v4560_v59 = vpop.f32.mrf.mxu0 }
0x11bb   :  { %v2319_v1 = vpop.permute.xlu2 %2318 }
0x1200   :  { %v4516_v28 = vpop.f32.mrf.mxu1 }
0x1208   :  { %v2116_v4 = vpop.f32.mrf.mxu1 }
0x1209   :  { %v2119_v6 = vsel %vm156_vm3, %v2116_v4, -inf }
0x120a   :  { %2120 = vmax.xlane.f32.xlu0 %v2119_v6 }
0x121e   :  { %2130 = vrot.lane.b32.xlu0 %v4379_v31, %s4040_s28 }
0x127d   :  { %v2121_v12 = vpop.xlane.xlu0 %2120 }
0x127e   :  { %v2122_v44 = vsub.f32 %v2116_v4, %v2121_v12  ;;  %v4599_v4 = vadd.f32 %v3944_v3, %v4276_v50 }
0x1280   :  { %v2123_v55 = vmul.f32 1.442695, %v2122_v44 }
0x1282   :  { %3838 = vpow2.f32 %v2123_v55 }
0x1283   :  { %3840 = vpow2.f32 %v1921_v18 }
0x1288   :  { %v3839_v22 = vpop.eup %3838 }
0x1289   :  { %v2125_v23 = vsel %vm156_vm3, %v3839_v22, 0.0  ;;  %v3841_v47 = vpop.eup %3840 }
0x128a   :  { %2126 = vadd.xlane.f32.xlu1 %v2125_v23  ;;  %v1923_v26 = vsel %vm156_vm3, %v3841_v47, 0.0 }
0x1290   :  { %v2131_v24 = vpop.permute.xlu0 %2130 }
0x1291   :  { %3668 = vmatpush.msk.msrb.mxu3 %vm174_vm1, %v2131_v24 }
0x1292   :  { %2030 = vmax.xlane.f32.xlu1 %v2029_v25  ;;  %v4609_v25 = vld [vmem:[%s4916_s4] ss:$0 sm:$0xff] }
0x1293   :  { %3673 = vmatpush.xpose.msk.msra.mxu3 %vm131_vm2, %v2253_v7 }
0x129a   :  { %1924 = vadd.xlane.f32.xlu1 %v1923_v26 }
0x12fd   :  { %v2127_v27 = vpop.xlane.xlu1 %2126 }
0x12fe   :  { %3842 = vrcp.f32 %v2127_v27 }
0x1304   :  { %v3843_v29 = vpop.eup %3842 }
0x1305   :  { %v2129_v30 = vmul.f32 %v3843_v29, %v3839_v22  ;;  %v2031_v38 = vpop.xlane.xlu1 %2030 }
0x1306   :  { %v2032_v32 = vsub.f32 %v2026_v20, %v2031_v38  ;;  %v4631_v38 = vld [vmem:[%s4919_s7] sm:$0xff] }
0x1307   :  { %3669 = vmatmul.msk.f32.vlgmr.msrb.gmra.mxu3 %vm170_vm4, %v2129_v30  ;;  %v4625_v30 = vld [vmem:[%s4919_s7 + $0x8] sm:$0xff] }
0x1308   :  { %v2033_v58 = vmul.f32 1.442695, %v2032_v32  ;;  %2400 = vmatpush.msrb.mxu3 %v4527_v33 }
0x130a   :  { %3844 = vpow2.f32 %v2033_v58  ;;  %v4638_v58 = vld [vmem:[%s4918_s6] ss:$0 sm:$0xff]  ;;  %s4043_s6 = smov [#allocation7]  }
0x130b   :  { %s3546_s7 = sshll.u32 %s4043_s6, 4  ;;  %s3547_s7 = int_to_ptr.vmem [resolvable:$true] %s3546_s7 }
0x130d   :  { %v1925_v45 = vpop.xlane.xlu1 %1924 }
0x130e   :  { %3846 = vrcp.f32 %v1925_v45 }
0x130f   :  { %3674 = vmatmul.msk.f32.vlgmr.msra.gmra.mxu3 %vm131_vm2, %v4496_v37 }
0x1310   :  { %v3845_v34 = vpop.eup %3844  ;;  %2512 = vmatpush.msra.mxu3 %v4532_v36 }
0x1311   :  { %v2035_v39 = vsel %vm156_vm3, %v3845_v34, 0.0 }
0x1312   :  { %2036 = vadd.xlane.f32.xlu1 %v2035_v39 }
0x1314   :  { %v3847_v42 = vpop.eup %3846 }
0x1315   :  { %v1927_v17 = vmul.f32 %v3847_v42, %v3841_v47 }
0x132b   :  { %1928 = vrot.lane.b32.xlu1 %v4379_v31, %s4034_s22 }
0x1333   :  { %2289 = vrot.lane.b32.xlu1 %v4496_v37, %s4031_s19 }
0x133b   :  { %2518 = vrot.lane.b32.xlu1 %v4496_v37, %s4039_s27 }
0x1343   :  { %2316 = vrot.lane.b32.xlu1 %v4496_v37, %s4032_s20 }
0x134b   :  { %2430 = vrot.lane.b32.xlu1 %v4496_v37, %s4037_s25 }
0x1385   :  { %v2037_v31 = vpop.xlane.xlu1 %2036 }
0x1386   :  { %3848 = vrcp.f32 %v2037_v31 }
0x138a   :  { %v2154_v2 = vpop.f32.mrf.mxu3 }
0x138c   :  { %v3849_v5 = vpop.eup %3848 }
0x138d   :  { %v2039_v49 = vmul.f32 %v3849_v5, %v3845_v34 }
0x1392   :  { %v2275_v41 = vpop.f32.mrf.mxu3 }
0x1393   :  { %v2278_v8 = vsel %vm156_vm3, %v2275_v41, -inf }
0x1394   :  { %2279 = vmax.xlane.f32.xlu0 %v2278_v8 }
0x139d   :  { %v1929_v9 = vpop.permute.xlu1 %1928 }
0x139e   :  { %3657 = vmatpush.msk.msra.mxu0 %vm174_vm1, %v1929_v9 }
0x139f   :  { %3658 = vmatmul.msk.f32.vlgmr.msra.gmra.mxu0 %vm170_vm4, %v1927_v17 }
0x13a0   :  { %3663 = vmatpush.msk.msrb.mxu0 %vm174_vm1, %v2041_v10 }
0x13a2   :  { %2175 = vmatpush.msra.mxu0 %v4550_v11 }
0x13a5   :  { %v2290_v46 = vpop.permute.xlu1 %2289 }
0x13a7   :  { %3664 = vmatmul.msk.f32.vlgmr.msrb.gmra.mxu0 %vm170_vm4, %v2039_v49 }
0x13a8   :  { %3675 = vmatpush.msk.msrb.mxu0 %vm174_vm1, %v2290_v46 }
0x13ad   :  { %v2519_v55 = vpop.permute.xlu1 %2518 }
0x13af   :  { %3670 = vmatmul.msk.f32.vlgmr.msra.gmra.mxu0 %vm131_vm2, %v2154_v2 }
0x13b0   :  { %2423 = vmatpush.msra.mxu0 %v4556_v51 }
0x13b5   :  { %v2317_v22 = vpop.permute.xlu1 %2316 }
0x13bd   :  { %v2431_v26 = vpop.permute.xlu1 %2430 }
0x1407   :  { %v2280_v52 = vpop.xlane.xlu0 %2279 }
0x1408   :  { %v2281_v43 = vsub.f32 %v2275_v41, %v2280_v52 }
0x140a   :  { %v2282_v54 = vmul.f32 1.442695, %v2281_v43 }
0x140c   :  { %3850 = vpow2.f32 %v2282_v54 }
0x1412   :  { %v3851_v56 = vpop.eup %3850 }
0x1413   :  { %v2284_v57 = vsel %vm156_vm3, %v3851_v56, 0.0 }
0x1414   :  { %2285 = vadd.xlane.f32.xlu0 %v2284_v57 }
0x141c   :  { %v1952_v16 = vpop.f32.mrf.mxu0 }
0x141d   :  { %3659 = vmatmul.msk.f32.vlgmr.msra.gmra.mxu2 %vm131_vm2, %v1952_v16 }
0x141e   :  { %2197 = vmatpush.msra.mxu2 %v4566_v60 }
0x1420   :  { %2198 = vmatpush.msra.mxu2 %v4572_v61 }
0x1422   :  { %2199 = vmatpush.msra.mxu2 %v4578_v62 }
0x1424   :  { %v2064_v63 = vpop.f32.mrf.mxu0  ;;  %2200 = vmatpush.msra.mxu2 %v4584_v0 }
0x1425   :  { %3665 = vmatmul.msk.f32.vlgmr.msrb.gmra.mxu2 %vm131_vm2, %v2064_v63 }
0x1426   :  { %3677 = vmatpush.xpose.msk.msrb.mxu2 %vm131_vm2, %v2319_v1 }
0x1428   :  { %2520 = vrot.lane.b32.xlu0 %v4496_v37, %s4038_s26 }
0x142c   :  { %v2177_v18 = vpop.f32.mrf.mxu0 }
0x1430   :  { %2428 = vrot.lane.b32.xlu0 %v4496_v37, %s4036_s24 }
0x1438   :  { %2557 = vrot.lane.b32.xlu0 %v4496_v37, %s4040_s28 }
0x1440   :  { %2679 = vrot.lane.b32.xlu0 %v4599_v4, %s4033_s21 }
0x1487   :  { %v2286_v6 = vpop.xlane.xlu0 %2285 }
0x1488   :  { %3852 = vrcp.f32 %v2286_v6 }
0x148e   :  { %v3853_v7 = vpop.eup %3852 }
0x148f   :  { %v2288_v12 = vmul.f32 %v3853_v7, %v3851_v56 }
0x1491   :  { %3676 = vmatmul.msk.f32.vlgmr.msrb.gmra.mxu0 %vm170_vm4, %v2288_v12 }
0x149a   :  { %v2521_v44 = vpop.permute.xlu0 %2520 }
0x149b   :  { %3688 = vmatpush.xpose.msk.msrb.mxu0 %vm131_vm2, %v2521_v44 }
0x14a0   :  { %v1975_v14 = vpop.f32.mrf.mxu2 }
0x14a1   :  { %v1999_v15 = vadd.f32 %v4516_v28, %v1975_v14  ;;  %v4671_v14 = vrot.slane %v4599_v4, 4 }
0x14a2   :  { %v2429_v20 = vpop.permute.xlu0 %2428 }
0x14a8   :  { %v2087_v23 = vpop.f32.mrf.mxu2 }
0x14a9   :  { %v2090_v50 = vadd.f32 %v2087_v23, %v1999_v15 }
0x14aa   :  { %v2558_v28 = vpop.permute.xlu0 %2557 }
0x14ab   :  { %v2180_v24 = vadd.f32 %v2177_v18, %v2090_v50 }
0x14ad   :  { %v4612_v47 = vadd.f32 %v4609_v25, %v2180_v24 }
0x14af   :  { %3671 = vmatmul.msk.f32.vlgmr.msra.gmra.mxu2 %vm74_vm0, %v4612_v47 }
0x14b0   :  { %3683 = vmatpush.xpose.msk.msra.mxu2 %vm131_vm2, %v2431_v26 }
0x14b2   :  { %v2680_v27 = vpop.permute.xlu0 %2679 }
0x14b7   :  { %3678 = vmatmul.msk.f32.vlgmr.msrb.gmra.mxu2 %vm131_vm2, %v2317_v22 }
0x14b8   :  { %3690 = vmatpush.msk.msrb.mxu2 %vm174_vm1, %v2558_v28 }
0x14bf   :  { %3684 = vmatmul.msk.f32.vlgmr.msra.gmra.mxu2 %vm131_vm2, %v2429_v20 }
0x14c0   :  { %3695 = vmatpush.xpose.msk.msra.mxu2 %vm131_vm2, %v2680_v27 }
0x150e   :  { %v2313_v29 = vpop.f32.mrf.mxu0 }
0x150f   :  { %3682 = vmatmul.msk.f32.vlgmr.msra.gmra.mxu0 %vm131_vm2, %v2313_v29 }
0x1510   :  { %2650 = vmatpush.msra.mxu0 %v4625_v30 }
0x1512   :  { %2651 = vmatpush.msra.mxu0 %v4631_v38 }
0x1517   :  { %3689 = vmatmul.msk.f32.vlgmr.msrb.gmra.mxu0 %vm131_vm2, %v2519_v55 }
0x1532   :  { %v2202_v32 = vpop.f32.mrf.mxu2 }
0x1533   :  { %v2203_v34 = vadd.f32 %v4638_v58, %v2202_v32 }
0x1535   :  { %3854 = vtanh.f32 %v2203_v34 }
0x153a   :  { %v2341_v39 = vpop.f32.mrf.mxu2 }
0x153b   :  { %v3855_v2 = vpop.eup %3854  ;;  %v2344_v45 = vsel %vm156_vm3, %v2341_v39, -inf }
0x153c   :  { %3672 = vmatmul.msk.f32.vlgmr.msra.gmra.mxu1 %vm520_vm5, %v3855_v2  ;;  %2345 = vmax.xlane.f32.xlu0 %v2344_v45 }
0x1542   :  { %v2453_v42 = vpop.f32.mrf.mxu2 }
0x1543   :  { %v2456_v17 = vsel %vm156_vm3, %v2453_v42, -inf }
0x158c   :  { %v4643_v41 = vpop.f32.mrf.mxu0 }
0x1594   :  { %v2543_v8 = vpop.f32.mrf.mxu0 }
0x1595   :  { %v2546_v31 = vsel %vm156_vm3, %v2543_v8, -inf }
0x1596   :  { %2547 = vmax.xlane.f32.xlu2 %v2546_v31 }
0x159e   :  { %2457 = vmax.xlane.f32.xlu2 %v2456_v17 }
0x15af   :  { %v2346_v9 = vpop.xlane.xlu0 %2345 }
0x15b0   :  { %v2347_v10 = vsub.f32 %v2341_v39, %v2346_v9 }
0x15b2   :  { %v2348_v5 = vmul.f32 1.442695, %v2347_v10 }
0x15b4   :  { %3856 = vpow2.f32 %v2348_v5 }
0x15b9   :  { %v4684_v26 = vpop.f32.mrf.mxu1 }
0x15ba   :  { %v3857_v49 = vpop.eup %3856 }
0x15bb   :  { %v2350_v46 = vsel %vm156_vm3, %v3857_v49, 0.0 }
0x15bc   :  { %2351 = vadd.xlane.f32.xlu2 %v2350_v46 }
0x15d4   :  { %2355 = vrot.lane.b32.xlu2 %v4496_v37, %s4034_s22 }
0x15dc   :  { %2716 = vrot.lane.b32.xlu2 %v4599_v4, %s4031_s19 }
0x15e4   :  { %2745 = vrot.lane.b32.xlu2 %v4599_v4, %s4035_s23 }
0x15ec   :  { %2857 = vrot.lane.b32.xlu2 %v4599_v4, %s4037_s25 }
0x1609   :  { %v2548_v52 = vpop.xlane.xlu2 %2547 }
0x160a   :  { %v2549_v43 = vsub.f32 %v2543_v8, %v2548_v52 }
0x160c   :  { %v2550_v54 = vmul.f32 1.442695, %v2549_v43 }
0x160e   :  { %3858 = vpow2.f32 %v2550_v54 }
0x1611   :  { %v2458_v56 = vpop.xlane.xlu2 %2457 }
0x1612   :  { %v2459_v57 = vsub.f32 %v2453_v42, %v2458_v56 }
0x1614   :  { %v3859_v16 = vpop.eup %3858  ;;  %v2460_v63 = vmul.f32 1.442695, %v2459_v57 }
0x1615   :  { %v2552_v1 = vsel %vm156_vm3, %v3859_v16, 0.0 }
0x1616   :  { %3860 = vpow2.f32 %v2460_v63  ;;  %2553 = vadd.xlane.f32.xlu1 %v2552_v1 }
0x161c   :  { %v3861_v3 = vpop.eup %3860 }
0x161d   :  { %v2462_v6 = vsel %vm156_vm3, %v3861_v3, 0.0 }
0x161e   :  { %2463 = vadd.xlane.f32.xlu1 %v2462_v6 }
0x162f   :  { %v2352_v7 = vpop.xlane.xlu2 %2351 }
0x1630   :  { %3862 = vrcp.f32 %v2352_v7 }
0x1636   :  { %v3863_v12 = vpop.eup %3862 }
0x1637   :  { %v2354_v44 = vmul.f32 %v3863_v12, %v3857_v49  ;;  %2467 = vrot.lane.b32.xlu1 %v4496_v37, %s4041_s29  ;;  %v2356_v55 = vpop.permute.xlu2 %2355 }
0x1638   :  { %3679 = vmatpush.msk.msrb.mxu1 %vm174_vm1, %v2356_v55 }
0x1639   :  { %3680 = vmatmul.msk.f32.vlgmr.msrb.gmra.mxu1 %vm170_vm4, %v2354_v44 }
0x163f   :  { %2945 = vrot.lane.b32.xlu1 %v4599_v4, %s4039_s27  ;;  %v2717_v24 = vpop.permute.xlu2 %2716 }
0x1647   :  { %2743 = vrot.lane.b32.xlu1 %v4599_v4, %s4032_s20  ;;  %v2746_v39 = vpop.permute.xlu2 %2745 }
0x164f   :  { %2855 = vrot.lane.b32.xlu1 %v4599_v4, %s4036_s24  ;;  %v2858_v57 = vpop.permute.xlu2 %2857 }
0x1657   :  { %2984 = vrot.lane.b32.xlu1 %v4599_v4, %s4040_s28 }
0x165f   :  { %3106 = vrot.lane.b32.xlu1 %v4671_v14, %s4033_s21  ;;  %s3548_s21 = sshll.u32 %s4920_s8, 4  ;;  %s3549_s21 = int_to_ptr.hbm [resolvable:$true] %s3548_s21 }
0x1689   :  { %v2554_v37 = vpop.xlane.xlu1 %2553 }
0x168a   :  { %3864 = vrcp.f32 %v2554_v37 }
0x1690   :  { %v3865_v22 = vpop.eup %3864 }
0x1691   :  { %v2556_v15 = vmul.f32 %v3865_v22, %v3859_v16  ;;  %v2464_v23 = vpop.xlane.xlu1 %2463 }
0x1692   :  { %3866 = vrcp.f32 %v2464_v23 }
0x1693   :  { %3691 = vmatmul.msk.f32.vlgmr.msrb.gmra.mxu2 %vm170_vm4, %v2556_v15 }
0x1694   :  { %2827 = vmatpush.msrb.mxu2 %v4527_v33 }
0x1698   :  { %v3867_v50 = vpop.eup %3866 }
0x1699   :  { %v2466_v18 = vmul.f32 %v3867_v50, %v3861_v3 }
0x169b   :  { %3696 = vmatmul.msk.f32.vlgmr.msra.gmra.mxu2 %vm131_vm2, %v4599_v4 }
0x169c   :  { %2939 = vmatpush.msra.mxu2 %v4532_v36 }
0x16a9   :  { %v2468_v20 = vpop.permute.xlu1 %2467 }
0x16aa   :  { %3685 = vmatpush.msk.msra.mxu1 %vm174_vm1, %v2468_v20 }
0x16ab   :  { %3686 = vmatmul.msk.f32.vlgmr.msra.gmra.mxu1 %vm170_vm4, %v2466_v18 }
0x16ac   :  { %2602 = vmatpush.msrb.mxu1 %v4550_v11 }
0x16ae   :  { %3697 = vmatpush.msk.msra.mxu1 %vm174_vm1, %v2717_v24 }
0x16b1   :  { %v2946_v31 = vpop.permute.xlu1 %2945 }
0x16b6   :  { %v2379_v28 = vpop.f32.mrf.mxu1 }
0x16b7   :  { %3681 = vmatmul.msk.f32.vlgmr.msrb.gmra.mxu3 %vm131_vm2, %v2379_v28 }
0x16b8   :  { %2624 = vmatpush.msrb.mxu3 %v4566_v60 }
0x16b9   :  { %v2744_v10 = vpop.permute.xlu1 %2743 }
0x16ba   :  { %2625 = vmatpush.msrb.mxu3 %v4572_v61 }
0x16bc   :  { %2626 = vmatpush.msrb.mxu3 %v4578_v62 }
0x16be   :  { %2627 = vmatpush.msrb.mxu3 %v4584_v0 }
0x16c1   :  { %v2856_v43 = vpop.permute.xlu1 %2855 }
0x16c9   :  { %v2985_v16 = vpop.permute.xlu1 %2984 }
0x1716   :  { %v2581_v27 = vpop.f32.mrf.mxu2 }
0x1717   :  { %3692 = vmatmul.msk.f32.vlgmr.msrb.gmra.mxu1 %vm131_vm2, %v2581_v27 }
0x1718   :  { %2850 = vmatpush.msrb.mxu1 %v4556_v51 }
0x171e   :  { %v2702_v29 = vpop.f32.mrf.mxu2 }
0x171f   :  { %v2705_v32 = vsel %vm156_vm3, %v2702_v29, -inf }
0x1720   :  { %2706 = vmax.xlane.f32.xlu0 %v2705_v32 }
0x1728   :  { %v2491_v34 = vpop.f32.mrf.mxu1 }
0x1729   :  { %3687 = vmatmul.msk.f32.vlgmr.msra.gmra.mxu3 %vm131_vm2, %v2491_v34 }
0x172a   :  { %3699 = vmatpush.xpose.msk.msra.mxu3 %vm131_vm2, %v2746_v39 }
0x173a   :  { %v2402_v9 = vpop.f32.mrf.mxu3 }
0x173b   :  { %v2426_v5 = vadd.f32 %v4643_v41, %v2402_v9  ;;  %v3107_v41 = vpop.permute.xlu1 %3106 }
0x1793   :  { %v2707_v2 = vpop.xlane.xlu0 %2706 }
0x1794   :  { %v2708_v45 = vsub.f32 %v2702_v29, %v2707_v2  ;;  %v2604_v52 = vpop.f32.mrf.mxu1 }
0x1796   :  { %v2709_v8 = vmul.f32 1.442695, %v2708_v45 }
0x1798   :  { %3868 = vpow2.f32 %v2709_v8 }
0x179e   :  { %v3869_v42 = vpop.eup %3868 }
0x179f   :  { %v2711_v17 = vsel %vm156_vm3, %v3869_v42, 0.0 }
0x17a0   :  { %2712 = vadd.xlane.f32.xlu0 %v2711_v17 }
0x17ac   :  { %v2514_v49 = vpop.f32.mrf.mxu3 }
0x17ad   :  { %v2517_v46 = vadd.f32 %v2514_v49, %v2426_v5 }
0x17af   :  { %v2607_v54 = vadd.f32 %v2604_v52, %v2517_v46 }
0x17b1   :  { %v4699_v56 = vadd.f32 %v4609_v25, %v2607_v54 }
0x17b3   :  { %3693 = vmatmul.msk.f32.vlgmr.msrb.gmra.mxu3 %vm74_vm0, %v4699_v56 }
0x17b4   :  { %3705 = vmatpush.xpose.msk.msrb.mxu3 %vm131_vm2, %v2858_v57  ;;  %2947 = vrot.lane.b32.xlu0 %v4599_v4, %s4038_s26 }
0x17bb   :  { %3700 = vmatmul.msk.f32.vlgmr.msra.gmra.mxu3 %vm131_vm2, %v2744_v10 }
0x17bc   :  { %3712 = vmatpush.msk.msra.mxu3 %vm174_vm1, %v2985_v16 }
0x17c3   :  { %3706 = vmatmul.msk.f32.vlgmr.msrb.gmra.mxu3 %vm131_vm2, %v2856_v43 }
0x17c4   :  { %3717 = vmatpush.xpose.msk.msrb.mxu3 %vm131_vm2, %v3107_v41 }
0x1813   :  { %v2713_v63 = vpop.xlane.xlu0 %2712 }
0x1814   :  { %3870 = vrcp.f32 %v2713_v63 }
0x181a   :  { %v3871_v1 = vpop.eup %3870 }
0x181b   :  { %v2715_v3 = vmul.f32 %v3871_v1, %v3869_v42 }
0x181d   :  { %3698 = vmatmul.msk.f32.vlgmr.msra.gmra.mxu1 %vm170_vm4, %v2715_v3 }
0x1826   :  { %v2948_v6 = vpop.permute.xlu0 %2947 }
0x1827   :  { %3710 = vmatpush.xpose.msk.msra.mxu1 %vm131_vm2, %v2948_v6 }
0x1836   :  { %v2629_v7 = vpop.f32.mrf.mxu3 }
0x1837   :  { %v2630_v12 = vadd.f32 %v4638_v58, %v2629_v7 }
0x1839   :  { %3872 = vtanh.f32 %v2630_v12 }
0x183e   :  { %v2768_v44 = vpop.f32.mrf.mxu3 }
0x183f   :  { %v3873_v55 = vpop.eup %3872  ;;  %v2771_v37 = vsel %vm156_vm3, %v2768_v44, -inf }
0x1840   :  { %3694 = vmatmul.msk.f32.vlgmr.msra.gmra.mxu0 %vm520_vm5, %v3873_v55  ;;  %2772 = vmax.xlane.f32.xlu1 %v2771_v37 }
0x1846   :  { %v2880_v18 = vpop.f32.mrf.mxu3 }
0x1847   :  { %v2883_v20 = vsel %vm156_vm3, %v2880_v18, -inf }
0x189a   :  { %v2740_v22 = vpop.f32.mrf.mxu1 }
0x189b   :  { %3704 = vmatmul.msk.f32.vlgmr.msrb.gmra.mxu1 %vm131_vm2, %v2740_v22 }
0x189c   :  { %3077 = vmatpush.msrb.mxu1 %v4625_v30 }
0x189e   :  { %3078 = vmatpush.msrb.mxu1 %v4631_v38 }
0x18a3   :  { %3711 = vmatmul.msk.f32.vlgmr.msra.gmra.mxu1 %vm131_vm2, %v2946_v31 }
0x18b3   :  { %v2773_v24 = vpop.xlane.xlu1 %2772 }
0x18b4   :  { %v2774_v29 = vsub.f32 %v2768_v44, %v2773_v24 }
0x18b6   :  { %v2775_v34 = vmul.f32 1.442695, %v2774_v29 }
0x1918   :  { %v4719_v15 = vpop.f32.mrf.mxu1 }
0x1920   :  { %v2970_v23 = vpop.f32.mrf.mxu1 }
0x1921   :  { %v2973_v50 = vsel %vm156_vm3, %v2970_v23, -inf }
0x1922   :  { %2974 = vmax.xlane.f32.xlu2 %v2973_v50 }
0x192a   :  { %2884 = vmax.xlane.f32.xlu2 %v2883_v20 }
0x1995   :  { %v2975_v28 = vpop.xlane.xlu2 %2974 }
0x1996   :  { %v2976_v27 = vsub.f32 %v2970_v23, %v2975_v28 }
0x1998   :  { %v2977_v32 = vmul.f32 1.442695, %v2976_v27 }
0x199a   :  { %3874 = vpow2.f32 %v2977_v32 }
0x199b   :  { %3876 = vpow2.f32 %v2775_v34 }
0x199d   :  { %v2885_v39 = vpop.xlane.xlu2 %2884 }
0x199e   :  { %v2886_v2 = vsub.f32 %v2880_v18, %v2885_v39 }
0x19a0   :  { %v3875_v45 = vpop.eup %3874  ;;  %v2887_v8 = vmul.f32 1.442695, %v2886_v2 }
0x19a1   :  { %v2979_v31 = vsel %vm156_vm3, %v3875_v45, 0.0  ;;  %v3877_v42 = vpop.eup %3876 }
0x19a2   :  { %3878 = vpow2.f32 %v2887_v8  ;;  %2980 = vadd.xlane.f32.xlu0 %v2979_v31  ;;  %v2777_v9 = vsel %vm156_vm3, %v3877_v42, 0.0 }
0x19a8   :  { %v3879_v17 = vpop.eup %3878 }
0x19a9   :  { %v2889_v10 = vsel %vm156_vm3, %v3879_v17, 0.0 }
0x19aa   :  { %2778 = vadd.xlane.f32.xlu0 %v2777_v9  ;;  %2890 = vadd.xlane.f32.xlu2 %v2889_v10 }
0x19be   :  { %2782 = vrot.lane.b32.xlu0 %v4599_v4, %s4034_s22 }
0x19c2   :  { %2894 = vrot.lane.b32.xlu2 %v4599_v4, %s4041_s29 }
0x19ca   :  { %3172 = vrot.lane.b32.xlu2 %v4671_v14, %s4035_s23 }
0x19d2   :  { %3170 = vrot.lane.b32.xlu2 %v4671_v14, %s4032_s20 }
0x19da   :  { %3284 = vrot.lane.b32.xlu2 %v4671_v14, %s4037_s25 }
0x19e2   :  { %3374 = vrot.lane.b32.xlu2 %v4671_v14, %s4038_s26 }
0x1a15   :  { %v2981_v5 = vpop.xlane.xlu0 %2980 }
0x1a16   :  { %3880 = vrcp.f32 %v2981_v5  ;;  %v4042_v5 = vmov 0  }
0x1a17   :  { %3758 = vset.pattern.permute.xlu1 %v4042_v5  ;;  %3757 = vset.pattern.permute.xlu0 %v4042_v5 }
0x1a18   :  { %3756 = vset.pattern.permute.xlu2 %v4042_v5 }
0x1a1c   :  { %v3881_v49 = vpop.eup %3880 }
0x1a1d   :  { %v2983_v46 = vmul.f32 %v3881_v49, %v3875_v45  ;;  %v2779_v4 = vpop.xlane.xlu0 %2778  ;;  %v2891_v52 = vpop.xlane.xlu2 %2890 }
0x1a1e   :  { %3882 = vrcp.f32 %v2779_v4  ;;  %v4785_v4 = vmax.f32 %v4332_v48, %v4409_v21 }
0x1a1f   :  { %3713 = vmatmul.msk.f32.vlgmr.msra.gmra.mxu3 %vm170_vm4, %v2983_v46  ;;  %3884 = vrcp.f32 %v2891_v52 }
0x1a20   :  { %3254 = vmatpush.msra.mxu3 %v4527_v33  ;;  %v4789_v52 = vmax.f32 %v4785_v4, %v4469_v35 }
0x1a24   :  { %v3883_v43 = vpop.eup %3882 }
0x1a25   :  { %v2781_v54 = vmul.f32 %v3883_v43, %v3877_v42  ;;  %v2895_v16 = vpop.permute.xlu2 %2894  ;;  %v3885_v33 = vpop.eup %3884  ;;  %v1376_v43 = vsub.f32 %v4785_v4, %v4789_v52 }
0x1a26   :  { %v2893_v41 = vmul.f32 %v3885_v33, %v3879_v17 }
0x1a27   :  { %3718 = vmatmul.msk.f32.vlgmr.msrb.gmra.mxu3 %vm131_vm2, %v4671_v14 }
0x1a28   :  { %3366 = vmatpush.msrb.mxu3 %v4532_v36  ;;  %v4749_v36 = vpop.f32.mrf.mxu0 }
0x1a2d   :  { %v3173_v12 = vpop.permute.xlu2 %3172 }
0x1a30   :  { %v2783_v57 = vpop.permute.xlu0 %2782 }
0x1a31   :  { %3701 = vmatpush.msk.msrb.mxu0 %vm174_vm1, %v2783_v57  ;;  %v4795_v57 = vmax.f32 %v4789_v52, %v4560_v59 }
0x1a32   :  { %3702 = vmatmul.msk.f32.vlgmr.msrb.gmra.mxu0 %vm170_vm4, %v2781_v54  ;;  %v1377_v54 = vmul.f32 1.442695, %v1376_v43 }
0x1a33   :  { %3707 = vmatpush.msk.msra.mxu0 %vm174_vm1, %v2895_v16  ;;  %v1806_v16 = vsub.f32 %v4560_v59, %v4795_v57  ;;  %v4803_v33 = vmax.f32 %v4795_v57, %v4684_v26 }
0x1a35   :  { %3029 = vmatpush.msrb.mxu0 %v4550_v11  ;;  %v3171_v20 = vpop.permute.xlu2 %3170 }
0x1a3a   :  { %3708 = vmatmul.msk.f32.vlgmr.msra.gmra.mxu0 %vm170_vm4, %v2893_v41  ;;  %v1807_v41 = vmul.f32 1.442695, %v1806_v16 }
0x1a3d   :  { %v3285_v39 = vpop.permute.xlu2 %3284 }
0x1a45   :  { %v3375_v8 = vpop.permute.xlu2 %3374 }
0x1aa2   :  { %v3008_v63 = vpop.f32.mrf.mxu3 }
0x1aa3   :  { %3714 = vmatmul.msk.f32.vlgmr.msrb.gmra.mxu0 %vm131_vm2, %v3008_v63  ;;  %v4807_v63 = vmax.f32 %v4803_v33, %v4749_v36 }
0x1aaa   :  { %v3129_v1 = vpop.f32.mrf.mxu3 }
0x1aab   :  { %v3132_v3 = vsel %vm156_vm3, %v3129_v1, -inf }
0x1aac   :  { %3133 = vmax.xlane.f32.xlu1 %v3132_v3  ;;  %v2657_v3 = vsub.f32 %v4803_v33, %v4807_v63 }
0x1aaf   :  { %v2806_v6 = vpop.f32.mrf.mxu0 }
0x1ab0   :  { %3703 = vmatmul.msk.f32.vlgmr.msrb.gmra.mxu2 %vm131_vm2, %v2806_v6  ;;  %v2658_v6 = vmul.f32 1.442695, %v2657_v3 }
0x1ab1   :  { %3051 = vmatpush.msrb.mxu2 %v4566_v60 }
0x1ab3   :  { %3052 = vmatpush.msrb.mxu2 %v4572_v61 }
0x1ab5   :  { %3053 = vmatpush.msrb.mxu2 %v4578_v62 }
0x1ab7   :  { %v2918_v7 = vpop.f32.mrf.mxu0  ;;  %3054 = vmatpush.msrb.mxu2 %v4584_v0 }
0x1ab8   :  { %3709 = vmatmul.msk.f32.vlgmr.msra.gmra.mxu2 %vm131_vm2, %v2918_v7 }
0x1ab9   :  { %3721 = vmatpush.xpose.msk.msra.mxu2 %vm131_vm2, %v3173_v12 }
0x1ac5   :  { %3143 = vrot.lane.b32.xlu1 %v4671_v14, %s4031_s19 }
0x1acd   :  { %3282 = vrot.lane.b32.xlu1 %v4671_v14, %s4036_s24 }
0x1ad5   :  { %3372 = vrot.lane.b32.xlu1 %v4671_v14, %s4039_s27 }
0x1b1f   :  { %v3134_v44 = vpop.xlane.xlu1 %3133 }
0x1b20   :  { %v3135_v55 = vsub.f32 %v3129_v1, %v3134_v44  ;;  %v3031_v29 = vpop.f32.mrf.mxu0 }
0x1b22   :  { %v3136_v37 = vmul.f32 1.442695, %v3135_v55 }
0x1b24   :  { %3886 = vpow2.f32 %v3136_v37 }
0x1b2a   :  { %v3887_v22 = vpop.eup %3886 }
0x1b2b   :  { %v3138_v23 = vsel %vm156_vm3, %v3887_v22, 0.0 }
0x1b2c   :  { %3139 = vadd.xlane.f32.xlu0 %v3138_v23 }
0x1b33   :  { %v2829_v50 = vpop.f32.mrf.mxu2 }
0x1b34   :  { %v2853_v24 = vadd.f32 %v4719_v15, %v2829_v50 }
0x1b37   :  { %v3144_v18 = vpop.permute.xlu1 %3143 }
0x1b38   :  { %3719 = vmatpush.msk.msra.mxu0 %vm174_vm1, %v3144_v18 }
0x1b3a   :  { %3277 = vmatpush.msrb.mxu0 %v4556_v51 }
0x1b3b   :  { %v2941_v28 = vpop.f32.mrf.mxu2 }
0x1b3c   :  { %v2944_v27 = vadd.f32 %v2941_v28, %v2853_v24 }
0x1b3e   :  { %v3034_v32 = vadd.f32 %v3031_v29, %v2944_v27 }
0x1b3f   :  { %v3283_v2 = vpop.permute.xlu1 %3282 }
0x1b40   :  { %v4770_v34 = vadd.f32 %v4609_v25, %v3034_v32 }
0x1b42   :  { %3715 = vmatmul.msk.f32.vlgmr.msrb.gmra.mxu2 %vm74_vm0, %v4770_v34 }
0x1b43   :  { %3727 = vmatpush.xpose.msk.msrb.mxu2 %vm131_vm2, %v3285_v39 }
0x1b47   :  { %v3373_v44 = vpop.permute.xlu1 %3372 }
0x1b4a   :  { %3722 = vmatmul.msk.f32.vlgmr.msra.gmra.mxu2 %vm131_vm2, %v3171_v20 }
0x1b52   :  { %3728 = vmatmul.msk.f32.vlgmr.msrb.gmra.mxu2 %vm131_vm2, %v3283_v2 }
0x1b9f   :  { %v3140_v51 = vpop.xlane.xlu0 %3139 }
0x1ba0   :  { %3888 = vrcp.f32 %v3140_v51 }
0x1ba6   :  { %v3889_v15 = vpop.eup %3888 }
0x1ba7   :  { %v3142_v45 = vmul.f32 %v3889_v15, %v3887_v22 }
0x1ba9   :  { %3720 = vmatmul.msk.f32.vlgmr.msra.gmra.mxu0 %vm170_vm4, %v3142_v45  ;;  %v953_v45 = vsub.f32 %v4409_v21, %v4785_v4  ;;  %v2660_v21 = vsub.f32 %v4749_v36, %v4807_v63  ;;  %v950_v36 = vsub.f32 %v4332_v48, %v4785_v4  ;;  %v2233_v48 = vsub.f32 %v4684_v26, %v4803_v33 }
0x1baa   :  { %3732 = vmatpush.xpose.msk.msra.mxu0 %vm131_vm2, %v3375_v8 }
0x1bab   :  { %v954_v8 = vmul.f32 1.442695, %v953_v45 }
0x1bc5   :  { %v3056_v31 = vpop.f32.mrf.mxu2 }
0x1bc6   :  { %v3057_v42 = vadd.f32 %v4638_v58, %v3056_v31  ;;  %v1379_v31 = vsub.f32 %v4469_v35, %v4789_v52 }
0x1bc8   :  { %3890 = vtanh.f32 %v3057_v42  ;;  %v1380_v42 = vmul.f32 1.442695, %v1379_v31 }
0x1bc9   :  { %3892 = vpow2.f32 %v1377_v54 }
0x1bca   :  { %3894 = vpow2.f32 %v1807_v41 }
0x1bcb   :  { %3896 = vpow2.f32 %v2658_v6  ;;  %v951_v6 = vmul.f32 1.442695, %v950_v36 }
0x1bcd   :  { %v3195_v17 = vpop.f32.mrf.mxu2 }
0x1bce   :  { %v3891_v9 = vpop.eup %3890  ;;  %v3198_v10 = vsel %vm156_vm3, %v3195_v17, -inf }
0x1bcf   :  { %3716 = vmatmul.msk.f32.vlgmr.msrb.gmra.mxu1 %vm520_vm5, %v3891_v9  ;;  %3199 = vmax.xlane.f32.xlu2 %v3198_v10  ;;  %v4809_v1 = vpop.eup %3892  ;;  %v2230_v9 = vsub.f32 %v4795_v57, %v4803_v33 }
0x1bd0   :  { %v4814_v7 = vpop.eup %3894 }
0x1bd1   :  { %v4817_v59 = vpop.eup %3896  ;;  %v2231_v10 = vmul.f32 1.442695, %v2230_v9 }
0x1bd5   :  { %v3307_v49 = vpop.f32.mrf.mxu2 }
0x1bd6   :  { %v3310_v46 = vsel %vm156_vm3, %v3307_v49, -inf }
0x1bd7   :  { %3311 = vmax.xlane.f32.xlu1 %v3310_v46 }
0x1bf0   :  { %3321 = vrot.lane.b32.xlu1 %v4671_v14, %s4041_s29 }
0x1bf8   :  { %1386 = vperm.xlu1 %3758, %v4809_v1  }
0x1c00   :  { %1819 = vperm.xlu1 %3758, %v4814_v7  }
0x1c08   :  { %2667 = vperm.xlu1 %3758, %v4817_v59  }
0x1c26   :  { %v3167_v12 = vpop.f32.mrf.mxu0 }
0x1c27   :  { %3726 = vmatmul.msk.f32.vlgmr.msrb.gmra.mxu0 %vm131_vm2, %v3167_v12 }
0x1c28   :  { %3504 = vmatpush.msrb.mxu0 %v4625_v30 }
0x1c2a   :  { %3505 = vmatpush.msrb.mxu0 %v4631_v38 }
0x1c2f   :  { %3733 = vmatmul.msk.f32.vlgmr.msra.gmra.mxu0 %vm131_vm2, %v3373_v44  ;;  %v1803_v44 = vsub.f32 %v4789_v52, %v4795_v57  ;;  %v2234_v52 = vmul.f32 1.442695, %v2233_v48 }
0x1c42   :  { %v3200_v18 = vpop.xlane.xlu2 %3199 }
0x1c43   :  { %v3201_v20 = vsub.f32 %v3195_v17, %v3200_v18 }
0x1c45   :  { %v3202_v38 = vmul.f32 1.442695, %v3201_v20 }
0x1c4a   :  { %v3312_v24 = vpop.xlane.xlu1 %3311 }
0x1c4b   :  { %v3313_v28 = vsub.f32 %v3307_v49, %v3312_v24 }
0x1c4c   :  { %v3080_v55 = vpop.f32.mrf.mxu1 }
0x1c4d   :  { %v4825_v37 = vmax.f32 %v4807_v63, %v3080_v55  ;;  %v3314_v32 = vmul.f32 1.442695, %v3313_v28 }
0x1c4f   :  { %v3087_v22 = vsub.f32 %v3080_v55, %v4825_v37 }
0x1c51   :  { %v3088_v23 = vmul.f32 1.442695, %v3087_v22  ;;  %v1804_v22 = vmul.f32 1.442695, %v1803_v44 }
0x1c53   :  { %3898 = vpow2.f32 %v3088_v23 }
0x1c54   :  { %3900 = vpow2.f32 %v3202_v38 }
0x1c55   :  { %3902 = vpow2.f32 %v3314_v32 }
0x1c56   :  { %3904 = vpow2.f32 %v954_v8 }
0x1c57   :  { %3906 = vpow2.f32 %v1380_v42 }
0x1c58   :  { %3908 = vpow2.f32 %v2231_v10 }
0x1c59   :  { %v4828_v50 = vpop.eup %3898 }
0x1c5a   :  { %3100 = vperm.xlu1 %3758, %v4828_v50   ;;  %v3901_v39 = vpop.eup %3900 }
0x1c5b   :  { %v3204_v2 = vsel %vm156_vm3, %v3901_v39, 0.0  ;;  %v3903_v51 = vpop.eup %3902 }
0x1c5c   :  { %v3316_v15 = vsel %vm156_vm3, %v3903_v51, 0.0  ;;  %v4844_v17 = vpop.eup %3904 }
0x1c5d   :  { %v4849_v5 = vpop.eup %3906 }
0x1c5e   :  { %v4854_v35 = vpop.eup %3908 }
0x1c62   :  { %v3322_v38 = vpop.permute.xlu1 %3321 }
0x1ca4   :  { %v4831_v30 = vpop.f32.mrf.mxu0 }
0x1cac   :  { %v3397_v27 = vpop.f32.mrf.mxu0 }
0x1cad   :  { %v3400_v29 = vsel %vm156_vm3, %v3397_v27, -inf }
0x1cae   :  { %3401 = vmax.xlane.f32.xlu0 %v3400_v29 }
0x1cb6   :  { %3205 = vadd.xlane.f32.xlu0 %v3204_v2 }
0x1cbe   :  { %3317 = vadd.xlane.f32.xlu0 %v3316_v15 }
0x1cd2   :  { %3209 = vrot.lane.b32.xlu0 %v4671_v14, %s4034_s22 }
0x1cda   :  { %3411 = vrot.lane.b32.xlu0 %v4671_v14, %s4040_s28  ;;  %v2661_v14 = vmul.f32 1.442695, %v2660_v21 }
0x1cdc   :  { %3910 = vpow2.f32 %v2661_v14 }
0x1ce2   :  { %965 = vperm.xlu0 %3757, %v4844_v17   ;;  %v4857_v49 = vpop.eup %3910 }
0x1cea   :  { %1392 = vperm.xlu0 %3757, %v4849_v5  }
0x1cf2   :  { %2240 = vperm.xlu0 %3757, %v4854_v35  }
0x1cfa   :  { %2673 = vperm.xlu0 %3757, %v4857_v49  }
0x1d21   :  { %v3402_v46 = vpop.xlane.xlu0 %3401 }
0x1d22   :  { %v3403_v43 = vsub.f32 %v3397_v27, %v3402_v46  ;;  %v3084_v27 = vsub.f32 %v4807_v63, %v4825_v37 }
0x1d24   :  { %v3404_v54 = vmul.f32 1.442695, %v3403_v43  ;;  %v3085_v29 = vmul.f32 1.442695, %v3084_v27 }
0x1d26   :  { %3912 = vpow2.f32 %v3404_v54 }
0x1d29   :  { %v3206_v3 = vpop.xlane.xlu0 %3205 }
0x1d2a   :  { %3914 = vrcp.f32 %v3206_v3 }
0x1d2b   :  { %3916 = vpow2.f32 %v951_v6 }
0x1d2c   :  { %v3913_v16 = vpop.eup %3912 }
0x1d2d   :  { %v3406_v41 = vsel %vm156_vm3, %v3913_v16, 0.0 }
0x1d2e   :  { %3407 = vadd.xlane.f32.xlu2 %v3406_v41 }
0x1d30   :  { %v3915_v55 = vpop.eup %3914 }
0x1d31   :  { %v3318_v12 = vpop.xlane.xlu0 %3317  ;;  %v3208_v23 = vmul.f32 %v3915_v55, %v3901_v39  ;;  %v3917_v20 = vpop.eup %3916 }
0x1d32   :  { %3918 = vrcp.f32 %v3318_v12  ;;  %v956_v10 = vadd.f32 %v3917_v20, %v4844_v17 }
0x1d33   :  { %3920 = vpow2.f32 %v1804_v22 }
0x1d34   :  { %3922 = vpow2.f32 %v2234_v52 }
0x1d35   :  { %3924 = vpow2.f32 %v3085_v29 }
0x1d38   :  { %v3919_v4 = vpop.eup %3918 }
0x1d39   :  { %v3320_v57 = vmul.f32 %v3919_v4, %v3903_v51  ;;  %v3921_v28 = vpop.eup %3920 }
0x1d3a   :  { %v3923_v26 = vpop.eup %3922 }
0x1d3b   :  { %v3925_v33 = vpop.eup %3924 }
0x1d44   :  { %v3210_v18 = vpop.permute.xlu0 %3209 }
0x1d45   :  { %3723 = vmatpush.msk.msra.mxu1 %vm174_vm1, %v3210_v18  ;;  %v1387_v18 = vpop.permute.xlu1 %1386 }
0x1d46   :  { %959 = vperm.xlu2 %3756, %v3917_v20   ;;  %3724 = vmatmul.msk.f32.vlgmr.msra.gmra.mxu1 %vm170_vm4, %v3208_v23 }
0x1d47   :  { %3729 = vmatpush.msk.msrb.mxu1 %vm174_vm1, %v3322_v38 }
0x1d49   :  { %3456 = vmatpush.msra.mxu1 %v4550_v11 }
0x1d4c   :  { %v3412_v24 = vpop.permute.xlu0 %3411 }
0x1d4d   :  { %3734 = vmatpush.msk.msra.mxu2 %vm174_vm1, %v3412_v24  ;;  %v1820_v52 = vpop.permute.xlu1 %1819 }
0x1d4e   :  { %1813 = vperm.xlu2 %3756, %v3921_v28   ;;  %3730 = vmatmul.msk.f32.vlgmr.msrb.gmra.mxu1 %vm170_vm4, %v3320_v57  ;;  %v1822_v24 = vmul.f32 %v1820_v52, %v4491_v53 }
0x1d56   :  { %2246 = vperm.xlu2 %3756, %v3923_v26  }
0x1d5e   :  { %3094 = vperm.xlu2 %3756, %v3925_v33  }
0x1da1   :  { %v3408_v11 = vpop.xlane.xlu2 %3407 }
0x1da2   :  { %3926 = vrcp.f32 %v3408_v11 }
0x1da8   :  { %v3927_v32 = vpop.eup %3926 }
0x1da9   :  { %v3410_v39 = vmul.f32 %v3927_v32, %v3913_v16  ;;  %v960_v55 = vpop.permute.xlu2 %959 }
0x1daa   :  { %v962_v22 = vmul.f32 %v960_v55, %v4218_v19 }
0x1dab   :  { %3735 = vmatmul.msk.f32.vlgmr.msra.gmra.mxu2 %vm170_vm4, %v3410_v39 }
0x1dc3   :  { %v3233_v2 = vpop.f32.mrf.mxu1 }
0x1dc4   :  { %3725 = vmatmul.msk.f32.vlgmr.msra.gmra.mxu3 %vm131_vm2, %v3233_v2 }
0x1dc5   :  { %3478 = vmatpush.msra.mxu3 %v4566_v60 }
0x1dc7   :  { %3479 = vmatpush.msra.mxu3 %v4572_v61 }
0x1dc9   :  { %3480 = vmatpush.msra.mxu3 %v4578_v62 }
0x1dcb   :  { %v3345_v63 = vpop.f32.mrf.mxu1  ;;  %3481 = vmatpush.msra.mxu3 %v4584_v0 }
0x1dcc   :  { %3731 = vmatmul.msk.f32.vlgmr.msrb.gmra.mxu3 %vm131_vm2, %v3345_v63 }
0x1e2e   :  { %v3435_v51 = vpop.f32.mrf.mxu2 }
0x1e2f   :  { %3736 = vmatmul.msk.f32.vlgmr.msra.gmra.mxu1 %vm131_vm2, %v3435_v51 }
0x1e47   :  { %v3256_v15 = vpop.f32.mrf.mxu3 }
0x1e48   :  { %v3280_v8 = vadd.f32 %v4831_v30, %v3256_v15  ;;  %v1382_v30 = vmul.f32 %v4809_v1, %v956_v10 }
0x1e4a   :  { %v1383_v21 = vadd.f32 %v4849_v5, %v1382_v30 }
0x1e4c   :  { %v1809_v14 = vmul.f32 %v3921_v28, %v1383_v21 }
0x1e4f   :  { %v3368_v45 = vpop.f32.mrf.mxu3 }
0x1e50   :  { %v3371_v31 = vadd.f32 %v3368_v45, %v3280_v8 }
0x1eac   :  { %v3458_v42 = vpop.f32.mrf.mxu1 }
0x1ead   :  { %v3461_v9 = vadd.f32 %v3458_v42, %v3371_v31 }
0x1eaf   :  { %v4885_v60 = vadd.f32 %v4609_v25, %v3461_v9  ;;  %v1810_v25 = vadd.f32 %v4814_v7, %v1809_v14 }
0x1eb1   :  { %3737 = vmatmul.msk.f32.vlgmr.msra.gmra.mxu3 %vm74_vm0, %v4885_v60  ;;  %v2236_v46 = vmul.f32 %v4854_v35, %v1810_v25 }
0x1eb3   :  { %v2237_v43 = vadd.f32 %v3923_v26, %v2236_v46 }
0x1f34   :  { %v3483_v61 = vpop.f32.mrf.mxu3 }
0x1f35   :  { %v3484_v62 = vadd.f32 %v4638_v58, %v3483_v61  ;;  %v2663_v58 = vmul.f32 %v4817_v59, %v2237_v43 }
0x1f37   :  { %3928 = vtanh.f32 %v3484_v62  ;;  %v2664_v1 = vadd.f32 %v4857_v49, %v2663_v58 }
0x1f39   :  { %v3090_v5 = vmul.f32 %v3925_v33, %v2664_v1 }
0x1f3b   :  { %v3091_v7 = vadd.f32 %v4828_v50, %v3090_v5  ;;  %v1814_v50 = vpop.permute.xlu2 %1813 }
0x1f3d   :  { %v3929_v0 = vpop.eup %3928 }
0x1f3e   :  { %3738 = vmatmul.msk.f32.vlgmr.msrb.gmra.mxu0 %vm520_vm5, %v3929_v0 }
0x1f43   :  { %v2247_v27 = vpop.permute.xlu2 %2246 }
0x1f44   :  { %v2249_v26 = vmul.f32 %v2247_v27, %v4612_v47 }
0x1f4b   :  { %v3095_v63 = vpop.permute.xlu2 %3094 }
0x1fbb   :  { %v3507_v54 = vpop.f32.mrf.mxu0 }
0x1fbc   :  { %v3510_v16 = vmax.f32 %v4825_v37, %v3507_v54 }
0x1fbe   :  { %v3511_v41 = vsub.f32 %v4825_v37, %v3510_v16  ;;  %v3514_v3 = vsub.f32 %v3507_v54, %v3510_v16  ;;  %v966_v37 = vpop.permute.xlu0 %965 }
0x1fbf   :  { %v968_v49 = vmul.f32 %v966_v37, %v4347_v13  ;;  %v2668_v13 = vpop.permute.xlu1 %2667 }
0x1fc0   :  { %v3512_v36 = vmul.f32 1.442695, %v3511_v41  ;;  %v3515_v17 = vmul.f32 1.442695, %v3514_v3 }
0x1fc1   :  { %v969_v23 = vadd.f32 %v968_v49, %v962_v22 }
0x1fc2   :  { %3930 = vpow2.f32 %v3512_v36 }
0x1fc3   :  { %3932 = vpow2.f32 %v3515_v17  ;;  %v1389_v38 = vmul.f32 %v1387_v18, %v969_v23 }
0x1fc6   :  { %v1393_v20 = vpop.permute.xlu0 %1392 }
0x1fc7   :  { %v1395_v48 = vmul.f32 %v1393_v20, %v4426_v40  ;;  %v3101_v40 = vpop.permute.xlu1 %3100 }
0x1fc8   :  { %v3931_v6 = vpop.eup %3930  ;;  %v3103_v15 = vmul.f32 %v3101_v40, %v4770_v34 }
0x1fc9   :  { %v3933_v35 = vpop.eup %3932  ;;  %v3517_v12 = vmul.f32 %v3931_v6, %v3091_v7  ;;  %3521 = vperm.xlu0 %3757, %v3931_v6   ;;  %v1396_v4 = vadd.f32 %v1395_v48, %v1389_v38 }
0x1fca   :  { %3527 = vperm.xlu2 %3756, %v3933_v35  }
0x1fcb   :  { %v3518_v44 = vadd.f32 %v3933_v35, %v3517_v12  ;;  %v1816_v57 = vmul.f32 %v1814_v50, %v1396_v4 }
0x1fcd   :  { %3934 = vrcp.f32 %v3518_v44  ;;  %v1823_v29 = vadd.f32 %v1822_v24, %v1816_v57 }
0x1fce   :  { %v2241_v28 = vpop.permute.xlu0 %2240 }
0x1fcf   :  { %v2243_v19 = vmul.f32 %v2241_v28, %v1823_v29 }
0x1fd1   :  { %v2250_v33 = vadd.f32 %v2249_v26, %v2243_v19 }
0x1fd3   :  { %v3935_v59 = vpop.eup %3934  ;;  %v2670_v32 = vmul.f32 %v2668_v13, %v2250_v33 }
0x1fd4   :  { %3535 = vperm.xlu1 %3758, %v3935_v59  }
0x1fd6   :  { %v2674_v11 = vpop.permute.xlu0 %2673 }
0x1fd7   :  { %v2676_v39 = vmul.f32 %v2674_v11, %v4699_v56 }
0x1fd9   :  { %v2677_v2 = vadd.f32 %v2676_v39, %v2670_v32 }
0x1fdb   :  { %v3097_v51 = vmul.f32 %v3095_v63, %v2677_v2 }
0x1fdd   :  { %v3104_v53 = vadd.f32 %v3103_v15, %v3097_v51 }
0x2024   :  { %v3528_v8 = vpop.permute.xlu2 %3527 }
0x2025   :  { %v3530_v42 = vmul.f32 %v3528_v8, %v4885_v60 }
0x203b   :  { %v3522_v45 = vpop.permute.xlu0 %3521 }
0x203c   :  { %v3524_v31 = vmul.f32 %v3522_v45, %v3104_v53 }
0x203e   :  { %v3531_v47 = vadd.f32 %v3530_v42, %v3524_v31 }
0x2046   :  { %v3536_v56 = vpop.permute.xlu1 %3535 }
0x2047   :  { %v3538_v9 = vmul.f32 %v3536_v56, %v3531_v47 }
0x2049   :  { %3540 = vst.msk [vmem:[#allocation7] sm:$0xf] %vm3539_vm6, %v3538_v9 }
0x204a   :  { %3551 = dma.vmem_to_hbm [thread:$0]  %s3547_s7, 64, %s3549_s21, [#allocation4]  }
0x204b   :  { %4025 = dma.done.wait [#allocation4], 64  }
0x204c   :  { %4026 = vsyncadd [#allocation4], 4294967232 }
0x204d   :  { %3556 = vsyncpa [#allocation3], 1 }
0x204e   :  { %3557 = vsyncpa [#allocation6], 1 }
0x204f   :  { %3558 = vsyncpa [#allocation4], 1 }

</bundles_post_ra>
